<compile_context>
chip_gen: v7x
topology: tpu7x:2x2x1
jax: 0.10.0
libtpu: 0.0.40
codegen_flags: <defaults>
</compile_context>

<pallas_src>
import jax
import jax.numpy as jnp
from jax.experimental import pallas as pl
from jax.experimental.pallas import tpu as pltpu

_TARGET_M = 256  # target output pixels (matmul rows) per grid step


# ----------------------------------------------------------------------------
# Pallas kernel: fused direct conv (multi-group tap accumulation + epilogue)
# ----------------------------------------------------------------------------
def _make_conv_kernel(n_groups, offsets, Wo, th, relu, has_res):
    M = th * Wo

    def kernel(*refs):
        a_refs = refs[:n_groups]                 # per-group activations (bf16)
        w_refs = refs[n_groups:2 * n_groups]     # per-group weights     (bf16)
        b_ref = refs[2 * n_groups]               # bias (1, Cout) f32
        o_ref = refs[-1]
        r_ref = refs[2 * n_groups + 1] if has_res else None

        acc = jnp.zeros((M, o_ref.shape[-1]), jnp.float32)
        for g in range(n_groups):
            a = a_refs[g][...]                   # (th, Wg, Cin)
            w = w_refs[g][...]                   # (n_off, Cin, Cout)
            cin = a.shape[-1]
            for j, off in enumerate(offsets[g]):
                tap = a[:, off:off + Wo, :].reshape(M, cin)
                acc = acc + jnp.dot(tap, w[j], preferred_element_type=jnp.float32)
        acc = acc + b_ref[...]                   # bias (f32)
        if has_res:
            acc = acc + r_ref[...]               # fused residual add (f32)
        if relu:
            acc = jnp.maximum(acc, 0.0)
        o_ref[...] = acc.astype(o_ref.dtype)

    return kernel


def _run_conv(groups, bias, B, Ho, Wo, Cout, *, relu=False, res=None):
    """groups: list of (arr (R, Wg, Cin) bf16, offsets, w (n_off, Cin, Cout) bf16)."""
    R = B * Ho
    th = max(1, _TARGET_M // Wo)
    th = min(th, R)
    while (th * Wo) % 8:                         # keep out-block sublane dim 8-aligned
        th += 1
    n_tiles = -(-R // th)
    R_pad = n_tiles * th
    M = th * Wo

    arrs, offs, ws = [], [], []
    for a, o, w in groups:
        if R_pad != R:
            a = jnp.pad(a, ((0, R_pad - R), (0, 0), (0, 0)))
        arrs.append(a)
        offs.append(tuple(o))
        ws.append(w)
    n_g = len(arrs)

    has_res = res is not None
    args = arrs + ws + [bias.astype(jnp.float32)]
    in_specs = [pl.BlockSpec((th,) + a.shape[1:], lambda r: (r, 0, 0)) for a in arrs]
    in_specs += [pl.BlockSpec(w.shape, lambda r: (0, 0, 0)) for w in ws]
    in_specs += [pl.BlockSpec((1, Cout), lambda r: (0, 0))]
    if has_res:
        res2 = res.reshape(R * Wo, Cout).astype(jnp.float32)
        if R_pad != R:
            res2 = jnp.pad(res2, ((0, (R_pad - R) * Wo), (0, 0)))
        args.append(res2)
        in_specs.append(pl.BlockSpec((M, Cout), lambda r: (r, 0)))

    flops = 2 * R_pad * Wo * Cout * sum(int(w.shape[0]) * int(w.shape[1]) for w in ws)
    bytes_acc = (sum(int(a.size) * 2 for a in arrs)
                 + sum(int(w.size) * 2 for w in ws)
                 + R_pad * Wo * Cout * 4 * (2 if has_res else 1) + Cout * 4)

    out = pl.pallas_call(
        _make_conv_kernel(n_g, offs, Wo, th, relu, has_res),
        out_shape=jax.ShapeDtypeStruct((R_pad * Wo, Cout), jnp.float32),
        grid=(n_tiles,),
        in_specs=in_specs,
        out_specs=pl.BlockSpec((M, Cout), lambda r: (r, 0)),
        compiler_params=pltpu.CompilerParams(dimension_semantics=("parallel",)),
        cost_estimate=pl.CostEstimate(flops=flops, transcendentals=0,
                                      bytes_accessed=bytes_acc),
    )(*args)
    return out[:R * Wo].reshape(B, Ho, Wo, Cout)


# ----------------------------------------------------------------------------
# Group builders (wrapper-side data prep, bf16 cast happens here)
# ----------------------------------------------------------------------------
def _groups_stride1(x, w, *, K=3, pad=(1, 1, 1, 1)):
    B, H, W, Cin = x.shape
    pt, pb, pL, pR = pad
    xp = jnp.pad(x, ((0, 0), (pt, pb), (pL, pR), (0, 0))).astype(jnp.bfloat16)
    Ho = H + pt + pb - K + 1
    Wo = W + pL + pR - K + 1
    Wg = W + pL + pR
    groups = []
    for kh in range(K):
        arr = xp[:, kh:kh + Ho, :, :].reshape(B * Ho, Wg, Cin)
        groups.append((arr, tuple(range(K)), w[kh].astype(jnp.bfloat16)))
    return groups, Ho, Wo


def _groups_stride2(x, w):
    """3x3 / stride 2 / pad 1: row-stride + column parity split done in the wrapper."""
    B, H, W, Cin = x.shape
    Ho, Wo = H // 2, W // 2
    xp = jnp.pad(x, ((0, 0), (1, 1), (1, 1), (0, 0))).astype(jnp.bfloat16)
    groups = []
    for kh in range(3):
        rows = xp[:, kh:kh + 2 * Ho - 1:2, :, :]                    # (B, Ho, W+2, Cin)
        ev = rows[:, :, 0::2, :].reshape(B * Ho, Wo + 1, Cin)       # cols 2q
        od = rows[:, :, 1::2, :].reshape(B * Ho, Wo + 1, Cin)       # cols 2q+1
        w_ev = jnp.stack([w[kh, 0], w[kh, 2]], 0).astype(jnp.bfloat16)
        w_od = w[kh, 1:2].astype(jnp.bfloat16)
        groups.append((ev, (0, 1), w_ev))
        groups.append((od, (0,), w_od))
    return groups, Ho, Wo


# ----------------------------------------------------------------------------
# Conv wrappers
# ----------------------------------------------------------------------------
def fused_conv(xs, ws, bias, *, stride=1, relu=False, res=None):
    """sum_i conv(xs[i], ws[i]) + bias  ==  conv(concat(xs, ch), concat(ws, cin))."""
    B = xs[0].shape[0]
    Cout = ws[0].shape[-1]
    groups, Ho, Wo = [], None, None
    for x, w in zip(xs, ws):
        if stride == 1:
            g, Ho, Wo = _groups_stride1(x, w)
        else:
            g, Ho, Wo = _groups_stride2(x, w)
        groups += g
    return _run_conv(groups, bias, B, Ho, Wo, Cout, relu=relu, res=res)


def conv2d(p, x, *, stride=1, relu=False, res=None):
    return fused_conv([x], [p["w"]], p["b"], stride=stride, relu=relu, res=res)


def proj_concat(p, xa, xb):
    """ProjectionBlock(concat([xa, xb], ch)) without materializing the concat."""
    ca = xa.shape[-1]
    w = p["conv"]["w"]
    return fused_conv([xa, xb], [w[:, :, :ca, :], w[:, :, ca:, :]],
                      p["conv"]["b"], relu=True)


def conv_transpose2d(p, x):
    """nn.ConvTranspose2d(k=3, stride=2, padding=1, output_padding=1) via sub-pixel
    decomposition: one stride-1 2x2 conv producing all 4 output phases (4*Cout
    channels), interleaved back to (2H, 2W) in the wrapper.
    TODO(synk): weights stored as (kh, kw, Cin, Cout); loading real PyTorch
    ConvTranspose2d weights ((Cin, Cout, kh, kw)) would need a permutation."""
    w, b = p["w"], p["b"]
    B, H, W, Cin = x.shape
    Cout = w.shape[-1]
    z = jnp.zeros((Cin, Cout), w.dtype)
    # phase order (py, px): (0,0), (0,1), (1,0), (1,1); W2[a, j] are 2x2 taps on
    # x padded by 1 at bottom/right.
    w2_00 = jnp.concatenate([w[1, 1], w[1, 2], w[2, 1], w[2, 2]], axis=-1)
    w2_01 = jnp.concatenate([z,       w[1, 0], z,       w[2, 0]], axis=-1)
    w2_10 = jnp.concatenate([z,       z,       w[0, 1], w[0, 2]], axis=-1)
    w2_11 = jnp.concatenate([z,       z,       z,       w[0, 0]], axis=-1)
    w2 = jnp.stack([jnp.stack([w2_00, w2_01]), jnp.stack([w2_10, w2_11])])
    b4 = jnp.tile(b, (1, 4))
    groups, Ho, Wo = _groups_stride1(x, w2, K=2, pad=(0, 1, 0, 1))
    y = _run_conv(groups, b4, B, Ho, Wo, 4 * Cout)
    y = y.reshape(B, H, W, 2, 2, Cout)
    return jnp.transpose(y, (0, 1, 3, 2, 4, 5)).reshape(B, 2 * H, 2 * W, Cout)


# ----------------------------------------------------------------------------
# Blocks
# ----------------------------------------------------------------------------
def residual_block(p, x):
    # TODO(synk): ResidualBlock / SAM / FAM ('use_sam', 'fam_mode') definitions
    # were not provided; plain conv-relu-conv + skip (residual fused in kernel).
    h = conv2d(p["conv1"], x, relu=True)
    return conv2d(p["conv2"], h, res=x)


def scale_block(p, x):
    x = residual_block(p["rb1"], x)
    return residual_block(p["rb2"], x)


def scm(p, x):
    # TODO(synk): SCM definition not provided; simplified to conv-relu-conv.
    h = conv2d(p["conv1"], x, relu=True)
    return conv2d(p["conv2"], h)


def down_scale(x):
    # TODO(synk): down_scale() source not provided; nearest-neighbor 1/2 and 1/4.
    x2 = x[:, ::2, ::2, :]
    x4 = x2[:, ::2, ::2, :]
    return x2, x4


# ----------------------------------------------------------------------------
# Parameter init (deterministic, synthetic)
# ----------------------------------------------------------------------------
def _conv_params(key, kh, kw, cin, cout):
    k1, k2 = jax.random.split(key)
    bound = 1.0 / float(kh * kw * cin) ** 0.5
    w = jax.random.uniform(k1, (kh, kw, cin, cout), jnp.float32, -bound, bound)
    b = jax.random.uniform(k2, (1, cout), jnp.float32, -bound, bound)
    return {"w": w, "b": b}


def init_params(key, in_ch, hid, k=3):
    keys = iter(jax.random.split(key, 64))

    def cp(cin, cout):
        return _conv_params(next(keys), k, k, cin, cout)

    def rb(c):
        return {"conv1": cp(c, c), "conv2": cp(c, c)}

    def sb(c):
        return {"rb1": rb(c), "rb2": rb(c)}

    p = {}
    p["conv_in"] = cp(in_ch, hid)
    p["encoders"] = [sb(hid), sb(2 * hid), sb(4 * hid)]
    p["decoders"] = [sb(4 * hid), sb(2 * hid), sb(hid)]
    p["inputs"] = [
        {"conv1": cp(in_ch, 2 * hid), "conv2": cp(2 * hid, 2 * hid)},
        {"conv1": cp(in_ch, 4 * hid), "conv2": cp(4 * hid, 4 * hid)},
    ]
    p["conv_outs"] = [cp(hid, in_ch), cp(2 * hid, in_ch), cp(4 * hid, in_ch)]
    p["down_scales"] = [cp(hid, 2 * hid), cp(2 * hid, 4 * hid)]
    p["up_scales"] = [cp(4 * hid, 2 * hid), cp(2 * hid, hid)]
    p["projections"] = [
        {"conv": cp(2 * hid, hid)},
        {"conv": cp(4 * hid, 2 * hid)},
        {"conv": cp(8 * hid, 4 * hid)},
    ]
    return p


# ----------------------------------------------------------------------------
# DDANet forward (same wiring as the PyTorch module, incl. projections[1] reuse)
# ----------------------------------------------------------------------------
def ddanet_forward(p, x_nchw):
    x = jnp.transpose(x_nchw, (0, 2, 3, 1))                 # NCHW -> NHWC
    x2, x4 = down_scale(x)

    z = conv2d(p["conv_in"], x)
    z2 = scm(p["inputs"][0], x2)
    z4 = scm(p["inputs"][1], x4)

    skip1 = scale_block(p["encoders"][0], z)
    s2 = conv2d(p["down_scales"][0], skip1, stride=2)
    s2 = proj_concat(p["projections"][1], z2, s2)           # fused concat+proj

    skip2 = scale_block(p["encoders"][1], s2)
    s4 = conv2d(p["down_scales"][1], skip2, stride=2)
    s4 = proj_concat(p["projections"][2], z4, s4)

    out4 = scale_block(p["encoders"][2], s4)
    emb4 = scale_block(p["decoders"][0], out4)

    up2 = conv_transpose2d(p["up_scales"][0], emb4)
    emb2 = proj_concat(p["projections"][1], up2, skip2)
    out2 = scale_block(p["decoders"][1], emb2)

    up1 = conv_transpose2d(p["up_scales"][1], out2)
    emb = proj_concat(p["projections"][0], up1, skip1)
    out = scale_block(p["decoders"][2], emb)

    y0 = conv2d(p["conv_outs"][0], out, res=x)              # + x   (fused)
    y1 = conv2d(p["conv_outs"][1], out2, res=x2)            # + x_2 (fused)
    y2 = conv2d(p["conv_outs"][2], out4, res=x4)            # + x_4 (fused)

    to_nchw = lambda t: jnp.transpose(t, (0, 3, 1, 2))
    return to_nchw(y0), to_nchw(y1), to_nchw(y2)


# ----------------------------------------------------------------------------
if __name__ == "__main__":
    in_ch, hid, H, W, B = 3, 8, 32, 32, 2
    key = jax.random.PRNGKey(0)
    pkey, xkey = jax.random.split(key)
    params = init_params(pkey, in_ch, hid)
    x = jax.random.normal(xkey, (B, in_ch, H, W), jnp.float32)

    # --- single-layer checks vs pure-JAX references (loose tol for bf16 MXU) ---
    def ref_conv(xx, w, b, stride):
        y = jax.lax.conv_general_dilated(
            xx, w, (stride, stride), ((1, 1), (1, 1)),
            dimension_numbers=("NHWC", "HWIO", "NHWC"))
        return y + b.reshape(1, 1, 1, -1)

    def ref_convT(xx, w, b):
        Bb, Hh, Ww, Ci = xx.shape
        xd = jnp.zeros((Bb, 2 * Hh - 1, 2 * Ww - 1, Ci), xx.dtype)
        xd = xd.at[:, ::2, ::2, :].set(xx)
        xd = jnp.pad(xd, ((0, 0), (1, 2), (1, 2), (0, 0)))
        y = jax.lax.conv_general_dilated(
            xd, w[::-1, ::-1], (1, 1), "VALID",
            dimension_numbers=("NHWC", "HWIO", "NHWC"))
        return y + b.reshape(1, 1, 1, -1)

    kc = jax.random.split(jax.random.PRNGKey(1), 3)
    xt = jax.random.normal(kc[0], (2, 16, 16, 8), jnp.float32)
    pc = _conv_params(kc[1], 3, 3, 8, 16)
    assert jnp.max(jnp.abs(conv2d(pc, xt) - ref_conv(xt, pc["w"], pc["b"], 1))) < 5e-2
    assert jnp.max(jnp.abs(conv2d(pc, xt, stride=2)
                           - ref_conv(xt, pc["w"], pc["b"], 2))) < 5e-2
    pt = _conv_params(kc[2], 3, 3, 8, 4)
    assert jnp.max(jnp.abs(conv_transpose2d(pt, xt)
                           - ref_convT(xt, pt["w"], pt["b"]))) < 5e-2

    fwd = jax.jit(lambda xx: ddanet_forward(params, xx))
    y0, y1, y2 = fwd(x)
    jax.block_until_ready((y0, y1, y2))

    assert y0.shape == (B, in_ch, H, W)
    assert y1.shape == (B, in_ch, H // 2, W // 2)
    assert y2.shape == (B, in_ch, H // 4, W // 4)
    assert bool(jnp.isfinite(y0).all() & jnp.isfinite(y1).all() & jnp.isfinite(y2).all())
    print("KERNEL_OK")
</pallas_src>

<mosaic_0001>
module attributes {stable_mosaic.version = 11 : i64} {
  func.func @kernel(%arg0: i32, %arg1: memref<16x18x8xbf16, #tpu.memory_space<vmem>>, %arg2: memref<16x18x8xbf16, #tpu.memory_space<vmem>>, %arg3: memref<16x18x8xbf16, #tpu.memory_space<vmem>>, %arg4: memref<3x8x16xbf16, #tpu.memory_space<vmem>>, %arg5: memref<3x8x16xbf16, #tpu.memory_space<vmem>>, %arg6: memref<3x8x16xbf16, #tpu.memory_space<vmem>>, %arg7: memref<1x16xf32, #tpu.memory_space<vmem>>, %arg8: memref<256x16xf32, #tpu.memory_space<vmem>>) attributes {dimension_semantics = [#tpu.dimension_semantics<parallel>], iteration_bounds = array<i64: 2>, scalar_prefetch = 0 : i64, scratch_operands = 0 : i64, tpu.core_type = #tpu.core_type<tc>, window_params = [{transform_indices = @transform_0, window_bounds = array<i64: 16, 18, 8>}, {transform_indices = @transform_1, window_bounds = array<i64: 16, 18, 8>}, {transform_indices = @transform_2, window_bounds = array<i64: 16, 18, 8>}, {pipeline_mode = #tpu.pipeline_mode<synchronous>, transform_indices = @transform_3, window_bounds = array<i64: 3, 8, 16>}, {pipeline_mode = #tpu.pipeline_mode<synchronous>, transform_indices = @transform_4, window_bounds = array<i64: 3, 8, 16>}, {pipeline_mode = #tpu.pipeline_mode<synchronous>, transform_indices = @transform_5, window_bounds = array<i64: 3, 8, 16>}, {pipeline_mode = #tpu.pipeline_mode<synchronous>, transform_indices = @transform_6, window_bounds = array<i64: 1, 16>}, {transform_indices = @transform_7, window_bounds = array<i64: 256, 16>}]} {
    %cst = arith.constant 0.000000e+00 : f32
    %0 = vector.broadcast %cst : f32 to vector<256x16xf32>
    %c0 = arith.constant 0 : index
    %c0_0 = arith.constant 0 : index
    %c0_1 = arith.constant 0 : index
    %1 = vector.load %arg1[%c0, %c0_0, %c0_1] : memref<16x18x8xbf16, #tpu.memory_space<vmem>>, vector<16x18x8xbf16>
    %c0_2 = arith.constant 0 : index
    %c0_3 = arith.constant 0 : index
    %c0_4 = arith.constant 0 : index
    %2 = vector.load %arg4[%c0_2, %c0_3, %c0_4] : memref<3x8x16xbf16, #tpu.memory_space<vmem>>, vector<3x8x16xbf16>
    %3 = vector.extract_strided_slice %1 {offsets = [0, 0, 0], sizes = [16, 16, 8], strides = [1, 1, 1]} : vector<16x18x8xbf16> to vector<16x16x8xbf16>
    %4 = vector.shape_cast %3 : vector<16x16x8xbf16> to vector<256x8xbf16>
    %5 = vector.extract_strided_slice %2 {offsets = [0, 0, 0], sizes = [1, 8, 16], strides = [1, 1, 1]} : vector<3x8x16xbf16> to vector<1x8x16xbf16>
    %6 = vector.shape_cast %5 : vector<1x8x16xbf16> to vector<8x16xbf16>
    %cst_5 = arith.constant dense<0.000000e+00> : vector<256x16xf32>
    %7 = tpu.matmul %4, %6, %cst_5 {dimension_numbers = #tpu.dot_dimension_numbers<[1], [0], [0], [1], [0, 0, 1, 1], [], []>} : vector<256x8xbf16>, vector<8x16xbf16>, vector<256x16xf32> -> vector<256x16xf32>
    %8 = arith.addf %0, %7 : vector<256x16xf32>
    %9 = vector.extract_strided_slice %1 {offsets = [0, 1, 0], sizes = [16, 16, 8], strides = [1, 1, 1]} : vector<16x18x8xbf16> to vector<16x16x8xbf16>
    %10 = vector.shape_cast %9 : vector<16x16x8xbf16> to vector<256x8xbf16>
    %11 = vector.extract_strided_slice %2 {offsets = [1, 0, 0], sizes = [1, 8, 16], strides = [1, 1, 1]} : vector<3x8x16xbf16> to vector<1x8x16xbf16>
    %12 = vector.shape_cast %11 : vector<1x8x16xbf16> to vector<8x16xbf16>
    %cst_6 = arith.constant dense<0.000000e+00> : vector<256x16xf32>
    %13 = tpu.matmul %10, %12, %cst_6 {dimension_numbers = #tpu.dot_dimension_numbers<[1], [0], [0], [1], [0, 0, 1, 1], [], []>} : vector<256x8xbf16>, vector<8x16xbf16>, vector<256x16xf32> -> vector<256x16xf32>
    %14 = arith.addf %8, %13 : vector<256x16xf32>
    %15 = vector.extract_strided_slice %1 {offsets = [0, 2, 0], sizes = [16, 16, 8], strides = [1, 1, 1]} : vector<16x18x8xbf16> to vector<16x16x8xbf16>
    %16 = vector.shape_cast %15 : vector<16x16x8xbf16> to vector<256x8xbf16>
    %17 = vector.extract_strided_slice %2 {offsets = [2, 0, 0], sizes = [1, 8, 16], strides = [1, 1, 1]} : vector<3x8x16xbf16> to vector<1x8x16xbf16>
    %18 = vector.shape_cast %17 : vector<1x8x16xbf16> to vector<8x16xbf16>
    %cst_7 = arith.constant dense<0.000000e+00> : vector<256x16xf32>
    %19 = tpu.matmul %16, %18, %cst_7 {dimension_numbers = #tpu.dot_dimension_numbers<[1], [0], [0], [1], [0, 0, 1, 1], [], []>} : vector<256x8xbf16>, vector<8x16xbf16>, vector<256x16xf32> -> vector<256x16xf32>
    %20 = arith.addf %14, %19 : vector<256x16xf32>
    %c0_8 = arith.constant 0 : index
    %c0_9 = arith.constant 0 : index
    %c0_10 = arith.constant 0 : index
    %21 = vector.load %arg2[%c0_8, %c0_9, %c0_10] : memref<16x18x8xbf16, #tpu.memory_space<vmem>>, vector<16x18x8xbf16>
    %c0_11 = arith.constant 0 : index
    %c0_12 = arith.constant 0 : index
    %c0_13 = arith.constant 0 : index
    %22 = vector.load %arg5[%c0_11, %c0_12, %c0_13] : memref<3x8x16xbf16, #tpu.memory_space<vmem>>, vector<3x8x16xbf16>
    %23 = vector.extract_strided_slice %21 {offsets = [0, 0, 0], sizes = [16, 16, 8], strides = [1, 1, 1]} : vector<16x18x8xbf16> to vector<16x16x8xbf16>
    %24 = vector.shape_cast %23 : vector<16x16x8xbf16> to vector<256x8xbf16>
    %25 = vector.extract_strided_slice %22 {offsets = [0, 0, 0], sizes = [1, 8, 16], strides = [1, 1, 1]} : vector<3x8x16xbf16> to vector<1x8x16xbf16>
    %26 = vector.shape_cast %25 : vector<1x8x16xbf16> to vector<8x16xbf16>
    %cst_14 = arith.constant dense<0.000000e+00> : vector<256x16xf32>
    %27 = tpu.matmul %24, %26, %cst_14 {dimension_numbers = #tpu.dot_dimension_numbers<[1], [0], [0], [1], [0, 0, 1, 1], [], []>} : vector<256x8xbf16>, vector<8x16xbf16>, vector<256x16xf32> -> vector<256x16xf32>
    %28 = arith.addf %20, %27 : vector<256x16xf32>
    %29 = vector.extract_strided_slice %21 {offsets = [0, 1, 0], sizes = [16, 16, 8], strides = [1, 1, 1]} : vector<16x18x8xbf16> to vector<16x16x8xbf16>
    %30 = vector.shape_cast %29 : vector<16x16x8xbf16> to vector<256x8xbf16>
    %31 = vector.extract_strided_slice %22 {offsets = [1, 0, 0], sizes = [1, 8, 16], strides = [1, 1, 1]} : vector<3x8x16xbf16> to vector<1x8x16xbf16>
    %32 = vector.shape_cast %31 : vector<1x8x16xbf16> to vector<8x16xbf16>
    %cst_15 = arith.constant dense<0.000000e+00> : vector<256x16xf32>
    %33 = tpu.matmul %30, %32, %cst_15 {dimension_numbers = #tpu.dot_dimension_numbers<[1], [0], [0], [1], [0, 0, 1, 1], [], []>} : vector<256x8xbf16>, vector<8x16xbf16>, vector<256x16xf32> -> vector<256x16xf32>
    %34 = arith.addf %28, %33 : vector<256x16xf32>
    %35 = vector.extract_strided_slice %21 {offsets = [0, 2, 0], sizes = [16, 16, 8], strides = [1, 1, 1]} : vector<16x18x8xbf16> to vector<16x16x8xbf16>
    %36 = vector.shape_cast %35 : vector<16x16x8xbf16> to vector<256x8xbf16>
    %37 = vector.extract_strided_slice %22 {offsets = [2, 0, 0], sizes = [1, 8, 16], strides = [1, 1, 1]} : vector<3x8x16xbf16> to vector<1x8x16xbf16>
    %38 = vector.shape_cast %37 : vector<1x8x16xbf16> to vector<8x16xbf16>
    %cst_16 = arith.constant dense<0.000000e+00> : vector<256x16xf32>
    %39 = tpu.matmul %36, %38, %cst_16 {dimension_numbers = #tpu.dot_dimension_numbers<[1], [0], [0], [1], [0, 0, 1, 1], [], []>} : vector<256x8xbf16>, vector<8x16xbf16>, vector<256x16xf32> -> vector<256x16xf32>
    %40 = arith.addf %34, %39 : vector<256x16xf32>
    %c0_17 = arith.constant 0 : index
    %c0_18 = arith.constant 0 : index
    %c0_19 = arith.constant 0 : index
    %41 = vector.load %arg3[%c0_17, %c0_18, %c0_19] : memref<16x18x8xbf16, #tpu.memory_space<vmem>>, vector<16x18x8xbf16>
    %c0_20 = arith.constant 0 : index
    %c0_21 = arith.constant 0 : index
    %c0_22 = arith.constant 0 : index
    %42 = vector.load %arg6[%c0_20, %c0_21, %c0_22] : memref<3x8x16xbf16, #tpu.memory_space<vmem>>, vector<3x8x16xbf16>
    %43 = vector.extract_strided_slice %41 {offsets = [0, 0, 0], sizes = [16, 16, 8], strides = [1, 1, 1]} : vector<16x18x8xbf16> to vector<16x16x8xbf16>
    %44 = vector.shape_cast %43 : vector<16x16x8xbf16> to vector<256x8xbf16>
    %45 = vector.extract_strided_slice %42 {offsets = [0, 0, 0], sizes = [1, 8, 16], strides = [1, 1, 1]} : vector<3x8x16xbf16> to vector<1x8x16xbf16>
    %46 = vector.shape_cast %45 : vector<1x8x16xbf16> to vector<8x16xbf16>
    %cst_23 = arith.constant dense<0.000000e+00> : vector<256x16xf32>
    %47 = tpu.matmul %44, %46, %cst_23 {dimension_numbers = #tpu.dot_dimension_numbers<[1], [0], [0], [1], [0, 0, 1, 1], [], []>} : vector<256x8xbf16>, vector<8x16xbf16>, vector<256x16xf32> -> vector<256x16xf32>
    %48 = arith.addf %40, %47 : vector<256x16xf32>
    %49 = vector.extract_strided_slice %41 {offsets = [0, 1, 0], sizes = [16, 16, 8], strides = [1, 1, 1]} : vector<16x18x8xbf16> to vector<16x16x8xbf16>
    %50 = vector.shape_cast %49 : vector<16x16x8xbf16> to vector<256x8xbf16>
    %51 = vector.extract_strided_slice %42 {offsets = [1, 0, 0], sizes = [1, 8, 16], strides = [1, 1, 1]} : vector<3x8x16xbf16> to vector<1x8x16xbf16>
    %52 = vector.shape_cast %51 : vector<1x8x16xbf16> to vector<8x16xbf16>
    %cst_24 = arith.constant dense<0.000000e+00> : vector<256x16xf32>
    %53 = tpu.matmul %50, %52, %cst_24 {dimension_numbers = #tpu.dot_dimension_numbers<[1], [0], [0], [1], [0, 0, 1, 1], [], []>} : vector<256x8xbf16>, vector<8x16xbf16>, vector<256x16xf32> -> vector<256x16xf32>
    %54 = arith.addf %48, %53 : vector<256x16xf32>
    %55 = vector.extract_strided_slice %41 {offsets = [0, 2, 0], sizes = [16, 16, 8], strides = [1, 1, 1]} : vector<16x18x8xbf16> to vector<16x16x8xbf16>
    %56 = vector.shape_cast %55 : vector<16x16x8xbf16> to vector<256x8xbf16>
    %57 = vector.extract_strided_slice %42 {offsets = [2, 0, 0], sizes = [1, 8, 16], strides = [1, 1, 1]} : vector<3x8x16xbf16> to vector<1x8x16xbf16>
    %58 = vector.shape_cast %57 : vector<1x8x16xbf16> to vector<8x16xbf16>
    %cst_25 = arith.constant dense<0.000000e+00> : vector<256x16xf32>
    %59 = tpu.matmul %56, %58, %cst_25 {dimension_numbers = #tpu.dot_dimension_numbers<[1], [0], [0], [1], [0, 0, 1, 1], [], []>} : vector<256x8xbf16>, vector<8x16xbf16>, vector<256x16xf32> -> vector<256x16xf32>
    %60 = arith.addf %54, %59 : vector<256x16xf32>
    %c0_26 = arith.constant 0 : index
    %c0_27 = arith.constant 0 : index
    %61 = vector.load %arg7[%c0_26, %c0_27] : memref<1x16xf32, #tpu.memory_space<vmem>>, vector<1x16xf32>
    %62 = vector.broadcast %61 : vector<1x16xf32> to vector<256x16xf32>
    %63 = arith.addf %60, %62 : vector<256x16xf32>
    %c0_28 = arith.constant 0 : index
    %c0_29 = arith.constant 0 : index
    %64 = vector.load %arg8[%c0_28, %c0_29] : memref<256x16xf32, #tpu.memory_space<vmem>>, vector<256x16xf32>
    tpu.vector_store %arg8[%c0_28, %c0_29], %63 {strides = array<i32>} : memref<256x16xf32, #tpu.memory_space<vmem>>, vector<256x16xf32>,
    return
  }
  func.func @transform_0(%arg0: i32) -> (i32, i32, i32) {
    %c0_i32 = arith.constant 0 : i32
    %c0_i32_0 = arith.constant 0 : i32
    %c0_i32_1 = arith.constant 0 : i32
    return %arg0, %c0_i32, %c0_i32_0 : i32, i32, i32
  }
  func.func @transform_1(%arg0: i32) -> (i32, i32, i32) {
    %c0_i32 = arith.constant 0 : i32
    %c0_i32_0 = arith.constant 0 : i32
    %c0_i32_1 = arith.constant 0 : i32
    return %arg0, %c0_i32, %c0_i32_0 : i32, i32, i32
  }
  func.func @transform_2(%arg0: i32) -> (i32, i32, i32) {
    %c0_i32 = arith.constant 0 : i32
    %c0_i32_0 = arith.constant 0 : i32
    %c0_i32_1 = arith.constant 0 : i32
    return %arg0, %c0_i32, %c0_i32_0 : i32, i32, i32
  }
  func.func @transform_3(%arg0: i32) -> (i32, i32, i32) {
    %c0_i32 = arith.constant 0 : i32
    %c0_i32_0 = arith.constant 0 : i32
    %c0_i32_1 = arith.constant 0 : i32
    %c0_i32_2 = arith.constant 0 : i32
    return %c0_i32, %c0_i32_0, %c0_i32_1 : i32, i32, i32
  }
  func.func @transform_4(%arg0: i32) -> (i32, i32, i32) {
    %c0_i32 = arith.constant 0 : i32
    %c0_i32_0 = arith.constant 0 : i32
    %c0_i32_1 = arith.constant 0 : i32
    %c0_i32_2 = arith.constant 0 : i32
    return %c0_i32, %c0_i32_0, %c0_i32_1 : i32, i32, i32
  }
  func.func @transform_5(%arg0: i32) -> (i32, i32, i32) {
    %c0_i32 = arith.constant 0 : i32
    %c0_i32_0 = arith.constant 0 : i32
    %c0_i32_1 = arith.constant 0 : i32
    %c0_i32_2 = arith.constant 0 : i32
    return %c0_i32, %c0_i32_0, %c0_i32_1 : i32, i32, i32
  }
  func.func @transform_6(%arg0: i32) -> (i32, i32) {
    %c0_i32 = arith.constant 0 : i32
    %c0_i32_0 = arith.constant 0 : i32
    %c0_i32_1 = arith.constant 0 : i32
    return %c0_i32, %c0_i32_0 : i32, i32
  }
  func.func @transform_7(%arg0: i32) -> (i32, i32) {
    %c0_i32 = arith.constant 0 : i32
    %c0_i32_0 = arith.constant 0 : i32
    return %arg0, %c0_i32 : i32, i32
  }
}

</mosaic_0001>

<bundles_post_ra>
// kernel: tpu_custom_call.1
= control target key start
LH: loop header
LB: loop body
LE: loop exit
PB: predicated region body
PF: predicated region fallthrough
CT: control target
= control target key end

     0   :  { %s6141_s24 = smov 0   ;;  %s8235_s0 = inlined_call_operand.vmem [shape: bf16[32,18,8], index: 0, kind: input, shape index: {}]   ;;  %s8236_s1 = inlined_call_operand.vmem [shape: bf16[32,18,8], index: 1, kind: input, shape index: {}]   ;;  %s8237_s2 = inlined_call_operand.vmem [shape: bf16[32,18,8], index: 2, kind: input, shape index: {}]   ;;  %s8238_s3 = inlined_call_operand.vmem [shape: bf16[3,8,16], index: 3, kind: input, shape index: {}]   ;;  %s8239_s4 = inlined_call_operand.vmem [shape: bf16[3,8,16], index: 4, kind: input, shape index: {}]   ;;  %s8240_s5 = inlined_call_operand.vmem [shape: bf16[3,8,16], index: 5, kind: input, shape index: {}]   ;;  %s8241_s6 = inlined_call_operand.vmem [shape: f32[1,16], index: 6, kind: input, shape index: {}]   ;;  %s8242_s7 = inlined_call_operand.vmem [shape: f32[512,16], index: 7, kind: output, shape index: {}]  }
   0x1 LB: > { %s4845_s25 = sadd.s32 4294967295, %s6099_s24   ;;  %p4849_p0 = scmp.ge.s32.totalorder %s6099_s24, 1  ;;  %s6099_s24 = sphi %s6141_s24, %s17_s24  }
   0x2   : > { %p263_p1 = scmp.lt.s32.totalorder %s6099_s24, 3 }
   0x4   : > { %p264_p2 = pnand %p4849_p0, %p263_p1 }
   0x6   : > { %267 = sbr.rel (%p264_p2) target bundleno = 590 (0x24e), region = 48 }
   0xd   : > { %v385_v0 = vld [vmem:[%s8238_s3 + $0x4] sm:$0xf]  ;;  %vm871_vm0 = vcmask 1043456   ;;  %s4850_s30 = sshll.u32 %s4845_s25, 4  ;;  %v384_v4 = vld [vmem:[%s8238_s3] sm:$0xf] }
   0xe   : > { %v1800_v1 = vld [vmem:[%s8239_s4 + $0x4] sm:$0xf]  ;;  %5914 = vmatprep.subr.msk.bf16.mxu1 %vm871_vm0, %v385_v0  ;;  %v873_v2 = vsel %vm871_vm0, %v385_v0, 0  ;;  %p309_p3 = scmp.lt.s32.totalorder %s4850_s30, 31  ;;  %v1801_v5 = vld [vmem:[%s8239_s4 + $0x8] sm:$0xf] }
   0xf   : > { %5918 = vmatprep.subr.msk.bf16.mxu0 %vm871_vm0, %v1800_v1  ;;  %v6161_v3 = vsel %vm871_vm0, %v1800_v1, 0  ;;  %5351 = vmatpush3.bf16.msra.mxu1 %v873_v2  ;;  %vm387_vm1 = vsmask.f32 3328  ;;  %vm388_vm2 = vsmask.f32 7440  ;;  %vm822_vm3 = vcmask 64512  }
  0x10   : > { %8265 = vst [vmem:[#allocation2_spill] sm:$0xff] %v6161_v3  ;;  %5487 = vmatpush3.bf16.msra.mxu0 %v6161_v3  ;;  %s8356_s30 = smov (!%p309_p3, %s4850_s30), 31  ;;  %5915 = vmatprep.subr.msk.bf16.mxu1 %vm871_vm0, %v384_v4  ;;  %v6199_v17 = vsel %vm871_vm0, %v384_v4, 0  ;;  %vm6210_vm4 = vmor %vm387_vm1, %vm388_vm2  ;;  %v6215_v36 = vsel %vm871_vm0, %v1801_v5, 0  ;;  %v6225_v50 = vld [vmem:[%s8240_s5] sm:$0xf] }
  0x11   : > { %5920 = vmatprep.subr.msk.bf16.mxu0 %vm871_vm0, %v1801_v5  ;;  %s6172_s12 = smul.u32 12, %s8356_s30  ;;  %v6242_v1 = vsel %vm871_vm0, %v6225_v50, 0  ;;  %vm1344_vm5 = vcmask 1042432   ;;  %vm1345_vm6 = vcmask 1046532   ;;  %vm4732_vm8 = vcmask 130048  }
  0x12   : > { %vm6476_vm7 = vmor %vm1344_vm5, %vm1345_vm6 }
  0x13   : > { %s6178_s15 = scalar_lea.vmem %s8235_s0, %s6172_s12  ;;  %s6184_s18 = scalar_lea.vmem %s8236_s1, %s6172_s12 }
  0x14   : > { %v336_v6 = vld [vmem:[%s6178_s15] sm:$0xf]  ;;  %v337_v7 = vld [vmem:[%s6178_s15 + $0x4] sm:$0xf]  ;;  %v338_v8 = vld [vmem:[%s6178_s15 + $0x8] sm:$0x1]  ;;  %s6801_s10 = scalar_lea.vmem %s8237_s2, %s6172_s12 }
  0x15   : > { %v391_v9 = vshrl.u32 %v336_v6, 16  ;;  %v394_v10 = vshll.u32 %v336_v6, 16  ;;  %v400_v11 = vshll.u32 %v337_v7, 16  ;;  %v404_v12 = vshrl.u32 %v337_v7, 16  ;;  %v6190_v13 = vld [vmem:[%s6184_s18] sm:$0xf] }
  0x16   : > { %v410_v14 = vshll.u32 %v338_v8, 16  ;;  %v6193_v15 = vld [vmem:[%s6184_s18 + $0x4] sm:$0xf]  ;;  %v6196_v16 = vld [vmem:[%s6184_s18 + $0x8] sm:$0x1]  ;;  %v2127_v23 = vshrl.u32 %v6190_v13, 16 }
  0x17   : > { %v393_v18 = vrot.slane %v391_v9, 4  ;;  %v396_v19 = vrot.slane %v394_v10, 5  ;;  %v402_v20 = vrot.slane %v400_v11, 5  ;;  %v406_v21 = vrot.slane %v404_v12, 4  ;;  %v339_v30 = vld [vmem:[%s6178_s15 + $0xc] sm:$0xf] }
  0x18   : > { %v412_v22 = vrot.slane %v410_v14, 5  ;;  %v2130_v24 = vshll.u32 %v6190_v13, 16  ;;  %v2136_v25 = vshll.u32 %v6193_v15, 16  ;;  %v2140_v28 = vshrl.u32 %v6193_v15, 16  ;;  %v340_v31 = vld [vmem:[%s6178_s15 + $0x10] sm:$0xf] }
  0x19   : > { %v397_v26 = vor.u32 %v396_v19, %v393_v18  ;;  %v407_v27 = vor.u32 %v406_v21, %v402_v20  ;;  %v2146_v29 = vshll.u32 %v6196_v16, 16  ;;  %v2129_v33 = vrot.slane %v2127_v23, 4  ;;  %v341_v42 = vld [vmem:[%s6178_s15 + $0x14] sm:$0x1]  ;;  %v6228_v55 = vld [vmem:[%s6184_s18 + $0xc] sm:$0xf] }
  0x1a   : > { %v2132_v34 = vrot.slane %v2130_v24, 5  ;;  %v2138_v35 = vrot.slane %v2136_v25, 5  ;;  %v2142_v39 = vrot.slane %v2140_v28, 4  ;;  %v415_v43 = vshrl.u32 %v339_v30, 16  ;;  %v6231_v60 = vld [vmem:[%s6184_s18 + $0x10] sm:$0xf] }
  0x1b   : > { %v398_v37 = vrot.slane %v397_v26, 4  ;;  %v408_v38 = vrot.slane %v407_v27, 4  ;;  %v2148_v40 = vrot.slane %v2146_v29, 5  ;;  %v418_v44 = vshll.u32 %v339_v30, 16  ;;  %v6238_v0 = vld [vmem:[%s6184_s18 + $0x14] sm:$0x1] }
  0x1c   : > { %v2133_v41 = vor.u32 %v2132_v34, %v2129_v33  ;;  %v424_v45 = vshll.u32 %v340_v31, 16  ;;  %v2143_v48 = vor.u32 %v2142_v39, %v2138_v35  ;;  %v428_v49 = vshrl.u32 %v340_v31, 16  ;;  %v342_v11 = vld [vmem:[%s6178_s15 + $0x18] sm:$0xf]  ;;  %v344_v25 = vld [vmem:[%s6178_s15 + $0x20] sm:$0x1] }
  0x1d   : > { %v403_v46 = vsel %vm6210_vm4, %v398_v37, %v402_v20  ;;  %v413_v47 = vsel %vm6210_vm4, %v408_v38, %v412_v22  ;;  %v417_v53 = vrot.slane %v415_v43, 4  ;;  %v420_v54 = vrot.slane %v418_v44, 5  ;;  %v343_v20 = vld [vmem:[%s6178_s15 + $0x1c] sm:$0xf]  ;;  %v6262_v30 = vld [vmem:[%s6184_s18 + $0x18] sm:$0xf] }
  0x1e   : > { %v4858_v51 = vcombine.low %v403_v46, %v413_v47  ;;  %v2134_v52 = vrot.slane %v2133_v41, 4  ;;  %v2144_v56 = vrot.slane %v2143_v48, 4  ;;  %v426_v57 = vrot.slane %v424_v45, 5  ;;  %v386_v41 = vld [vmem:[%s8238_s3 + $0x8] sm:$0xf] }
  0x1f   : > { %v430_v58 = vrot.slane %v428_v49, 4  ;;  %v434_v59 = vshll.u32 %v341_v42, 16  ;;  %v2823_v62 = vrot.slane %v6196_v16, 5  ;;  %v421_v63 = vor.u32 %v420_v54, %v417_v53  ;;  %v6269_v45 = vld [vmem:[%s6184_s18 + $0x1c] sm:$0xf] }
  0x20   : > { %5352 = vmatprep.mubr.msk.bf16.mxu1 %vm822_vm3, %v4858_v51  ;;  %v2139_v61 = vsel %vm6210_vm4, %v2134_v52, %v2138_v35  ;;  %v2149_v2 = vsel %vm6210_vm4, %v2144_v56, %v2148_v40  ;;  %v2151_v6 = vshrl.u32 %v6228_v55, 16  ;;  %v2154_v9 = vshll.u32 %v6228_v55, 16  ;;  %v6274_v52 = vld [vmem:[%s6184_s18 + $0x20] sm:$0x1] }
  0x21   : > { %v431_v4 = vor.u32 %v430_v58, %v426_v57  ;;  %v436_v5 = vrot.slane %v434_v59, 5  ;;  %v5002_v7 = vcombine.low %v2139_v61, %v2149_v2  ;;  %v422_v8 = vrot.slane %v421_v63, 4  ;;  %v345_v58 = vld [vmem:[%s6178_s15 + $0x24] sm:$0xf]  ;;  %v7064_v3 = vld [vmem:[%s6801_s10 + $0xa0] sm:$0xf] }
  0x22   : > { %v2160_v10 = vshll.u32 %v6231_v60, 16  ;;  %v2153_v14 = vrot.slane %v2151_v6, 4  ;;  %v2164_v18 = vshrl.u32 %v6231_v60, 16  ;;  %v2170_v19 = vshll.u32 %v6238_v0, 16 }
  0x23   : > { %v432_v12 = vrot.slane %v431_v4, 4  ;;  %5488 = vmatprep.mubr.msk.bf16.mxu0 %vm822_vm3, %v5002_v7  ;;  %v427_v21 = vsel %vm6210_vm4, %v422_v8, %v426_v57  ;;  %v2156_v22 = vrot.slane %v2154_v9, 5  ;;  %v2827_v24 = vrot.slane %v6231_v60, 5  ;;  %v346_v7 = vld [vmem:[%s6178_s15 + $0x28] sm:$0xf] }
  0x24   : > { %v2162_v23 = vrot.slane %v2160_v10, 5  ;;  %v2166_v27 = vrot.slane %v2164_v18, 4  ;;  %v2172_v28 = vrot.slane %v2170_v19, 5  ;;  %v2830_v29 = vrot.slane %v6238_v0, 5  ;;  %v347_v19 = vld [vmem:[%s6178_s15 + $0x2c] sm:$0x1] }
  0x25   : > { %v437_v26 = vsel %vm6210_vm4, %v432_v12, %v436_v5  ;;  %v2157_v33 = vor.u32 %v2156_v22, %v2153_v14  ;;  %v439_v34 = vshrl.u32 %v342_v11, 16  ;;  %v442_v35 = vshll.u32 %v342_v11, 16 }
  0x26   : > { %v4859_v31 = vcombine.low %v427_v21, %v437_v26  ;;  %v2167_v37 = vor.u32 %v2166_v27, %v2162_v23  ;;  %v448_v38 = vshll.u32 %v343_v20, 16  ;;  %v452_v39 = vshrl.u32 %v343_v20, 16  ;;  %v6292_v21 = vld [vmem:[%s6184_s18 + $0x24] sm:$0xf] }
  0x27   : > { %v458_v40 = vshll.u32 %v344_v25, 16  ;;  %v2158_v42 = vrot.slane %v2157_v33, 4  ;;  %v441_v43 = vrot.slane %v439_v34, 4  ;;  %v444_v44 = vrot.slane %v442_v35, 5  ;;  %v6298_v34 = vld [vmem:[%s6184_s18 + $0x28] sm:$0xf] }
  0x28   : > { %5353 = vmatmul.mubr.msk.bf16.vlgmr.msra.gmra.mrb[0].mxu1 %vm822_vm3, %v4859_v31  ;;  %v2175_v46 = vshrl.u32 %v6262_v30, 16  ;;  %v2168_v47 = vrot.slane %v2167_v37, 4  ;;  %v450_v48 = vrot.slane %v448_v38, 5  ;;  %v454_v49 = vrot.slane %v452_v39, 4 }
  0x29   : > { %5385 = vmatpush3.bf16.msra.mxu1 %v6199_v17  ;;  %v460_v51 = vrot.slane %v458_v40, 5  ;;  %v2163_v53 = vsel %vm6210_vm4, %v2158_v42, %v2162_v23  ;;  %v445_v54 = vor.u32 %v444_v44, %v441_v43  ;;  %v2178_v57 = vshll.u32 %v6262_v30, 16  ;;  %v6307_v42 = vld [vmem:[%s6184_s18 + $0x2c] sm:$0x1]  ;;  %v6311_v44 = vld [vmem:[%s6178_s15 + $0x30] sm:$0xf] }
  0x2a   : > { %v2177_v56 = vrot.slane %v2175_v46, 4  ;;  %5916 = vmatprep.subr.msk.bf16.mxu1 %vm871_vm0, %v386_v41  ;;  %v2173_v17 = vsel %vm6210_vm4, %v2168_v47, %v2172_v28  ;;  %v455_v59 = vor.u32 %v454_v49, %v450_v48  ;;  %v2184_v61 = vshll.u32 %v6269_v45, 16 }
  0x2b   : > { %v2188_v63 = vshrl.u32 %v6269_v45, 16  ;;  %v5003_v2 = vcombine.low %v2163_v53, %v2173_v17  ;;  %v446_v4 = vrot.slane %v445_v54, 4  ;;  %v2180_v5 = vrot.slane %v2178_v57, 5 }
  0x2c   : > { %v2194_v6 = vshll.u32 %v6274_v52, 16  ;;  %v456_v8 = vrot.slane %v455_v59, 4  ;;  %v2186_v9 = vrot.slane %v2184_v61, 5  ;;  %v463_v11 = vshrl.u32 %v345_v58, 16 }
  0x2d   : > { %v2190_v10 = vrot.slane %v2188_v63, 4  ;;  %5489 = vmatmul.mubr.msk.bf16.vlgmr.msra.gmra.mrb[0].mxu0 %vm822_vm3, %v5003_v2  ;;  %v451_v12 = vsel %vm6210_vm4, %v446_v4, %v450_v48  ;;  %v2181_v14 = vor.u32 %v2180_v5, %v2177_v56  ;;  %v466_v20 = vshll.u32 %v345_v58, 16  ;;  %v6317_v56 = vld [vmem:[%s6178_s15 + $0x34] sm:$0xf]  ;;  %v350_v4 = vld [vmem:[%s6178_s15 + $0x38] sm:$0x1] }
  0x2e   : > { %v2196_v18 = vrot.slane %v2194_v6, 5  ;;  %5521 = vmatpush3.bf16.msra.mxu0 %v6215_v36  ;;  %v461_v22 = vsel %vm6210_vm4, %v456_v8, %v460_v51  ;;  %v465_v25 = vrot.slane %v463_v11, 4  ;;  %v472_v26 = vshll.u32 %v346_v7, 16 }
  0x2f   : > { %v2191_v23 = vor.u32 %v2190_v10, %v2186_v9  ;;  %v4860_v27 = vcombine.low %v451_v12, %v461_v22  ;;  %v2182_v28 = vrot.slane %v2181_v14, 4  ;;  %v468_v31 = vrot.slane %v466_v20, 5  ;;  %5921 = vmatprep.subr.msk.bf16.mxu0 %vm871_vm0, %v6225_v50  ;;  %v6329_v10 = vld [vmem:[%s6184_s18 + $0x30] sm:$0xf] }
  0x30   : > { %v476_v33 = vshrl.u32 %v346_v7, 16  ;;  %v474_v37 = vrot.slane %v472_v26, 5  ;;  %v482_v36 = vshll.u32 %v347_v19, 16  ;;  %v2199_v38 = vshrl.u32 %v6292_v21, 16  ;;  %v6335_v19 = vld [vmem:[%s6184_s18 + $0x34] sm:$0xf] }
  0x31   : > { %v2192_v35 = vrot.slane %v2191_v23, 4  ;;  %5356 = vmatprep.mubr.msk.bf16.mxu1 %vm822_vm3, %v4860_v27  ;;  %v2187_v39 = vsel %vm6210_vm4, %v2182_v28, %v2186_v9  ;;  %v469_v40 = vor.u32 %v468_v31, %v465_v25  ;;  %v2202_v43 = vshll.u32 %v6292_v21, 16  ;;  %v6340_v31 = vld [vmem:[%s6184_s18 + $0x38] sm:$0x1] }
  0x32   : > { %v478_v41 = vrot.slane %v476_v33, 4  ;;  %v484_v46 = vrot.slane %v482_v36, 5  ;;  %v2201_v47 = vrot.slane %v2199_v38, 4  ;;  %v2208_v48 = vshll.u32 %v6298_v34, 16 }
  0x33   : > { %v2197_v50 = vsel %vm6210_vm4, %v2192_v35, %v2196_v18  ;;  %v470_v51 = vrot.slane %v469_v40, 4  ;;  %v2204_v54 = vrot.slane %v2202_v43, 5  ;;  %v2212_v58 = vshrl.u32 %v6298_v34, 16 }
  0x34   : > { %v5004_v49 = vcombine.low %v2187_v39, %v2197_v50  ;;  %v479_v53 = vor.u32 %v478_v41, %v474_v37  ;;  %v2210_v57 = vrot.slane %v2208_v48, 5  ;;  %v2218_v17 = vshll.u32 %v6307_v42, 16  ;;  %v6348_v50 = vld [vmem:[%s6178_s15 + $0x3c] sm:$0xf] }
  0x35   : > { %v487_v59 = vshrl.u32 %v6311_v44, 16  ;;  %v475_v61 = vsel %vm6210_vm4, %v470_v51, %v474_v37  ;;  %v2205_v2 = vor.u32 %v2204_v54, %v2201_v47  ;;  %v490_v5 = vshll.u32 %v6311_v44, 16  ;;  %v6354_v51 = vld [vmem:[%s6178_s15 + $0x40] sm:$0xf] }
  0x36   : > { %5492 = vmatprep.mubr.msk.bf16.mxu0 %vm822_vm3, %v5004_v49  ;;  %v480_v63 = vrot.slane %v479_v53, 4  ;;  %v2214_v6 = vrot.slane %v2212_v58, 4  ;;  %v2220_v7 = vrot.slane %v2218_v17, 5  ;;  %v496_v9 = vshll.u32 %v6317_v56, 16 }
  0x37   : > { %v489_v8 = vrot.slane %v487_v59, 4  ;;  %v2206_v12 = vrot.slane %v2205_v2, 4  ;;  %v492_v14 = vrot.slane %v490_v5, 5  ;;  %v500_v18 = vshrl.u32 %v6317_v56, 16 }
  0x38   : > { %v485_v11 = vsel %vm6210_vm4, %v480_v63, %v484_v46  ;;  %v2215_v22 = vor.u32 %v2214_v6, %v2210_v57  ;;  %v498_v23 = vrot.slane %v496_v9, 5  ;;  %v506_v25 = vshll.u32 %v350_v4, 16 }
  0x39   : > { %v4861_v20 = vcombine.low %v475_v61, %v485_v11  ;;  %v2211_v26 = vsel %vm6210_vm4, %v2206_v12, %v2210_v57  ;;  %v493_v27 = vor.u32 %v492_v14, %v489_v8  ;;  %v502_v28 = vrot.slane %v500_v18, 4  ;;  %v353_v61 = vld [vmem:[%s6178_s15 + $0x44] sm:$0x1]  ;;  %v6367_v8 = vld [vmem:[%s6184_s18 + $0x3c] sm:$0xf] }
  0x3a   : > { %v2223_v33 = vshrl.u32 %v6329_v10, 16  ;;  %v2216_v35 = vrot.slane %v2215_v22, 4  ;;  %v508_v37 = vrot.slane %v506_v25, 5  ;;  %v2226_v36 = vshll.u32 %v6329_v10, 16  ;;  %v6370_v18 = vld [vmem:[%s6184_s18 + $0x40] sm:$0xf] }
  0x3b   : > { %5357 = vmatmul.mubr.msk.bf16.gmra.mrb[4].mxu1 %vm822_vm3, %v4861_v20  ;;  %v2232_v38 = vshll.u32 %v6335_v19, 16  ;;  %v494_v39 = vrot.slane %v493_v27, 4  ;;  %v503_v40 = vor.u32 %v502_v28, %v498_v23  ;;  %v2236_v43 = vshrl.u32 %v6335_v19, 16  ;;  %v6376_v28 = vld [vmem:[%s6184_s18 + $0x44] sm:$0x1] }
  0x3c   : > { %v2225_v41 = vrot.slane %v2223_v33, 4  ;;  %v2221_v46 = vsel %vm6210_vm4, %v2216_v35, %v2220_v7  ;;  %v2228_v47 = vrot.slane %v2226_v36, 5  ;;  %v2242_v49 = vshll.u32 %v6340_v31, 16 }
  0x3d   : > { %v2234_v48 = vrot.slane %v2232_v38, 5  ;;  %v5005_v53 = vcombine.low %v2211_v26, %v2221_v46  ;;  %v499_v54 = vsel %vm6210_vm4, %v494_v39, %v498_v23  ;;  %v504_v57 = vrot.slane %v503_v40, 4  ;;  %v6384_v40 = vld [vmem:[%s6178_s15 + $0x48] sm:$0xf] }
  0x3e   : > { %v2238_v58 = vrot.slane %v2236_v43, 4  ;;  %v2229_v17 = vor.u32 %v2228_v47, %v2225_v41  ;;  %v2244_v59 = vrot.slane %v2242_v49, 5  ;;  %v511_v63 = vshrl.u32 %v6348_v50, 16 }
  0x3f   : > { %v514_v2 = vshll.u32 %v6348_v50, 16  ;;  %5493 = vmatmul.mubr.msk.bf16.gmra.mrb[4].mxu0 %vm822_vm3, %v5005_v53  ;;  %v509_v4 = vsel %vm6210_vm4, %v504_v57, %v508_v37  ;;  %v520_v6 = vshll.u32 %v6354_v51, 16  ;;  %v524_v7 = vshrl.u32 %v6354_v51, 16 }
  0x40   : > { %v2239_v5 = vor.u32 %v2238_v58, %v2234_v48  ;;  %v4862_v9 = vcombine.low %v499_v54, %v509_v4  ;;  %v2230_v11 = vrot.slane %v2229_v17, 4  ;;  %v513_v12 = vrot.slane %v511_v63, 4 }
  0x41   : > { %v516_v14 = vrot.slane %v514_v2, 5  ;;  %v522_v22 = vrot.slane %v520_v6, 5  ;;  %v526_v23 = vrot.slane %v524_v7, 4  ;;  %v530_v25 = vshll.u32 %v353_v61, 16  ;;  %v6401_v7 = vld [vmem:[%s6184_s18 + $0x48] sm:$0xf] }
  0x42   : > { %v2240_v20 = vrot.slane %v2239_v5, 4  ;;  %5360 = vmatprep.mubr.msk.bf16.mxu1 %vm822_vm3, %v4862_v9  ;;  %v2235_v26 = vsel %vm6210_vm4, %v2230_v11, %v2234_v48  ;;  %v2247_v33 = vshrl.u32 %v6367_v8, 16  ;;  %v2250_v35 = vshll.u32 %v6367_v8, 16  ;;  %v6387_v48 = vld [vmem:[%s6178_s15 + $0x4c] sm:$0xf] }
  0x43   : > { %v517_v27 = vor.u32 %v516_v14, %v513_v12  ;;  %v527_v36 = vor.u32 %v526_v23, %v522_v22  ;;  %v532_v38 = vrot.slane %v530_v25, 5  ;;  %v2256_v39 = vshll.u32 %v6370_v18, 16 }
  0x44   : > { %v2245_v37 = vsel %vm6210_vm4, %v2240_v20, %v2244_v59  ;;  %v2249_v46 = vrot.slane %v2247_v33, 4  ;;  %v2252_v47 = vrot.slane %v2250_v35, 5  ;;  %v2260_v54 = vshrl.u32 %v6370_v18, 16  ;;  %v356_v59 = vld [vmem:[%s6178_s15 + $0x50] sm:$0x1] }
  0x45   : > { %v5006_v41 = vcombine.low %v2235_v26, %v2245_v37  ;;  %v518_v43 = vrot.slane %v517_v27, 4  ;;  %v528_v49 = vrot.slane %v527_v36, 4  ;;  %v2258_v53 = vrot.slane %v2256_v39, 5  ;;  %v6404_v20 = vld [vmem:[%s6184_s18 + $0x4c] sm:$0xf] }
  0x46   : > { %v2266_v57 = vshll.u32 %v6376_v28, 16  ;;  %v2253_v17 = vor.u32 %v2252_v47, %v2249_v46  ;;  %v535_v61 = vshrl.u32 %v6384_v40, 16  ;;  %v538_v63 = vshll.u32 %v6384_v40, 16  ;;  %v6411_v35 = vld [vmem:[%s6184_s18 + $0x50] sm:$0x1] }
  0x47   : > { %5496 = vmatprep.mubr.msk.bf16.mxu0 %vm822_vm3, %v5006_v41  ;;  %v523_v58 = vsel %vm6210_vm4, %v518_v43, %v522_v22  ;;  %v533_v2 = vsel %vm6210_vm4, %v528_v49, %v532_v38  ;;  %v2262_v4 = vrot.slane %v2260_v54, 4  ;;  %v544_v6 = vshll.u32 %v6387_v48, 16 }
  0x48   : > { %v2268_v5 = vrot.slane %v2266_v57, 5  ;;  %v4863_v9 = vcombine.low %v523_v58, %v533_v2  ;;  %v2254_v11 = vrot.slane %v2253_v17, 4  ;;  %v537_v12 = vrot.slane %v535_v61, 4  ;;  %v6424_v61 = vld [vmem:[%s6178_s15 + $0x58] sm:$0xf] }
  0x49   : > { %v540_v14 = vrot.slane %v538_v63, 5  ;;  %v2263_v22 = vor.u32 %v2262_v4, %v2258_v53  ;;  %v546_v23 = vrot.slane %v544_v6, 5  ;;  %v548_v25 = vshrl.u32 %v6387_v48, 16 }
  0x4a   : > { %v554_v26 = vshll.u32 %v356_v59, 16  ;;  %5361 = vmatmul.mubr.msk.bf16.gmra.mrb[8].mxu1 %vm822_vm3, %v4863_v9  ;;  %v2259_v27 = vsel %vm6210_vm4, %v2254_v11, %v2258_v53  ;;  %v2271_v37 = vshrl.u32 %v6401_v7, 16  ;;  %v2274_v36 = vshll.u32 %v6401_v7, 16  ;;  %v6418_v53 = vld [vmem:[%s6178_s15 + $0x54] sm:$0xf] }
  0x4b   : > { %v541_v33 = vor.u32 %v540_v14, %v537_v12  ;;  %v2264_v38 = vrot.slane %v2263_v22, 4  ;;  %v550_v39 = vrot.slane %v548_v25, 4  ;;  %v2280_v43 = vshll.u32 %v6404_v20, 16  ;;  %v359_v9 = vld [vmem:[%s6178_s15 + $0x5c] sm:$0x1] }
  0x4c   : > { %v556_v41 = vrot.slane %v554_v26, 5  ;;  %v2273_v47 = vrot.slane %v2271_v37, 4  ;;  %v2276_v49 = vrot.slane %v2274_v36, 5  ;;  %v2284_v54 = vshrl.u32 %v6404_v20, 16 }
  0x4d   : > { %v542_v46 = vrot.slane %v541_v33, 4  ;;  %v2269_v57 = vsel %vm6210_vm4, %v2264_v38, %v2268_v5  ;;  %v551_v58 = vor.u32 %v550_v39, %v546_v23  ;;  %v2282_v17 = vrot.slane %v2280_v43, 5  ;;  %v6440_v39 = vld [vmem:[%s6184_s18 + $0x58] sm:$0xf] }
  0x4e   : > { %v2290_v59 = vshll.u32 %v6411_v35, 16  ;;  %v5007_v63 = vcombine.low %v2259_v27, %v2269_v57  ;;  %v2277_v4 = vor.u32 %v2276_v49, %v2273_v47  ;;  %v2286_v6 = vrot.slane %v2284_v54, 4 }
  0x4f   : > { %v547_v2 = vsel %vm6210_vm4, %v542_v46, %v546_v23  ;;  %v552_v11 = vrot.slane %v551_v58, 4  ;;  %v559_v14 = vshrl.u32 %v6418_v53, 16  ;;  %v562_v5 = vshll.u32 %v6418_v53, 16  ;;  %v6435_v23 = vld [vmem:[%s6184_s18 + $0x54] sm:$0xf] }
  0x50   : > { %v2292_v12 = vrot.slane %v2290_v59, 5  ;;  %5497 = vmatmul.mubr.msk.bf16.gmra.mrb[8].mxu0 %vm822_vm3, %v5007_v63  ;;  %v2278_v22 = vrot.slane %v2277_v4, 4  ;;  %v2287_v25 = vor.u32 %v2286_v6, %v2282_v17  ;;  %v568_v26 = vshll.u32 %v6424_v61, 16  ;;  %v6445_v59 = vld [vmem:[%s6184_s18 + $0x5c] sm:$0x1] }
  0x51   : > { %v572_v27 = vshrl.u32 %v6424_v61, 16  ;;  %v557_v33 = vsel %vm6210_vm4, %v552_v11, %v556_v41  ;;  %v561_v37 = vrot.slane %v559_v14, 4  ;;  %v564_v36 = vrot.slane %v562_v5, 5  ;;  %v6455_v6 = vld [vmem:[%s6178_s15 + $0x60] sm:$0xf] }
  0x52   : > { %v578_v38 = vshll.u32 %v359_v9, 16  ;;  %v4864_v43 = vcombine.low %v547_v2, %v557_v33  ;;  %v2283_v46 = vsel %vm6210_vm4, %v2278_v22, %v2282_v17  ;;  %v2288_v47 = vrot.slane %v2287_v25, 4  ;;  %v6458_v22 = vld [vmem:[%s6178_s15 + $0x64] sm:$0xf] }
  0x53   : > { %v570_v49 = vrot.slane %v568_v26, 5  ;;  %v565_v54 = vor.u32 %v564_v36, %v561_v37  ;;  %v574_v57 = vrot.slane %v572_v27, 4  ;;  %v2295_v41 = vshrl.u32 %v6435_v23, 16 }
  0x54   : > { %v580_v58 = vrot.slane %v578_v38, 5  ;;  %5364 = vmatprep.mubr.msk.bf16.mxu1 %vm822_vm3, %v4864_v43  ;;  %v2293_v63 = vsel %vm6210_vm4, %v2288_v47, %v2292_v12  ;;  %v2298_v2 = vshll.u32 %v6435_v23, 16  ;;  %v2304_v4 = vshll.u32 %v6440_v39, 16 }
  0x55   : > { %v2308_v17 = vshrl.u32 %v6440_v39, 16  ;;  %v5008_v9 = vcombine.low %v2283_v46, %v2293_v63  ;;  %v566_v11 = vrot.slane %v565_v54, 4  ;;  %v575_v14 = vor.u32 %v574_v57, %v570_v49  ;;  %v362_v54 = vld [vmem:[%s6178_s15 + $0x68] sm:$0x1] }
  0x56   : > { %v2297_v5 = vrot.slane %v2295_v41, 4  ;;  %v2300_v25 = vrot.slane %v2298_v2, 5  ;;  %v2306_v26 = vrot.slane %v2304_v4, 5  ;;  %v2314_v12 = vshll.u32 %v6445_v59, 16 }
  0x57   : > { %v2310_v27 = vrot.slane %v2308_v17, 4  ;;  %5500 = vmatprep.mubr.msk.bf16.mxu0 %vm822_vm3, %v5008_v9  ;;  %v571_v33 = vsel %vm6210_vm4, %v566_v11, %v570_v49  ;;  %v576_v37 = vrot.slane %v575_v14, 4  ;;  %v583_v36 = vshrl.u32 %v6455_v6, 16  ;;  %v6472_v49 = vld [vmem:[%s6178_s15 + $0x6c] sm:$0xf] }
  0x58   : > { %v586_v38 = vshll.u32 %v6455_v6, 16  ;;  %v2301_v43 = vor.u32 %v2300_v25, %v2297_v5  ;;  %v2316_v47 = vrot.slane %v2314_v12, 5  ;;  %v592_v57 = vshll.u32 %v6458_v22, 16 }
  0x59   : > { %v2311_v46 = vor.u32 %v2310_v27, %v2306_v26  ;;  %v581_v41 = vsel %vm6210_vm4, %v576_v37, %v580_v58  ;;  %v585_v63 = vrot.slane %v583_v36, 4  ;;  %v596_v4 = vshrl.u32 %v6458_v22, 16 }
  0x5a   : > { %v588_v2 = vrot.slane %v586_v38, 5  ;;  %v4865_v17 = vcombine.low %v571_v33, %v581_v41  ;;  %v2302_v9 = vrot.slane %v2301_v43, 4  ;;  %v594_v14 = vrot.slane %v592_v57, 5  ;;  %v6488_v38 = vld [vmem:[%s6178_s15 + $0x70] sm:$0xf] }
  0x5b   : > { %v2312_v11 = vrot.slane %v2311_v46, 4  ;;  %v598_v25 = vrot.slane %v596_v4, 4  ;;  %v602_v27 = vshll.u32 %v362_v54, 16  ;;  %v5034_v58 = vrot.slane %v6190_v13, 9  ;;  %v365_v13 = vld [vmem:[%s6178_s15 + $0x74] sm:$0x1] }
  0x5c   : > { %v589_v5 = vor.u32 %v588_v2, %v585_v63  ;;  %5365 = vmatmul.mubr.msk.bf16.gmra.mrb[12].mxu1 %vm822_vm3, %v4865_v17  ;;  %v2307_v33 = vsel %vm6210_vm4, %v2302_v9, %v2306_v26  ;;  %v2820_v36 = vrot.slane %v6193_v15, 5  ;;  %v607_v43 = vshrl.u32 %v6472_v49, 16 }
  0x5d   : > { %v2317_v37 = vsel %vm6210_vm4, %v2312_v11, %v2316_v47  ;;  %v599_v57 = vor.u32 %v598_v25, %v594_v14  ;;  %v604_v41 = vrot.slane %v602_v27, 5  ;;  %v610_v47 = vshll.u32 %v6472_v49, 16 }
  0x5e   : > { %v5009_v46 = vcombine.low %v2307_v33, %v2317_v37  ;;  %v590_v54 = vrot.slane %v589_v5, 4  ;;  %v2821_v63 = vsel %vm6476_vm7, %v5034_v58, %v2820_v36  ;;  %v2822_v2 = vrot.slane %v2820_v36, 4  ;;  %v6506_v58 = vld [vmem:[%s6178_s15 + $0x78] sm:$0xf] }
  0x5f   : > { %v609_v26 = vrot.slane %v607_v43, 4  ;;  %v600_v4 = vrot.slane %v599_v57, 4  ;;  %v616_v17 = vshll.u32 %v6488_v38, 16  ;;  %v620_v9 = vshrl.u32 %v6488_v38, 16  ;;  %v6511_v43 = vld [vmem:[%s6178_s15 + $0x7c] sm:$0xf] }
  0x60   : > { %5501 = vmatmul.mubr.msk.bf16.gmra.mrb[12].mxu0 %vm822_vm3, %v5009_v46  ;;  %v595_v15 = vsel %vm6210_vm4, %v590_v54, %v594_v14  ;;  %v2824_v11 = vsel %vm6476_vm7, %v2822_v2, %v2823_v62  ;;  %v612_v5 = vrot.slane %v610_v47, 5  ;;  %v626_v25 = vshll.u32 %v365_v13, 16  ;;  %v368_v46 = vld [vmem:[%s6178_s15 + $0x80] sm:$0x1] }
  0x61   : > { %v5035_v27 = vrot.slane %v6228_v55, 9  ;;  %v605_v33 = vsel %vm6210_vm4, %v600_v4, %v604_v41  ;;  %v5050_v14 = vcombine.low %v2821_v63, %v2824_v11  ;;  %v618_v37 = vrot.slane %v616_v17, 5 }
  0x62   : > { %v622_v36 = vrot.slane %v620_v9, 4  ;;  %v4866_v54 = vcombine.low %v595_v15, %v605_v33  ;;  %v613_v16 = vor.u32 %v612_v5, %v609_v26  ;;  %v628_v57 = vrot.slane %v626_v25, 5  ;;  %v6536_v33 = vld [vmem:[%s6178_s15 + $0x88] sm:$0xf] }
  0x63   : > { %v2828_v62 = vsel %vm6476_vm7, %v5035_v27, %v2827_v24  ;;  %5522 = vmatprep.mubr.msk.bf16.mxu0 %vm822_vm3, %v5050_v14  ;;  %v2829_v41 = vrot.slane %v2827_v24, 4  ;;  %v631_v13 = vshrl.u32 %v6506_v58, 16  ;;  %v634_v63 = vshll.u32 %v6506_v58, 16  ;;  %v6533_v27 = vld [vmem:[%s6178_s15 + $0x84] sm:$0xf] }
  0x64   : > { %v623_v55 = vor.u32 %v622_v36, %v618_v37  ;;  %5368 = vmatprep.mubr.msk.bf16.mxu1 %vm822_vm3, %v4866_v54  ;;  %v614_v2 = vrot.slane %v613_v16, 4  ;;  %v640_v26 = vshll.u32 %v6511_v43, 16  ;;  %v644_v47 = vshrl.u32 %v6511_v43, 16 }
  0x65   : > { %v650_v15 = vshll.u32 %v368_v46, 16  ;;  %v2831_v60 = vsel %vm6476_vm7, %v2829_v41, %v2830_v29  ;;  %v633_v24 = vrot.slane %v631_v13, 4  ;;  %v636_v17 = vrot.slane %v634_v63, 5  ;;  %v6544_v46 = vld [vmem:[%s8240_s5 + $0x4] sm:$0xf] }
  0x66   : > { %v624_v4 = vrot.slane %v623_v55, 4  ;;  %v619_v9 = vsel %vm6210_vm4, %v614_v2, %v618_v37  ;;  %v5051_v11 = vcombine.low %v2828_v62, %v2831_v60  ;;  %v642_v5 = vrot.slane %v640_v26, 5  ;;  %v371_v55 = vld [vmem:[%s6178_s15 + $0x8c] sm:$0x1] }
  0x67   : > { %v646_v25 = vrot.slane %v644_v47, 4  ;;  %v637_v0 = vor.u32 %v636_v17, %v633_v24  ;;  %v652_v36 = vrot.slane %v650_v15, 5  ;;  %v5036_v29 = vrot.slane %v6262_v30, 9 }
  0x68   : > { %v629_v14 = vsel %vm6210_vm4, %v624_v4, %v628_v57  ;;  %5523 = vmatmul.mubr.msk.bf16.vlgmr.msra.gmra.mrb[0].mxu0 %vm822_vm3, %v5051_v11  ;;  %v2834_v16 = vrot.slane %v6269_v45, 5  ;;  %v2837_v62 = vrot.slane %v6274_v52, 5  ;;  %v655_v41 = vshrl.u32 %v6533_v27, 16  ;;  %v6570_v11 = vld [vmem:[%s6178_s15 + $0x94] sm:$0xf] }
  0x69   : > { %v4867_v37 = vcombine.low %v619_v9, %v629_v14  ;;  %v647_v54 = vor.u32 %v646_v25, %v642_v5  ;;  %5555 = vmatpush3.bf16.msra.mxu0 %v6242_v1  ;;  %v638_v57 = vrot.slane %v637_v0, 4  ;;  %v658_v30 = vshll.u32 %v6533_v27, 16  ;;  %v6567_v9 = vld [vmem:[%s6178_s15 + $0x90] sm:$0xf] }
  0x6a   : > { %v664_v13 = vshll.u32 %v6536_v33, 16  ;;  %v2835_v45 = vsel %vm6476_vm7, %v5036_v29, %v2834_v16  ;;  %v2836_v2 = vrot.slane %v2834_v16, 4  ;;  %v668_v52 = vshrl.u32 %v6536_v33, 16  ;;  %5922 = vmatprep.subr.msk.bf16.mxu0 %vm871_vm0, %v6544_v46 }
  0x6b   : > { %5369 = vmatmul.mubr.msk.bf16.gmra.mrb[16].mxu1 %vm822_vm3, %v4867_v37  ;;  %v648_v63 = vrot.slane %v647_v54, 4  ;;  %v643_v1 = vsel %vm6210_vm4, %v638_v57, %v642_v5  ;;  %v657_v26 = vrot.slane %v655_v41, 4  ;;  %v660_v47 = vrot.slane %v658_v30, 5 }
  0x6c   : > { %v666_v15 = vrot.slane %v664_v13, 5  ;;  %v2838_v60 = vsel %vm6476_vm7, %v2836_v2, %v2837_v62  ;;  %v670_v24 = vrot.slane %v668_v52, 4  ;;  %v674_v17 = vshll.u32 %v371_v55, 16  ;;  %v6578_v62 = vld [vmem:[%s6178_s15 + $0x98] sm:$0x1] }
  0x6d   : > { %v653_v4 = vsel %vm6210_vm4, %v648_v63, %v652_v36  ;;  %v5052_v14 = vcombine.low %v2835_v45, %v2838_v60  ;;  %v661_v0 = vor.u32 %v660_v47, %v657_v26  ;;  %v5037_v5 = vrot.slane %v6292_v21, 9  ;;  %v6597_v60 = vld [vmem:[%s6178_s15 + $0xa0] sm:$0xf] }
  0x6e   : > { %v4868_v25 = vcombine.low %v643_v1, %v653_v4  ;;  %v671_v29 = vor.u32 %v670_v24, %v666_v15  ;;  %v676_v37 = vrot.slane %v674_v17, 5  ;;  %v2841_v54 = vrot.slane %v6298_v34, 5  ;;  %v6594_v4 = vld [vmem:[%s6178_s15 + $0x9c] sm:$0xf] }
  0x6f   : > { %v2844_v36 = vrot.slane %v6307_v42, 5  ;;  %5526 = vmatprep.mubr.msk.bf16.mxu0 %vm822_vm3, %v5052_v14  ;;  %v662_v16 = vrot.slane %v661_v0, 4  ;;  %v679_v57 = vshrl.u32 %v6567_v9, 16  ;;  %v682_v55 = vshll.u32 %v6567_v9, 16 }
  0x70   : > { %5372 = vmatprep.mubr.msk.bf16.mxu1 %vm822_vm3, %v4868_v25  ;;  %v688_v21 = vshll.u32 %v6570_v11, 16  ;;  %v672_v41 = vrot.slane %v671_v29, 4  ;;  %v2842_v34 = vsel %vm6476_vm7, %v5037_v5, %v2841_v54  ;;  %v2843_v42 = vrot.slane %v2841_v54, 4  ;;  %v377_v54 = vld [vmem:[%s6178_s15 + $0xa4] sm:$0x1] }
  0x71   : > { %v692_v30 = vshrl.u32 %v6570_v11, 16  ;;  %v667_v13 = vsel %vm6210_vm4, %v662_v16, %v666_v15  ;;  %v681_v63 = vrot.slane %v679_v57, 4  ;;  %v684_v45 = vrot.slane %v682_v55, 5 }
  0x72   : > { %v690_v2 = vrot.slane %v688_v21, 5  ;;  %v677_v52 = vsel %vm6210_vm4, %v672_v41, %v676_v37  ;;  %v2845_v1 = vsel %vm6476_vm7, %v2843_v42, %v2844_v36  ;;  %v698_v47 = vshll.u32 %v6578_v62, 16 }
  0x73   : > { %v694_v26 = vrot.slane %v692_v30, 4  ;;  %v4869_v24 = vcombine.low %v667_v13, %v677_v52  ;;  %v5053_v17 = vcombine.low %v2842_v34, %v2845_v1  ;;  %v685_v15 = vor.u32 %v684_v45, %v681_v63  ;;  %v6618_v52 = vld [vmem:[%s6178_s15 + $0xa8] sm:$0xf]  ;;  %v6621_v1 = vld [vmem:[%s6178_s15 + $0xac] sm:$0xf] }
  0x74   : > { %v5038_v25 = vrot.slane %v6329_v10, 9  ;;  %v700_v0 = vrot.slane %v698_v47, 5  ;;  %v2848_v5 = vrot.slane %v6335_v19, 5  ;;  %v2851_v29 = vrot.slane %v6340_v31, 5  ;;  %8270 = vst [vmem:[#allocation3_spill] sm:$0xff] %v6618_v52 }
  0x75   : > { %v695_v14 = vor.u32 %v694_v26, %v690_v2  ;;  %5373 = vmatmul.mubr.msk.bf16.gmra.mrb[20].mxu1 %vm822_vm3, %v4869_v24  ;;  %5527 = vmatmul.mubr.msk.bf16.gmra.mrb[4].mxu0 %vm822_vm3, %v5053_v17  ;;  %v686_v37 = vrot.slane %v685_v15, 4  ;;  %v703_v36 = vshrl.u32 %v6594_v4, 16  ;;  %v706_v16 = vshll.u32 %v6594_v4, 16 }
  0x76   : > { %v712_v10 = vshll.u32 %v6597_v60, 16  ;;  %v2849_v19 = vsel %vm6476_vm7, %v5038_v25, %v2848_v5  ;;  %v2850_v55 = vrot.slane %v2848_v5, 4  ;;  %v716_v31 = vshrl.u32 %v6597_v60, 16  ;;  %v6629_v5 = vld [vmem:[%s6178_s15 + $0xb0] sm:$0x1] }
  0x77   : > { %v696_v57 = vrot.slane %v695_v14, 4  ;;  %v691_v21 = vsel %vm6210_vm4, %v686_v37, %v690_v2  ;;  %v705_v41 = vrot.slane %v703_v36, 4  ;;  %v708_v34 = vrot.slane %v706_v16, 5  ;;  %8271 = vst [vmem:[#allocation4_spill] sm:$0xff] %v6629_v5 }
  0x78   : > { %v714_v42 = vrot.slane %v712_v10, 5  ;;  %v2852_v13 = vsel %vm6476_vm7, %v2850_v55, %v2851_v29  ;;  %v718_v63 = vrot.slane %v716_v31, 4  ;;  %v722_v45 = vshll.u32 %v377_v54, 16 }
  0x79   : > { %v701_v30 = vsel %vm6210_vm4, %v696_v57, %v700_v0  ;;  %v5054_v47 = vcombine.low %v2849_v19, %v2852_v13  ;;  %v709_v24 = vor.u32 %v708_v34, %v705_v41  ;;  %v5039_v2 = vrot.slane %v6367_v8, 9  ;;  %v6645_v34 = vld [vmem:[%s6178_s15 + $0xb4] sm:$0xf] }
  0x7a   : > { %v4870_v26 = vcombine.low %v691_v21, %v701_v30  ;;  %v719_v17 = vor.u32 %v718_v63, %v714_v42  ;;  %v724_v15 = vrot.slane %v722_v45, 5  ;;  %v2855_v25 = vrot.slane %v6370_v18, 5  ;;  %8272 = vst [vmem:[#allocation5_spill] sm:$0xff] %v6645_v34  ;;  %v6648_v30 = vld [vmem:[%s6178_s15 + $0xb8] sm:$0xf] }
  0x7b   : > { %v2858_v14 = vrot.slane %v6376_v28, 5  ;;  %5530 = vmatprep.mubr.msk.bf16.mxu0 %vm822_vm3, %v5054_v47  ;;  %v710_v0 = vrot.slane %v709_v24, 4  ;;  %v727_v29 = vshrl.u32 %v6618_v52, 16  ;;  %v730_v37 = vshll.u32 %v6618_v52, 16  ;;  %8273 = vst [vmem:[#allocation6_spill] sm:$0xff] %v6648_v30 }
  0x7c   : > { %5376 = vmatprep.mubr.msk.bf16.mxu1 %vm822_vm3, %v4870_v26  ;;  %v736_v8 = vshll.u32 %v6621_v1, 16  ;;  %v720_v54 = vrot.slane %v719_v17, 4  ;;  %v2856_v18 = vsel %vm6476_vm7, %v5039_v2, %v2855_v25  ;;  %v2857_v28 = vrot.slane %v2855_v25, 4 }
  0x7d   : > { %v740_v36 = vshrl.u32 %v6621_v1, 16  ;;  %v715_v16 = vsel %vm6210_vm4, %v710_v0, %v714_v42  ;;  %v729_v10 = vrot.slane %v727_v29, 4  ;;  %v732_v57 = vrot.slane %v730_v37, 5 }
  0x7e   : > { %v738_v19 = vrot.slane %v736_v8, 5  ;;  %v725_v55 = vsel %vm6210_vm4, %v720_v54, %v724_v15  ;;  %v2859_v31 = vsel %vm6476_vm7, %v2857_v28, %v2858_v14  ;;  %v746_v41 = vshll.u32 %v6629_v5, 16  ;;  %v6656_v15 = vld [vmem:[%s6178_s15 + $0xbc] sm:$0x1]  ;;  %v1775_v28 = vld [vmem:[%s6184_s18 + $0x60] sm:$0xf] }
  0x7f   : > { %v742_v21 = vrot.slane %v740_v36, 4  ;;  %v4871_v13 = vcombine.low %v715_v16, %v725_v55  ;;  %v5055_v63 = vcombine.low %v2856_v18, %v2859_v31  ;;  %v733_v42 = vor.u32 %v732_v57, %v729_v10  ;;  %8274 = vst [vmem:[#allocation7_spill] sm:$0xff] %v6656_v15  ;;  %v1776_v55 = vld [vmem:[%s6184_s18 + $0x64] sm:$0xf]  ;;  %v1777_v31 = vld [vmem:[%s6184_s18 + $0x68] sm:$0x1] }
  0x80   : > { %v5040_v45 = vrot.slane %v6401_v7, 9  ;;  %v748_v47 = vrot.slane %v746_v41, 5  ;;  %v2862_v24 = vrot.slane %v6404_v20, 5  ;;  %v2865_v2 = vrot.slane %v6411_v35, 5  ;;  %v6006_v5 = vld [vmem:[%s6178_s15 + $0x64] sm:$0xf] }
  0x81   : > { %v743_v26 = vor.u32 %v742_v21, %v738_v19  ;;  %5377 = vmatmul.mubr.msk.bf16.gmra.mrb[24].mxu1 %vm822_vm3, %v4871_v13  ;;  %5531 = vmatmul.mubr.msk.bf16.gmra.mrb[8].mxu0 %vm822_vm3, %v5055_v63  ;;  %v734_v17 = vrot.slane %v733_v42, 4  ;;  %v751_v25 = vshrl.u32 %v6645_v34, 16  ;;  %v754_v14 = vshll.u32 %v6645_v34, 16 }
  0x82   : > { %v760_v7 = vshll.u32 %v6648_v30, 16  ;;  %v2863_v20 = vsel %vm6476_vm7, %v5040_v45, %v2862_v24  ;;  %v2864_v35 = vrot.slane %v2862_v24, 4  ;;  %v764_v29 = vshrl.u32 %v6648_v30, 16 }
  0x83   : > { %v744_v0 = vrot.slane %v743_v26, 4  ;;  %v739_v37 = vsel %vm6210_vm4, %v734_v17, %v738_v19  ;;  %v753_v8 = vrot.slane %v751_v25, 4  ;;  %v756_v54 = vrot.slane %v754_v14, 5 }
  0x84   : > { %v762_v18 = vrot.slane %v760_v7, 5  ;;  %v2866_v16 = vsel %vm6476_vm7, %v2864_v35, %v2865_v2  ;;  %v766_v10 = vrot.slane %v764_v29, 4  ;;  %v770_v57 = vshll.u32 %v6656_v15, 16  ;;  %v6690_v35 = vld [vmem:[%s6178_s15] sm:$0xf] }
  0x85   : > { %v749_v36 = vsel %vm6210_vm4, %v744_v0, %v748_v47  ;;  %v5056_v41 = vcombine.low %v2863_v20, %v2866_v16  ;;  %v757_v13 = vor.u32 %v756_v54, %v753_v8  ;;  %v5041_v19 = vrot.slane %v6435_v23, 9  ;;  %v6693_v29 = vld [vmem:[%s6178_s15 + $0x4] sm:$0xf]  ;;  %v1778_v8 = vld [vmem:[%s6184_s18 + $0x6c] sm:$0xf] }
  0x86   : > { %v4872_v21 = vcombine.low %v739_v37, %v749_v36  ;;  %v767_v63 = vor.u32 %v766_v10, %v762_v18  ;;  %v772_v42 = vrot.slane %v770_v57, 5  ;;  %v2869_v45 = vrot.slane %v6440_v39, 5  ;;  %v1779_v54 = vld [vmem:[%s6184_s18 + $0x70] sm:$0xf]  ;;  %v1780_v16 = vld [vmem:[%s6184_s18 + $0x74] sm:$0x1] }
  0x87   : > { %v2872_v26 = vrot.slane %v6445_v59, 5  ;;  %5534 = vmatprep.mubr.msk.bf16.mxu0 %vm822_vm3, %v5056_v41  ;;  %v758_v47 = vrot.slane %v757_v13, 4  ;;  %v5042_v24 = vrot.slane %v1775_v28, 9  ;;  %v2876_v2 = vrot.slane %v1776_v55, 5  ;;  %v1781_v10 = vld [vmem:[%s6184_s18 + $0x78] sm:$0xf] }
  0x88   : > { %5380 = vmatprep.mubr.msk.bf16.mxu1 %vm822_vm3, %v4872_v21  ;;  %v2879_v17 = vrot.slane %v1777_v31, 5  ;;  %v768_v25 = vrot.slane %v767_v63, 4  ;;  %v2870_v23 = vsel %vm6476_vm7, %v5041_v19, %v2869_v45  ;;  %v2871_v39 = vrot.slane %v2869_v45, 4  ;;  %v1782_v55 = vld [vmem:[%s6184_s18 + $0x7c] sm:$0xf] }
  0x89   : > { %v763_v59 = vsel %vm6210_vm4, %v758_v47, %v762_v18  ;;  %v2877_v14 = vsel %vm6476_vm7, %v5042_v24, %v2876_v2  ;;  %v2878_v7 = vrot.slane %v2876_v2, 4  ;;  %v4890_v37 = vcombine.low %v6690_v35, %v6693_v29  ;;  %v1783_v41 = vld [vmem:[%s6184_s18 + $0x80] sm:$0x1]  ;;  %v1785_v13 = vld [vmem:[%s6184_s18 + $0x88] sm:$0xf] }
  0x8a   : > { %v773_v0 = vsel %vm6210_vm4, %v768_v25, %v772_v42  ;;  %v2873_v20 = vsel %vm6476_vm7, %v2871_v39, %v2872_v26  ;;  %v5043_v31 = vrot.slane %v1778_v8, 9  ;;  %v2883_v21 = vrot.slane %v1779_v54, 5  ;;  %v1784_v42 = vld [vmem:[%s6184_s18 + $0x84] sm:$0xf]  ;;  %v1786_v45 = vld [vmem:[%s6184_s18 + $0x8c] sm:$0x1] }
  0x8b   : > { %v4873_v18 = vcombine.low %v763_v59, %v773_v0  ;;  %v5057_v28 = vcombine.low %v2870_v23, %v2873_v20  ;;  %v2880_v36 = vsel %vm6476_vm7, %v2878_v7, %v2879_v17  ;;  %v2886_v19 = vrot.slane %v1780_v16, 5  ;;  %v1787_v2 = vld [vmem:[%s6184_s18 + $0x90] sm:$0xf]  ;;  %v1788_v17 = vld [vmem:[%s6184_s18 + $0x94] sm:$0xf] }
  0x8c   : > { %v5058_v57 = vcombine.low %v2877_v14, %v2880_v36  ;;  %v5044_v63 = vrot.slane %v1781_v10, 9  ;;  %v2884_v26 = vsel %vm6476_vm7, %v5043_v31, %v2883_v21  ;;  %v2885_v47 = vrot.slane %v2883_v21, 4  ;;  %v6717_v25 = vld [vmem:[%s6178_s15 + $0xc] sm:$0xf]  ;;  %v6720_v23 = vld [vmem:[%s6178_s15 + $0x10] sm:$0xf] }
  0x8d   : > { %5381 = vmatmul.mubr.msk.bf16.gmra.mrb[28].mxu1 %vm822_vm3, %v4873_v18  ;;  %5535 = vmatmul.mubr.msk.bf16.gmra.mrb[12].mxu0 %vm822_vm3, %v5057_v28  ;;  %v2890_v24 = vrot.slane %v1782_v55, 5  ;;  %v4891_v39 = vcombine.low %v6717_v25, %v6720_v23  ;;  %v5985_v59 = vld [vmem:[%s8238_s3 + $0x8] sm:$0xf]  ;;  %v2893_v7 = vrot.slane %v1783_v41, 5  ;;  %v2897_v0 = vrot.slane %v1785_v13, 5 }
  0x8e   : > { %5386 = vmatprep.mubr.msk.bf16.mxu1 %vm822_vm3, %v4890_v37  ;;  %5538 = vmatprep.mubr.msk.bf16.mxu0 %vm822_vm3, %v5058_v57  ;;  %v1556_v14 = vsel %vm871_vm0, %v5985_v59, 0  ;;  %v1789_v20 = vld [vmem:[%s6184_s18 + $0x98] sm:$0x1]  ;;  %v2887_v37 = vsel %vm6476_vm7, %v2885_v47, %v2886_v19  ;;  %v6735_v54 = vld [vmem:[%s6178_s15 + $0x1c] sm:$0xf]  ;;  %v5045_v10 = vrot.slane %v1784_v42, 9 }
  0x8f   : > { %v6732_v8 = vld [vmem:[%s6178_s15 + $0x18] sm:$0xf]  ;;  %v2891_v28 = vsel %vm6476_vm7, %v5044_v63, %v2890_v24  ;;  %v2892_v36 = vrot.slane %v2890_v24, 4  ;;  %v5059_v16 = vcombine.low %v2884_v26, %v2887_v37  ;;  %v2899_v57 = vrot.slane %v2897_v0, 4  ;;  %v1791_v19 = vld [vmem:[%s6184_s18 + $0xa0] sm:$0xf] }
  0x90   : > { %v4892_v18 = vcombine.low %v6732_v8, %v6735_v54  ;;  %v2900_v55 = vrot.slane %v1786_v45, 5  ;;  %v5046_v21 = vrot.slane %v1787_v2, 9  ;;  %v2904_v41 = vrot.slane %v1788_v17, 5  ;;  %v1794_v59 = vld [vmem:[%s6184_s18 + $0xac] sm:$0xf] }
  0x91   : > { %v2894_v31 = vsel %vm6476_vm7, %v2892_v36, %v2893_v7  ;;  %v2907_v13 = vrot.slane %v1789_v20, 5  ;;  %v6748_v63 = vld [vmem:[%s8239_s4] sm:$0xf]  ;;  %v2898_v45 = vsel %vm6476_vm7, %v5045_v10, %v2897_v0  ;;  %v2911_v24 = vrot.slane %v1791_v19, 5  ;;  %v1792_v7 = vld [vmem:[%s6184_s18 + $0xa4] sm:$0x1] }
  0x92   : > { %v5060_v47 = vcombine.low %v2891_v28, %v2894_v31  ;;  %v2906_v42 = vrot.slane %v2904_v41, 4  ;;  %v2901_v26 = vsel %vm6476_vm7, %v2899_v57, %v2900_v55  ;;  %v2905_v2 = vsel %vm6476_vm7, %v5046_v21, %v2904_v41  ;;  %v1793_v0 = vld [vmem:[%s6184_s18 + $0xa8] sm:$0xf]  ;;  %v1795_v20 = vld [vmem:[%s6184_s18 + $0xb0] sm:$0x1] }
  0x93   : > { %v6769_v37 = vld [vmem:[%s6178_s15 + $0x24] sm:$0xf]  ;;  %v5061_v36 = vcombine.low %v2898_v45, %v2901_v26  ;;  %v2913_v55 = vrot.slane %v2911_v24, 4  ;;  %v2914_v31 = vrot.slane %v1792_v7, 5  ;;  %v5048_v21 = vrot.slane %v1793_v0, 9 }
  0x94   : > { %v2908_v17 = vsel %vm6476_vm7, %v2906_v42, %v2907_v13  ;;  %v2921_v13 = vrot.slane %v1795_v20, 5  ;;  %v1797_v19 = vld [vmem:[%s6184_s18 + $0xb8] sm:$0xf]  ;;  %v1796_v45 = vld [vmem:[%s6184_s18 + $0xb4] sm:$0xf] }
  0x95   : > { %5387 = vmatmul.mubr.msk.bf16.vlgmr.msra.gmra.mrb[0].mxu1 %vm822_vm3, %v4891_v39  ;;  %5539 = vmatmul.mubr.msk.bf16.gmra.mrb[16].mxu0 %vm822_vm3, %v5059_v16  ;;  %v1790_v39 = vld [vmem:[%s6184_s18 + $0x9c] sm:$0xf]  ;;  %v4894_v16 = vcombine.low %v6311_v44, %v6317_v56  ;;  %v5062_v10 = vcombine.low %v2905_v2, %v2908_v17  ;;  %v2915_v56 = vsel %vm6476_vm7, %v2913_v55, %v2914_v31  ;;  %v5049_v7 = vrot.slane %v1796_v45, 9 }
  0x96   : > { %5419 = vmatpush3.bf16.msra.mxu1 %v1556_v14  ;;  %5390 = vmatprep.mubr.msk.bf16.mxu1 %vm822_vm3, %v4892_v18  ;;  %v2918_v14 = vrot.slane %v1794_v59, 5  ;;  %v6772_v18 = vld [vmem:[%s6178_s15 + $0x28] sm:$0xf]  ;;  %v5047_v57 = vrot.slane %v1790_v39, 9  ;;  %v1798_v26 = vld [vmem:[%s6184_s18 + $0xbc] sm:$0x1]  ;;  %v4895_v2 = vcombine.low %v6348_v50, %v6354_v51  ;;  %v4896_v39 = vcombine.low %v6384_v40, %v6387_v48 }
  0x97   : > { %5542 = vmatprep.mubr.msk.bf16.mxu0 %vm822_vm3, %v5060_v47  ;;  %5917 = vmatprep.subr.msk.bf16.mxu1 %vm871_vm0, %v6748_v63  ;;  %v4893_v28 = vcombine.low %v6769_v37, %v6772_v18  ;;  %v2925_v47 = vrot.slane %v1797_v19, 5  ;;  %v2928_v20 = vrot.slane %v1798_v26, 5  ;;  %v6812_v40 = vld [vmem:[%s6801_s10] sm:$0xf]  ;;  %v6815_v48 = vld [vmem:[%s6801_s10 + $0x4] sm:$0xf]  ;;  %v4900_v55 = vcombine.low %v6506_v58, %v6511_v43 }
  0x98   : > { %v2920_v41 = vrot.slane %v2918_v14, 4  ;;  %v2912_v44 = vsel %vm6476_vm7, %v5047_v57, %v2911_v24  ;;  %v2919_v59 = vsel %vm6476_vm7, %v5048_v21, %v2918_v14  ;;  %v4897_v14 = vcombine.low %v6418_v53, %v6424_v61  ;;  %v6831_v53 = vld [vmem:[%s6801_s10 + $0x10] sm:$0xf]  ;;  %v6834_v61 = vld [vmem:[%s6801_s10 + $0x18] sm:$0xf] }
  0x99   : > { %v5063_v17 = vcombine.low %v2912_v44, %v2915_v56  ;;  %v2927_v0 = vrot.slane %v2925_v47, 4  ;;  %v2926_v50 = vsel %vm6476_vm7, %v5049_v7, %v2925_v47  ;;  %v4078_v31 = vsel %vm871_vm0, %v6544_v46, 0  ;;  %v6861_v58 = vld [vmem:[%s6801_s10 + $0x28] sm:$0xf]  ;;  %v6865_v46 = vld [vmem:[%s6801_s10 + $0x30] sm:$0xf] }
  0x9a   : > { %v2922_v42 = vsel %vm6476_vm7, %v2920_v41, %v2921_v13  ;;  %v6852_v41 = vld [vmem:[%s8240_s5 + $0x8] sm:$0xf]  ;;  %v6868_v13 = vld [vmem:[%s6801_s10 + $0x34] sm:$0xf]  ;;  %v1356_v56 = vrot.slane %v6720_v23, 5  ;;  %v4901_v45 = vcombine.low %v6533_v27, %v6536_v33  ;;  %v4902_v23 = vcombine.low %v6567_v9, %v6570_v11 }
  0x9b   : > { %v5064_v24 = vcombine.low %v2919_v59, %v2922_v42  ;;  %v2929_v51 = vsel %vm6476_vm7, %v2927_v0, %v2928_v20  ;;  %v6873_v19 = vld [vmem:[%s6178_s15 + $0x8] sm:$0x1]  ;;  %v6878_v47 = vld [vmem:[%s6178_s15 + $0x14] sm:$0x1]  ;;  %v6896_v7 = vld [vmem:[%s6801_s10 + $0x40] sm:$0xf] }
  0x9c   : > { %v1352_v44 = vrot.slane %v6873_v19, 5  ;;  %v1359_v59 = vrot.slane %v6878_v47, 5  ;;  %v1363_v9 = vrot.slane %v6735_v54, 5  ;;  %v6965_v33 = vld [vmem:[%s6801_s10 + $0x70] sm:$0xf]  ;;  %v4924_v27 = vrot.slane %v6732_v8, 9 }
  0x9d   : > { %5391 = vmatmul.mubr.msk.bf16.gmra.mrb[4].mxu1 %vm822_vm3, %v4893_v28  ;;  %5543 = vmatmul.mubr.msk.bf16.gmra.mrb[20].mxu0 %vm822_vm3, %v5061_v36  ;;  %v5065_v28 = vcombine.low %v2926_v50, %v2929_v51  ;;  %v4898_v36 = vcombine.low %v6455_v6, %v6458_v22  ;;  %v6837_v6 = vld [vmem:[%s6801_s10 + $0x1c] sm:$0xf]  ;;  %v4899_v22 = vcombine.low %v6472_v49, %v6488_v38  ;;  %v6858_v49 = vld [vmem:[%s6801_s10 + $0x24] sm:$0xf]  ;;  %v6903_v50 = vld [vmem:[%s6801_s10 + $0x48] sm:$0xf] }
  0x9e   : > { %5394 = vmatprep.mubr.msk.bf16.mxu1 %vm822_vm3, %v4894_v16  ;;  %5546 = vmatprep.mubr.msk.bf16.mxu0 %vm822_vm3, %v5062_v10  ;;  %v5082_v16 = vcombine.low %v6812_v40, %v6815_v48  ;;  %v6828_v10 = vld [vmem:[%s6801_s10 + $0xc] sm:$0xf]  ;;  %v5084_v21 = vcombine.low %v6834_v61, %v6837_v6  ;;  %v5085_v26 = vcombine.low %v6858_v49, %v6861_v58  ;;  %v6989_v0 = vld [vmem:[%s6801_s10 + $0x7c] sm:$0xf]  ;;  %v6997_v19 = vsel %vm871_vm0, %v6748_v63, 0 }
  0x9f   : > { %v5083_v57 = vcombine.low %v6828_v10, %v6831_v53  ;;  %8275 = vst [vmem:[#allocation8_spill] sm:$0xff] %v6903_v50  ;;  %v4905_v51 = vcombine.low %v6645_v34, %v6648_v30  ;;  %v7015_v8 = vld [vmem:[%s6801_s10 + $0x84] sm:$0xf]  ;;  %v7027_v54 = vld [vmem:[%s6801_s10 + $0x90] sm:$0xf] }
  0xa0   : > { %v5997_v42 = vld [vmem:[%s6178_s15 + $0x40] sm:$0xf]  ;;  %v7096_v34 = vld [vmem:[%s6801_s10 + $0xac] sm:$0xf] }
  0xa5   : > { %5395 = vmatmul.mubr.msk.bf16.gmra.mrb[8].mxu1 %vm822_vm3, %v4895_v2  ;;  %5547 = vmatmul.mubr.msk.bf16.gmra.mrb[24].mxu0 %vm822_vm3, %v5063_v17  ;;  %v6979_v17 = vld [vmem:[%s6801_s10 + $0x78] sm:$0xf]  ;;  %v7032_v2 = vld [vmem:[%s6801_s10 + $0x94] sm:$0xf] }
  0xa6   : > { %5398 = vmatprep.mubr.msk.bf16.mxu1 %vm822_vm3, %v4896_v39  ;;  %5550 = vmatprep.mubr.msk.bf16.mxu0 %vm822_vm3, %v5064_v24  ;;  %v5086_v39 = vcombine.low %v6865_v46, %v6868_v13  ;;  %v6893_v24 = vld [vmem:[%s6801_s10 + $0x3c] sm:$0xf]  ;;  %8281 = vst [vmem:[#allocation14_spill] sm:$0xff] %v6979_v17 }
  0xa7   : > { %v5087_v47 = vcombine.low %v6893_v24, %v6896_v7 }
  0xad   : > { %5399 = vmatmul.mubr.msk.bf16.gmra.mrb[12].mxu1 %vm822_vm3, %v4897_v14  ;;  %5551 = vmatmul.mubr.msk.bf16.gmra.mrb[28].mxu0 %vm822_vm3, %v5065_v28  ;;  %v1384_v28 = vrot.slane %v5997_v42, 5  ;;  %v5998_v42 = vld [vmem:[%s6178_s15 + $0x4c] sm:$0xf] }
  0xae   : > { %5402 = vmatprep.mubr.msk.bf16.mxu1 %vm822_vm3, %v4898_v36  ;;  %5556 = vmatprep.mubr.msk.bf16.mxu0 %vm822_vm3, %v5082_v16  ;;  %v6910_v36 = vld [vmem:[%s6801_s10 + $0x4c] sm:$0xf] }
  0xb5   : > { %5403 = vmatmul.mubr.msk.bf16.gmra.mrb[16].mxu1 %vm822_vm3, %v4899_v22  ;;  %5557 = vmatmul.mubr.msk.bf16.vlgmr.msra.gmra.mrb[0].mxu0 %vm822_vm3, %v5083_v57  ;;  %v6944_v22 = vld [vmem:[%s6801_s10 + $0x64] sm:$0xf]  ;;  %v1358_v57 = vrot.slane %v1356_v56, 4 }
  0xb6   : > { %5589 = vmatpush3.bf16.msra.mxu0 %v4078_v31  ;;  %5406 = vmatprep.mubr.msk.bf16.mxu1 %vm822_vm3, %v4900_v55  ;;  %v1349_v55 = vrot.slane %v6693_v29, 5  ;;  %v6936_v31 = vld [vmem:[%s6801_s10 + $0x58] sm:$0xf]  ;;  %8279 = vst [vmem:[#allocation12_spill] sm:$0xff] %v6944_v22  ;;  %v4923_v29 = vrot.slane %v6717_v25, 9 }
  0xb7   : > { %5560 = vmatprep.mubr.msk.bf16.mxu0 %vm822_vm3, %v5084_v21  ;;  %5923 = vmatprep.subr.msk.bf16.mxu0 %vm871_vm0, %v6852_v41  ;;  %v4903_v21 = vcombine.low %v6594_v4, %v6597_v60  ;;  %8277 = vst [vmem:[#allocation10_spill] sm:$0xff] %v6936_v31  ;;  %v6939_v4 = vld [vmem:[%s6801_s10 + $0x60] sm:$0xf]  ;;  %v6957_v25 = vld [vmem:[%s6801_s10 + $0x6c] sm:$0xf]  ;;  %v6975_v16 = vsel %vm6476_vm7, %v1358_v57, %v1359_v59  ;;  %v1370_v59 = vrot.slane %v6772_v18, 5 }
  0xb8   : > { %8278 = vst [vmem:[#allocation11_spill] sm:$0xff] %v6939_v4  ;;  %v1351_v14 = vrot.slane %v1349_v55, 4  ;;  %8280 = vst [vmem:[#allocation13_spill] sm:$0xff] %v6957_v25  ;;  %v6971_v20 = vsel %vm6476_vm7, %v4923_v29, %v1356_v56  ;;  %v1365_v56 = vrot.slane %v1363_v9, 4  ;;  %v5996_v18 = vld [vmem:[%s6178_s15 + $0x38] sm:$0x1] }
  0xbd   : > { %5407 = vmatmul.mubr.msk.bf16.gmra.mrb[20].mxu1 %vm822_vm3, %v4901_v45  ;;  %5561 = vmatmul.mubr.msk.bf16.gmra.mrb[4].mxu0 %vm822_vm3, %v5085_v26  ;;  %v6927_v26 = vld [vmem:[%s6801_s10 + $0x54] sm:$0xf]  ;;  %v4922_v45 = vrot.slane %v6690_v35, 9 }
  0xbe   : > { %5410 = vmatprep.mubr.msk.bf16.mxu1 %vm822_vm3, %v4902_v23  ;;  %5564 = vmatprep.mubr.msk.bf16.mxu0 %vm822_vm3, %v5086_v39  ;;  %8276 = vst [vmem:[#allocation9_spill] sm:$0xff] %v6927_v26  ;;  %v4904_v23 = vcombine.low %v6618_v52, %v6621_v1  ;;  %v5088_v39 = vcombine.low %v6903_v50, %v6910_v36  ;;  %v8284_v52 = vshll.u32 %v6812_v40, 16 }
  0xbf   : > { %v5089_v35 = vcombine.low %v6927_v26, %v6936_v31  ;;  %v1350_v60 = vsel %vm6476_vm7, %v4922_v45, %v1349_v55  ;;  %v1353_v55 = vsel %vm6476_vm7, %v1351_v14, %v1352_v44  ;;  %v5992_v45 = vld [vmem:[%s6178_s15 + $0x20] sm:$0x1]  ;;  %v5993_v14 = vld [vmem:[%s6178_s15 + $0x34] sm:$0xf]  ;;  %v1405_v31 = vrot.slane %v6006_v5, 5 }
  0xc0   : > { %v1366_v29 = vrot.slane %v5992_v45, 5  ;;  %v1377_v57 = vrot.slane %v5993_v14, 5  ;;  %v4938_v63 = vcombine.low %v1350_v60, %v1353_v55  ;;  %v4925_v14 = vrot.slane %v6769_v37, 9  ;;  %v5994_v55 = vld [vmem:[%s6178_s15 + $0x2c] sm:$0x1] }
  0xc1   : > { %v1372_v60 = vrot.slane %v1370_v59, 4  ;;  %v1380_v37 = vrot.slane %v5996_v18, 5  ;;  %v6001_v45 = vld [vmem:[%s6178_s15 + $0x58] sm:$0xf]  ;;  %v6004_v26 = vld [vmem:[%s6178_s15 + $0x54] sm:$0xf] }
  0xc2   : > { %v1379_v44 = vrot.slane %v1377_v57, 4  ;;  %v7044_v18 = vsel %vm6476_vm7, %v4925_v14, %v1370_v59  ;;  %v7061_v14 = vld [vmem:[%s6801_s10 + $0x9c] sm:$0xf]  ;;  %v4929_v30 = vrot.slane %v6004_v26, 9  ;;  %v8285_v5 = vshrl.u32 %v6815_v48, 16 }
  0xc5   : > { %5411 = vmatmul.mubr.msk.bf16.gmra.mrb[24].mxu1 %vm822_vm3, %v4903_v21  ;;  %5565 = vmatmul.mubr.msk.bf16.gmra.mrb[8].mxu0 %vm822_vm3, %v5087_v47  ;;  %v7018_v21 = vld [vmem:[%s6801_s10 + $0x88] sm:$0xf]  ;;  %v1373_v47 = vrot.slane %v5994_v55, 5 }
  0xc6   : > { %5414 = vmatprep.mubr.msk.bf16.mxu1 %vm822_vm3, %v4904_v23  ;;  %5568 = vmatprep.mubr.msk.bf16.mxu0 %vm822_vm3, %v5088_v39  ;;  %v7009_v39 = vsel %vm6476_vm7, %v4924_v27, %v1363_v9  ;;  %v7022_v23 = vsel %vm6476_vm7, %v1365_v56, %v1366_v29  ;;  %v5995_v27 = vld [vmem:[%s6178_s15 + $0x30] sm:$0xf]  ;;  %v6000_v56 = vld [vmem:[%s6178_s15 + $0x44] sm:$0x1] }
  0xc7   : > { %v4926_v9 = vrot.slane %v5995_v27, 9  ;;  %v7052_v27 = vsel %vm6476_vm7, %v1372_v60, %v1373_v47  ;;  %v5999_v47 = vld [vmem:[%s6178_s15 + $0x3c] sm:$0xf]  ;;  %v1387_v59 = vrot.slane %v6000_v56, 5  ;;  %v7088_v56 = vld [vmem:[%s6801_s10 + $0xa8] sm:$0xf] }
  0xc8   : > { %v4927_v60 = vrot.slane %v5999_v47, 9  ;;  %v6002_v47 = vld [vmem:[%s6178_s15 + $0x48] sm:$0xf] }
  0xc9   : > { %v7056_v29 = vsel %vm6476_vm7, %v4926_v9, %v1377_v57  ;;  %v7074_v57 = vsel %vm6476_vm7, %v1379_v44, %v1380_v37  ;;  %v1386_v9 = vrot.slane %v1384_v28, 4  ;;  %v4928_v15 = vrot.slane %v6002_v47, 9 }
  0xca   : > { %v7100_v37 = vsel %vm6476_vm7, %v4927_v60, %v1384_v28  ;;  %v3603_v28 = vrot.slane %v8284_v52, 5  ;;  %v8287_v52 = vcombine.low %v6957_v25, %v6965_v33 }
  0xcb   : > { %v7104_v47 = vsel %vm6476_vm7, %v1386_v9, %v1387_v59  ;;  %v7120_v59 = vld [vmem:[%s6801_s10 + $0xb4] sm:$0xf]  ;;  %v3613_v9 = vrot.slane %v8285_v5, 4 }
  0xcd   : > { %5415 = vmatmul.mubr.msk.bf16.gmra.mrb[28].mxu1 %vm822_vm3, %v4905_v51  ;;  %5569 = vmatmul.mubr.msk.bf16.gmra.mrb[12].mxu0 %vm822_vm3, %v5089_v35  ;;  %v1391_v51 = vrot.slane %v5998_v42, 5  ;;  %v8282_v35 = vcombine.low %v6939_v4, %v6944_v22  ;;  %v3607_v42 = vshll.u32 %v6815_v48, 16  ;;  %v6003_v4 = vld [vmem:[%s6178_s15 + $0x50] sm:$0x1]  ;;  %v6005_v22 = vld [vmem:[%s6178_s15 + $0x5c] sm:$0x1] }
  0xce   : > { %5420 = vmatprep.mubr.msk.bf16.mxu1 %vm822_vm3, %v4938_v63  ;;  %v1394_v44 = vrot.slane %v6003_v4, 5  ;;  %v1401_v55 = vrot.slane %v6005_v22, 5  ;;  %v8283_v4 = vshrl.u32 %v6812_v40, 16  ;;  %v7141_v48 = vld [vmem:[%s6801_s10 + $0xb8] sm:$0xf] }
  0xcf   : > { %5572 = vmatprep.mubr.msk.bf16.mxu0 %vm822_vm3, %v8282_v35  ;;  %v1398_v35 = vrot.slane %v6001_v45, 5  ;;  %v1393_v45 = vrot.slane %v1391_v51, 4  ;;  %v7115_v60 = vsel %vm6476_vm7, %v4928_v15, %v1391_v51  ;;  %v7122_v22 = vrot.slane %v3607_v42, 5  ;;  %v7144_v51 = vld [vmem:[%s6801_s10 + $0x8] sm:$0x1] }
  0xd0   : > { %v3600_v50 = vrot.slane %v8283_v4, 4  ;;  %v8286_v4 = vcombine.low %v6971_v20, %v6975_v16  ;;  %8288 = vst [vmem:[#allocation15_spill] sm:$0xff] %v7144_v51  ;;  %v1412_v20 = vrot.slane %v6488_v38, 5  ;;  %v3631_v16 = vshll.u32 %v6831_v53, 16  ;;  %v6011_v15 = vld [vmem:[%s6178_s15 + $0x74] sm:$0x1] }
  0xd1   : > { %v1400_v63 = vrot.slane %v1398_v35, 4  ;;  %v7138_v40 = vsel %vm6476_vm7, %v1393_v45, %v1394_v44  ;;  %v8289_v42 = vcombine.low %v7009_v39, %v7022_v23  ;;  %v7155_v5 = vsel %vm6476_vm7, %v4929_v30, %v1398_v35  ;;  %v6007_v44 = vld [vmem:[%s6178_s15 + $0x60] sm:$0xf]  ;;  %v6008_v39 = vld [vmem:[%s6178_s15 + $0x68] sm:$0x1] }
  0xd2   : > { %v4930_v45 = vrot.slane %v6007_v44, 9  ;;  %v8291_v38 = vshll.u32 %v6828_v10, 16  ;;  %v1407_v23 = vrot.slane %v1405_v31, 4  ;;  %v1408_v35 = vrot.slane %v6008_v39, 5  ;;  %v7182_v39 = vld [vmem:[%s6801_s10 + $0x14] sm:$0x1] }
  0xd3   : > { %v7168_v30 = vsel %vm6476_vm7, %v1400_v63, %v1401_v55  ;;  %v1414_v63 = vrot.slane %v1412_v20, 4 }
  0xd4   : > { %v3627_v26 = vrot.slane %v8291_v38, 5  ;;  %v3617_v38 = vshll.u32 %v7144_v51, 16  ;;  %v1419_v51 = vrot.slane %v6511_v43, 5 }
  0xd5   : > { %5421 = vmatmul.mubr.msk.bf16.vlgmr.msra.gmra.mrb[0].mxu1 %vm822_vm3, %v8286_v4  ;;  %5573 = vmatmul.mubr.msk.bf16.gmra.mrb[16].mxu0 %vm822_vm3, %v8287_v52  ;;  %v8290_v4 = vshrl.u32 %v6828_v10, 16  ;;  %v6009_v10 = vld [vmem:[%s8239_s4 + $0x4] sm:$0xf] }
  0xd6   : > { %5453 = vmatpush3.bf16.msra.mxu1 %v6997_v19  ;;  %5424 = vmatprep.mubr.msk.bf16.mxu1 %vm822_vm3, %v8289_v42  ;;  %v8292_v19 = vcombine.low %v6979_v17, %v6989_v0  ;;  %v3604_v42 = vor.u32 %v3603_v28, %v3600_v50  ;;  %v1415_v17 = vrot.slane %v6011_v15, 5  ;;  %v7184_v50 = vrot.slane %v3631_v16, 5 }
  0xd7   : > { %v3624_v52 = vrot.slane %v8290_v4, 4  ;;  %5919 = vmatprep.subr.msk.bf16.mxu1 %vm871_vm0, %v6009_v10  ;;  %v3614_v4 = vor.u32 %v3613_v9, %v7122_v22  ;;  %v8293_v28 = vshrl.u32 %v6831_v53, 16  ;;  %v4944_v10 = vcombine.low %v7115_v60, %v7138_v40  ;;  %v6017_v9 = vld [vmem:[%s6178_s15 + $0x90] sm:$0xf] }
  0xd8   : > { %5576 = vmatprep.mubr.msk.bf16.mxu0 %vm822_vm3, %v8292_v19  ;;  %v6010_v19 = vld [vmem:[%s6178_s15 + $0x6c] sm:$0xf]  ;;  %v7199_v15 = vsel %vm6476_vm7, %v1407_v23, %v1408_v35  ;;  %v7201_v53 = vrot.slane %v3604_v42, 4  ;;  %v3655_v16 = vshll.u32 %v6837_v6, 16  ;;  %v7206_v40 = vrot.slane %v3617_v38, 5 }
  0xd9   : > { %v4931_v55 = vrot.slane %v6010_v19, 9  ;;  %v3637_v25 = vrot.slane %v8293_v28, 4  ;;  %v3628_v44 = vor.u32 %v3627_v26, %v3624_v52  ;;  %v7195_v19 = vsel %vm6476_vm7, %v4930_v45, %v1405_v31  ;;  %v6012_v38 = vld [vmem:[%s6178_s15 + $0x78] sm:$0xf] }
  0xda   : > { %v7204_v60 = vrot.slane %v3614_v4, 4  ;;  %v3641_v31 = vshll.u32 %v7182_v39, 16  ;;  %v8294_v26 = vcombine.low %v7044_v18, %v7052_v27  ;;  %v8295_v45 = vcombine.low %v7015_v8, %v7018_v21 }
  0xdb   : > { %v7210_v43 = vsel %vm6476_vm7, %v4931_v55, %v1412_v20  ;;  %v7223_v52 = vsel %vm6476_vm7, %v1414_v63, %v1415_v17  ;;  %v3638_v20 = vor.u32 %v3637_v25, %v7184_v50  ;;  %v8296_v23 = vshrl.u32 %v6834_v61, 16  ;;  %v6013_v63 = vld [vmem:[%s6178_s15 + $0x80] sm:$0x1] }
  0xdc   : > { %v8297_v42 = vshll.u32 %v6834_v61, 16  ;;  %v8298_v27 = vcombine.low %v7056_v29, %v7074_v57  ;;  %v8299_v18 = vcombine.low %v7027_v54, %v7032_v2  ;;  %v3629_v17 = vrot.slane %v3628_v44, 4  ;;  %v7318_v61 = vld [vmem:[%s6801_s10 + $0x38] sm:$0x1] }
  0xdd   : > { %5425 = vmatmul.mubr.msk.bf16.gmra.mrb[4].mxu1 %vm822_vm3, %v8294_v26  ;;  %5577 = vmatmul.mubr.msk.bf16.gmra.mrb[20].mxu0 %vm822_vm3, %v8295_v45  ;;  %v3648_v35 = vrot.slane %v8296_v23, 4  ;;  %v4932_v55 = vrot.slane %v6012_v38, 9  ;;  %v1421_v25 = vrot.slane %v1419_v51, 4  ;;  %v1422_v28 = vrot.slane %v6013_v63, 5  ;;  %v7241_v26 = vld [vmem:[%s6801_s10 + $0x20] sm:$0x1] }
  0xde   : > { %v3651_v4 = vrot.slane %v8297_v42, 5  ;;  %5428 = vmatprep.mubr.msk.bf16.mxu1 %vm822_vm3, %v8298_v27  ;;  %5580 = vmatprep.mubr.msk.bf16.mxu0 %vm822_vm3, %v8299_v18  ;;  %8300 = vst [vmem:[#allocation16_spill] sm:$0xff] %v7241_v26  ;;  %v3610_v29 = vsel %vm6210_vm4, %v7201_v53, %v7122_v22  ;;  %v7249_v57 = vrot.slane %v3655_v16, 5  ;;  %v8301_v44 = vshrl.u32 %v6837_v6, 16 }
  0xdf   : > { %v3620_v23 = vsel %vm6210_vm4, %v7204_v60, %v7206_v40  ;;  %v7261_v27 = vsel %vm871_vm0, %v6852_v41, 0  ;;  %v3679_v22 = vshll.u32 %v6861_v58, 16  ;;  %v3639_v53 = vrot.slane %v3638_v20, 4 }
  0xe0   : > { %v3661_v45 = vrot.slane %v8301_v44, 4  ;;  %v3643_v16 = vrot.slane %v3641_v31, 5  ;;  %v3652_v6 = vor.u32 %v3651_v4, %v3648_v35  ;;  %v3665_v18 = vshll.u32 %v7241_v26, 16  ;;  %v6014_v31 = vld [vmem:[%s6178_s15 + $0x88] sm:$0xf] }
  0xe1   : > { %v3634_v60 = vsel %vm6210_vm4, %v3629_v17, %v7184_v50  ;;  %v7270_v40 = vsel %vm6476_vm7, %v4932_v55, %v1419_v51  ;;  %v7274_v41 = vsel %vm6476_vm7, %v1421_v25, %v1422_v28  ;;  %v3703_v38 = vshll.u32 %v6868_v13, 16  ;;  %v6015_v44 = vld [vmem:[%s6178_s15 + $0x84] sm:$0xf]  ;;  %v7285_v55 = vld [vmem:[%s6801_s10 + $0x2c] sm:$0x1] }
  0xe2   : > { %v3662_v20 = vor.u32 %v3661_v45, %v7249_v57  ;;  %v1426_v35 = vrot.slane %v6014_v31, 5  ;;  %v8302_v4 = vshrl.u32 %v6858_v49, 16  ;;  %v8303_v50 = vshll.u32 %v6858_v49, 16 }
  0xe3   : > { %v4933_v51 = vrot.slane %v6015_v44, 9  ;;  %v7287_v42 = vrot.slane %v3679_v22, 5  ;;  %v8304_v25 = vshrl.u32 %v6861_v58, 16  ;;  %v1433_v45 = vrot.slane %v6570_v11, 5 }
  0xe4   : > { %v3672_v63 = vrot.slane %v8302_v4, 4  ;;  %v3675_v17 = vrot.slane %v8303_v50, 5  ;;  %v8305_v31 = vcombine.low %v7100_v37, %v7104_v47  ;;  %v8306_v49 = vcombine.low %v7061_v14, %v7064_v3  ;;  %v6016_v50 = vld [vmem:[%s6178_s15 + $0x8c] sm:$0x1] }
  0xe5   : > { %v3685_v28 = vrot.slane %v8304_v25, 4  ;;  %v3644_v22 = vsel %vm6210_vm4, %v3639_v53, %v3643_v16  ;;  %v3653_v4 = vrot.slane %v3652_v6, 4  ;;  %v3667_v58 = vrot.slane %v3665_v18, 5 }
  0xe6   : > { %5429 = vmatmul.mubr.msk.bf16.gmra.mrb[8].mxu1 %vm822_vm3, %v8305_v31  ;;  %5581 = vmatmul.mubr.msk.bf16.gmra.mrb[24].mxu0 %vm822_vm3, %v8306_v49  ;;  %v1429_v44 = vrot.slane %v6016_v50, 5  ;;  %v8307_v11 = vcombine.low %v7088_v56, %v7096_v34  ;;  %v8308_v37 = vshrl.u32 %v6865_v46, 16  ;;  %v8309_v25 = vshll.u32 %v6865_v46, 16 }
  0xe7   : > { %5432 = vmatprep.mubr.msk.bf16.mxu1 %vm822_vm3, %v4944_v10  ;;  %v7312_v49 = vrot.slane %v3703_v38, 5  ;;  %v8310_v53 = vshrl.u32 %v6868_v13, 16  ;;  %v3663_v6 = vrot.slane %v3662_v20, 4  ;;  %v1428_v18 = vrot.slane %v1426_v35, 4 }
  0xe8   : > { %5584 = vmatprep.mubr.msk.bf16.mxu0 %vm822_vm3, %v8307_v11  ;;  %v3696_v47 = vrot.slane %v8308_v37, 4  ;;  %v3699_v31 = vrot.slane %v8309_v25, 5  ;;  %v3676_v50 = vor.u32 %v3675_v17, %v3672_v63  ;;  %v3689_v10 = vshll.u32 %v7285_v55, 16 }
  0xe9   : > { %v3709_v16 = vrot.slane %v8310_v53, 4  ;;  %v3686_v11 = vor.u32 %v3685_v28, %v7287_v42  ;;  %v4934_v26 = vrot.slane %v6017_v9, 9  ;;  %v1435_v37 = vrot.slane %v1433_v45, 4 }
  0xea   : > { %v1436_v46 = vrot.slane %v6578_v62, 5  ;;  %v5114_v25 = vcombine.low %v3610_v29, %v3620_v23  ;;  %v5115_v38 = vcombine.low %v3634_v60, %v3644_v22  ;;  %v4948_v13 = vcombine.low %v7270_v40, %v7274_v41 }
  0xeb   : > { %v3727_v20 = vshll.u32 %v6896_v7, 16  ;;  %v7328_v63 = vsel %vm6476_vm7, %v4933_v51, %v1426_v35  ;;  %v3700_v17 = vor.u32 %v3699_v31, %v3696_v47  ;;  %v3710_v28 = vor.u32 %v3709_v16, %v7312_v49 }
  0xec   : > { %v3713_v9 = vshll.u32 %v7318_v61, 16  ;;  %v3658_v62 = vsel %vm6210_vm4, %v3653_v4, %v7249_v57  ;;  %v3668_v29 = vsel %vm6210_vm4, %v3663_v6, %v3667_v58  ;;  %v7339_v23 = vsel %vm6476_vm7, %v1428_v18, %v1429_v44  ;;  %v7358_v4 = vld [vmem:[%s6801_s10 + $0x44] sm:$0x1]  ;;  %v6018_v18 = vld [vmem:[%s6178_s15 + $0xa0] sm:$0xf] }
  0xed   : > { %v3677_v60 = vrot.slane %v3676_v50, 4  ;;  %v3687_v40 = vrot.slane %v3686_v11, 4  ;;  %v3691_v41 = vrot.slane %v3689_v10, 5  ;;  %v7343_v35 = vsel %vm6476_vm7, %v4934_v26, %v1433_v45 }
  0xee   : > { %v7347_v51 = vsel %vm6476_vm7, %v1435_v37, %v1436_v46  ;;  %v8311_v57 = vcombine.low %v7155_v5, %v7168_v30  ;;  %v8312_v22 = vcombine.low %v7120_v59, %v7141_v48  ;;  %v8313_v58 = vshrl.u32 %v6893_v24, 16  ;;  %v6019_v37 = vld [vmem:[%s6178_s15 + $0x9c] sm:$0xf] }
  0xef   : > { %v8314_v45 = vshll.u32 %v6893_v24, 16  ;;  %v7364_v47 = vrot.slane %v3727_v20, 5  ;;  %v8315_v5 = vshrl.u32 %v6896_v7, 16  ;;  %v8316_v31 = vcombine.low %v7195_v19, %v7199_v15  ;;  %v6020_v20 = vld [vmem:[%s6178_s15 + $0xa4] sm:$0x1]  ;;  %s4856_s15 = sshll.u32 %s4845_s25, 5 }
  0xf0   : > { %5433 = vmatmul.mubr.msk.bf16.gmra.mrb[12].mxu1 %vm822_vm3, %v8311_v57  ;;  %5585 = vmatmul.mubr.msk.bf16.gmra.mrb[28].mxu0 %vm822_vm3, %v8312_v22  ;;  %v3720_v26 = vrot.slane %v8313_v58, 4  ;;  %v3701_v53 = vrot.slane %v3700_v17, 4  ;;  %v3711_v16 = vrot.slane %v3710_v28, 4  ;;  %v3715_v6 = vrot.slane %v3713_v9, 5  ;;  %v8318_v57 = vld [vmem:[#allocation8_spill] sm:$0xff]  ;;  %p330_p4 = scmp.lt.s32.totalorder %s4856_s15, 63 }
  0xf1   : > { %v3723_v44 = vrot.slane %v8314_v45, 5  ;;  %v3733_v30 = vrot.slane %v8315_v5, 4  ;;  %5436 = vmatprep.mubr.msk.bf16.mxu1 %vm822_vm3, %v8316_v31  ;;  %5590 = vmatprep.mubr.msk.bf16.mxu0 %vm822_vm3, %v5114_v25  ;;  %v1440_v24 = vrot.slane %v6018_v18, 5  ;;  %v5116_v50 = vcombine.low %v3658_v62, %v3668_v29 }
  0xf2   : > { %v4949_v10 = vcombine.low %v7328_v63, %v7339_v23  ;;  %v3682_v7 = vsel %vm6210_vm4, %v3677_v60, %v7287_v42  ;;  %v3751_v19 = vshll.u32 %v6910_v36, 16  ;;  %v3692_v15 = vsel %vm6210_vm4, %v3687_v40, %v3691_v41  ;;  %v8317_v40 = vld [vmem:[#allocation3_spill] sm:$0xff]  ;;  %s8358_s15 = smov (!%p330_p4, %s4856_s15), 63 }
  0xf3   : > { %v4950_v11 = vcombine.low %v7343_v35, %v7347_v51  ;;  %v4935_v46 = vrot.slane %v6019_v37, 9  ;;  %v3737_v25 = vshll.u32 %v7358_v4, 16  ;;  %v1443_v17 = vrot.slane %v6020_v20, 5  ;;  %s4857_s16 = sshll.u32 %s8358_s15, 3 }
  0xf4   : > { %v3724_v28 = vor.u32 %v3723_v44, %v3720_v26  ;;  %v3734_v9 = vor.u32 %v3733_v30, %v7364_v47  ;;  %v1447_v42 = vrot.slane %v6621_v1, 5  ;;  %v3706_v62 = vsel %vm6210_vm4, %v3701_v53, %v7312_v49  ;;  %v7408_v53 = vld [vmem:[%s6801_s10 + $0x50] sm:$0x1]  ;;  %s8133_s25 = scalar_lea.vmem %s8242_s7, %s4857_s16 }
  0xf5   : > { %v3716_v29 = vsel %vm6210_vm4, %v3711_v16, %v3715_v6  ;;  %v1442_v60 = vrot.slane %v1440_v24, 4  ;;  %v4936_v41 = vrot.slane %v8317_v40, 9  ;;  %v8319_v22 = vshrl.u32 %v8318_v57, 16  ;;  %v8322_v16 = vld [vmem:[#allocation10_spill] sm:$0xff] }
  0xf6   : > { %v8320_v45 = vshll.u32 %v8318_v57, 16  ;;  %v7399_v44 = vrot.slane %v3751_v19, 5  ;;  %v8321_v1 = vshrl.u32 %v6910_v36, 16  ;;  %v5117_v30 = vcombine.low %v3682_v7, %v3692_v15  ;;  %v8324_v7 = vld [vmem:[#allocation4_spill] sm:$0xff] }
  0xf7   : > { %v3744_v58 = vrot.slane %v8319_v22, 4  ;;  %v7405_v49 = vsel %vm6476_vm7, %v4935_v46, %v1440_v24  ;;  %v3739_v31 = vrot.slane %v3737_v25, 5  ;;  %v3775_v6 = vshll.u32 %v8322_v16, 16 }
  0xf8   : > { %v3747_v26 = vrot.slane %v8320_v45, 5  ;;  %v3757_v5 = vrot.slane %v8321_v1, 4  ;;  %v8323_v18 = vcombine.low %v7210_v43, %v7223_v52  ;;  %5591 = vmatmul.mubr.msk.bf16.vlgmr.msra.gmra.mrb[0].mxu0 %vm822_vm3, %v5115_v38  ;;  %v3725_v19 = vrot.slane %v3724_v28, 4  ;;  %v8325_v52 = vld [vmem:[#allocation12_spill] sm:$0xff]  ;;  %v8332_v1 = vld [vmem:[#allocation11_spill] sm:$0xff] }
  0xf9   : > { %v3735_v36 = vrot.slane %v3734_v9, 4  ;;  %v1449_v37 = vrot.slane %v1447_v42, 4  ;;  %v1450_v15 = vrot.slane %v8324_v7, 5  ;;  %5623 = vmatpush3.bf16.msra.mxu0 %v7261_v27  ;;  %v5118_v24 = vcombine.low %v3706_v62, %v3716_v29  ;;  %5594 = vmatprep.mubr.msk.bf16.mxu0 %vm822_vm3, %v5116_v50  ;;  %v8327_v9 = vld [vmem:[#allocation9_spill] sm:$0xff] }
  0xfa   : > { %5437 = vmatmul.mubr.msk.bf16.gmra.mrb[16].mxu1 %vm822_vm3, %v8323_v18  ;;  %v7421_v46 = vsel %vm6476_vm7, %v1442_v60, %v1443_v17  ;;  %v7425_v43 = vsel %vm6476_vm7, %v4936_v41, %v1447_v42  ;;  %v3799_v38 = vshll.u32 %v8325_v52, 16  ;;  %v3748_v25 = vor.u32 %v3747_v26, %v3744_v58  ;;  %v8331_v58 = vld [vmem:[#allocation5_spill] sm:$0xff] }
  0xfb   : > { %5440 = vmatprep.mubr.msk.bf16.mxu1 %vm822_vm3, %v4948_v13  ;;  %v3758_v20 = vor.u32 %v3757_v5, %v7399_v44  ;;  %v3761_v27 = vshll.u32 %v7408_v53, 16  ;;  %v8326_v13 = vld [vmem:[#allocation6_spill] sm:$0xff]  ;;  %v8328_v62 = vshrl.u32 %v8327_v9, 16  ;;  %v8329_v29 = vshll.u32 %v8327_v9, 16  ;;  %v7451_v26 = vld [vmem:[%s6801_s10 + $0x5c] sm:$0x1] }
  0xfc   : > { %v1454_v28 = vrot.slane %v8326_v13, 5  ;;  %v7436_v42 = vrot.slane %v3775_v6, 5  ;;  %v8330_v40 = vshrl.u32 %v8322_v16, 16  ;;  %v3730_v50 = vsel %vm6210_vm4, %v3725_v19, %v7364_v47  ;;  %v7463_v9 = vld [vmem:[%s6801_s10 + $0x68] sm:$0x1] }
  0xfd   : > { %v3768_v17 = vrot.slane %v8328_v62, 4  ;;  %v3771_v60 = vrot.slane %v8329_v29, 5  ;;  %v3740_v57 = vsel %vm6210_vm4, %v3735_v36, %v3739_v31  ;;  %v7447_v22 = vsel %vm6476_vm7, %v1449_v37, %v1450_v15  ;;  %v8336_v37 = vld [vmem:[#allocation7_spill] sm:$0xff] }
  0xfe   : > { %v3781_v41 = vrot.slane %v8330_v40, 4  ;;  %v4937_v45 = vrot.slane %v8331_v58, 9  ;;  %v8333_v5 = vshrl.u32 %v8332_v1, 16  ;;  %v8334_v16 = vshll.u32 %v8332_v1, 16 }
  0xff   : > { %v7457_v7 = vrot.slane %v3799_v38, 5  ;;  %v8335_v47 = vshrl.u32 %v8325_v52, 16  ;;  %v3749_v31 = vrot.slane %v3748_v25, 4  ;;  %v3759_v36 = vrot.slane %v3758_v20, 4 }
 0x100   : > { %v3792_v6 = vrot.slane %v8333_v5, 4  ;;  %v3795_v18 = vrot.slane %v8334_v16, 5  ;;  %v3763_v13 = vrot.slane %v3761_v27, 5  ;;  %v1457_v15 = vrot.slane %v8336_v37, 5  ;;  %5595 = vmatmul.mubr.msk.bf16.gmra.mrb[4].mxu0 %vm822_vm3, %v5117_v30  ;;  %v8337_v27 = vld [vmem:[#allocation13_spill] sm:$0xff] }
 0x101   : > { %v3805_v19 = vrot.slane %v8335_v47, 4  ;;  %v1456_v62 = vrot.slane %v1454_v28, 4  ;;  %v3772_v29 = vor.u32 %v3771_v60, %v3768_v17  ;;  %v3782_v40 = vor.u32 %v3781_v41, %v7436_v42  ;;  %5598 = vmatprep.mubr.msk.bf16.mxu0 %vm822_vm3, %v5118_v24  ;;  %v7508_v16 = vld [vmem:[%s6801_s10 + $0x74] sm:$0x1] }
 0x102   : > { %v3785_v58 = vshll.u32 %v7451_v26, 16  ;;  %v3913_v1 = vshll.u32 %v7061_v14, 16  ;;  %5441 = vmatmul.mubr.msk.bf16.gmra.mrb[20].mxu1 %vm822_vm3, %v4949_v10  ;;  %v4951_v52 = vcombine.low %v7405_v49, %v7421_v46  ;;  %v4952_v38 = vcombine.low %v7425_v43, %v7447_v22 }
 0x103   : > { %v3823_v25 = vshll.u32 %v6965_v33, 16  ;;  %5444 = vmatprep.mubr.msk.bf16.mxu1 %vm822_vm3, %v4950_v11  ;;  %v5119_v63 = vcombine.low %v3730_v50, %v3740_v57  ;;  %v3796_v23 = vor.u32 %v3795_v18, %v3792_v6  ;;  %v3806_v10 = vor.u32 %v3805_v19, %v7457_v7  ;;  %v8341_v18 = vld [vmem:[#allocation14_spill] sm:$0xff] }
 0x104   : > { %v3809_v30 = vshll.u32 %v7463_v9, 16  ;;  %v3754_v49 = vsel %vm6210_vm4, %v3749_v31, %v7399_v44  ;;  %v3764_v46 = vsel %vm6210_vm4, %v3759_v36, %v3763_v13  ;;  %v7492_v35 = vsel %vm6476_vm7, %v4937_v45, %v1454_v28 }
 0x105   : > { %v3847_v51 = vshll.u32 %v6989_v0, 16  ;;  %v7497_v11 = vsel %vm6476_vm7, %v1456_v62, %v1457_v15  ;;  %v3773_v24 = vrot.slane %v3772_v29, 4  ;;  %v3783_v43 = vrot.slane %v3782_v40, 4  ;;  %v7525_v40 = vld [vmem:[%s6801_s10 + $0x80] sm:$0x1] }
 0x106   : > { %v3787_v20 = vrot.slane %v3785_v58, 5  ;;  %v8338_v17 = vshrl.u32 %v8337_v27, 16  ;;  %v8339_v60 = vshll.u32 %v8337_v27, 16  ;;  %v7503_v50 = vrot.slane %v3823_v25, 5  ;;  %v6021_v25 = vld [vmem:[%s6184_s18] sm:$0xf] }
 0x107   : > { %v8340_v28 = vshrl.u32 %v6965_v33, 16  ;;  %v5120_v22 = vcombine.low %v3754_v49, %v3764_v46  ;;  %v3797_v45 = vrot.slane %v3796_v23, 4  ;;  %v3807_v5 = vrot.slane %v3806_v10, 4 }
 0x108   : > { %v3816_v44 = vrot.slane %v8338_v17, 4  ;;  %v3819_v41 = vrot.slane %v8339_v60, 5  ;;  %v3811_v6 = vrot.slane %v3809_v30, 5  ;;  %v8342_v47 = vshrl.u32 %v8341_v18, 16  ;;  %5599 = vmatmul.mubr.msk.bf16.gmra.mrb[8].mxu0 %vm822_vm3, %v5119_v63 }
 0x109   : > { %v3829_v57 = vrot.slane %v8340_v28, 4  ;;  %v8343_v31 = vshll.u32 %v8341_v18, 16  ;;  %v7514_v13 = vrot.slane %v3847_v51, 5  ;;  %v8344_v37 = vshrl.u32 %v6989_v0, 16  ;;  %v6022_v0 = vld [vmem:[%s6184_s18 + $0x4] sm:$0xf]  ;;  %5602 = vmatprep.mubr.msk.bf16.mxu0 %vm822_vm3, %v5120_v22 }
 0x10a   : > { %v3840_v19 = vrot.slane %v8342_v47, 4  ;;  %v3923_v15 = vshrl.u32 %v7064_v3, 16  ;;  %v3778_v62 = vsel %vm6210_vm4, %v3773_v24, %v7436_v42  ;;  %v3788_v29 = vsel %vm6210_vm4, %v3783_v43, %v3787_v20  ;;  %5445 = vmatmul.mubr.msk.bf16.gmra.mrb[24].mxu1 %vm822_vm3, %v4951_v52  ;;  %v7555_v22 = vld [vmem:[%s6801_s10 + $0x8c] sm:$0x1] }
 0x10b   : > { %v3843_v36 = vrot.slane %v8343_v31, 5  ;;  %v3853_v33 = vrot.slane %v8344_v37, 4  ;;  %v3871_v58 = vshll.u32 %v7018_v21, 16  ;;  %v4970_v23 = vcombine.low %v6021_v25, %v6022_v0  ;;  %5448 = vmatprep.mubr.msk.bf16.mxu1 %vm822_vm3, %v4952_v38 }
 0x10c   : > { %v3820_v10 = vor.u32 %v3819_v41, %v3816_v44  ;;  %v3830_v30 = vor.u32 %v3829_v57, %v7503_v50  ;;  %v3833_v49 = vshll.u32 %v7508_v16, 16  ;;  %v4953_v42 = vcombine.low %v7492_v35, %v7497_v11 }
 0x10d   : > { %v3802_v52 = vsel %vm6210_vm4, %v3797_v45, %v7457_v7  ;;  %v3812_v63 = vsel %vm6210_vm4, %v3807_v5, %v3811_v6  ;;  %v3895_v46 = vshll.u32 %v7032_v2, 16  ;;  %v5121_v51 = vcombine.low %v3778_v62, %v3788_v29 }
 0x10e   : > { %v3844_v24 = vor.u32 %v3843_v36, %v3840_v19  ;;  %v3854_v43 = vor.u32 %v3853_v33, %v7514_v13  ;;  %v3857_v38 = vshll.u32 %v7525_v40, 16  ;;  %v8345_v20 = vshrl.u32 %v7015_v8, 16  ;;  %v7567_v33 = vld [vmem:[%s6801_s10 + $0x98] sm:$0x1] }
 0x10f   : > { %v8346_v35 = vshll.u32 %v7015_v8, 16  ;;  %v7550_v17 = vrot.slane %v3871_v58, 5  ;;  %v8347_v7 = vshrl.u32 %v7018_v21, 16  ;;  %v5122_v60 = vcombine.low %v3802_v52, %v3812_v63 }
 0x110   : > { %v3864_v27 = vrot.slane %v8345_v20, 4  ;;  %v3821_v41 = vrot.slane %v3820_v10, 4  ;;  %v3831_v28 = vrot.slane %v3830_v30, 4  ;;  %v3835_v57 = vrot.slane %v3833_v49, 5  ;;  %5603 = vmatmul.mubr.msk.bf16.gmra.mrb[12].mxu0 %vm822_vm3, %v5121_v51  ;;  %v6023_v10 = vld [vmem:[%s6184_s18 + $0xc] sm:$0xf] }
 0x111   : > { %v3867_v11 = vrot.slane %v8346_v35, 5  ;;  %v3877_v44 = vrot.slane %v8347_v7, 4  ;;  %v8348_v45 = vshrl.u32 %v7027_v54, 16  ;;  %v8349_v6 = vshll.u32 %v7027_v54, 16  ;;  %5606 = vmatprep.mubr.msk.bf16.mxu0 %vm822_vm3, %v5122_v60  ;;  %v6024_v30 = vld [vmem:[%s6184_s18 + $0x10] sm:$0xf] }
 0x112   : > { %v7561_v8 = vrot.slane %v3895_v46, 5  ;;  %v8350_v47 = vshrl.u32 %v7032_v2, 16  ;;  %v3934_v21 = vshrl.u32 %v7088_v56, 16  ;;  %v3845_v31 = vrot.slane %v3844_v24, 4  ;;  %5449 = vmatmul.mubr.msk.bf16.gmra.mrb[28].mxu1 %vm822_vm3, %v4953_v42  ;;  %v6025_v46 = vld [vmem:[%s6184_s18 + $0x18] sm:$0xf] }
 0x113   : > { %v3888_v5 = vrot.slane %v8348_v45, 4  ;;  %v3891_v18 = vrot.slane %v8349_v6, 5  ;;  %v3855_v36 = vrot.slane %v3854_v43, 4  ;;  %v3859_v37 = vrot.slane %v3857_v38, 5  ;;  %5454 = vmatprep.mubr.msk.bf16.mxu1 %vm822_vm3, %v4970_v23 }
 0x114   : > { %v3901_v19 = vrot.slane %v8350_v47, 4  ;;  %v3937_v62 = vshll.u32 %v7088_v56, 16  ;;  %v3868_v29 = vor.u32 %v3867_v11, %v3864_v27  ;;  %v3878_v54 = vor.u32 %v3877_v44, %v7550_v17  ;;  %v7596_v11 = vld [vmem:[%s6801_s10 + $0xa4] sm:$0x1] }
 0x115   : > { %v3881_v58 = vshll.u32 %v7555_v22, 16  ;;  %v3947_v2 = vshrl.u32 %v7096_v34, 16  ;;  %v3826_v25 = vsel %vm6210_vm4, %v3821_v41, %v7503_v50  ;;  %v3836_v56 = vsel %vm6210_vm4, %v3831_v28, %v3835_v57  ;;  %v6026_v50 = vld [vmem:[%s6184_s18 + $0x1c] sm:$0xf] }
 0x116   : > { %v3919_v0 = vshll.u32 %v7064_v3, 16  ;;  %v4971_v49 = vcombine.low %v6023_v10, %v6024_v30  ;;  %v3892_v42 = vor.u32 %v3891_v18, %v3888_v5  ;;  %v3902_v52 = vor.u32 %v3901_v19, %v7561_v8 }
 0x117   : > { %v3905_v63 = vshll.u32 %v7567_v33, 16  ;;  %v4972_v51 = vcombine.low %v6025_v46, %v6026_v50  ;;  %v3850_v24 = vsel %vm6210_vm4, %v3845_v31, %v7514_v13  ;;  %v3860_v23 = vsel %vm6210_vm4, %v3855_v36, %v3859_v37  ;;  %v7614_v31 = vld [vmem:[%s6801_s10 + $0xb0] sm:$0x1]  ;;  %v8352_v37 = vld [vmem:[#allocation2_spill] sm:$0xff] }
 0x118   : > { %v3943_v43 = vshll.u32 %v7096_v34, 16  ;;  %v5123_v38 = vcombine.low %v3826_v25, %v3836_v56  ;;  %v3869_v20 = vrot.slane %v3868_v29, 4  ;;  %v3879_v27 = vrot.slane %v3878_v54, 4  ;;  %v6027_v25 = vld [vmem:[%s6184_s18 + $0x24] sm:$0xf] }
 0x119   : > { %v3883_v35 = vrot.slane %v3881_v58, 5  ;;  %v8351_v7 = vshrl.u32 %v7061_v14, 16  ;;  %v3915_v60 = vrot.slane %v3913_v1, 5  ;;  %v7602_v41 = vrot.slane %v3919_v0, 5  ;;  %v6028_v56 = vld [vmem:[%s6184_s18 + $0x28] sm:$0xf] }
 0x11a   : > { %v3925_v13 = vrot.slane %v3923_v15, 4  ;;  %v5124_v28 = vcombine.low %v3850_v24, %v3860_v23  ;;  %v3893_v34 = vrot.slane %v3892_v42, 4  ;;  %v3903_v57 = vrot.slane %v3902_v52, 4  ;;  %5455 = vmatmul.mubr.msk.bf16.vlgmr.msra.gmra.mrb[0].mxu1 %vm822_vm3, %v4971_v49  ;;  %5607 = vmatmul.mubr.msk.bf16.gmra.mrb[16].mxu0 %vm822_vm3, %v5123_v38  ;;  %v6029_v52 = vld [vmem:[%s6184_s18 + $0x30] sm:$0xf] }
 0x11b   : > { %v3912_v44 = vrot.slane %v8351_v7, 4  ;;  %v3907_v45 = vrot.slane %v3905_v63, 5  ;;  %v3936_v5 = vrot.slane %v3934_v21, 4  ;;  %v3939_v6 = vrot.slane %v3937_v62, 5  ;;  %5657 = vmatpush3.bf16.msra.mxu1 %v8352_v37  ;;  %5458 = vmatprep.mubr.msk.bf16.mxu1 %vm822_vm3, %v4972_v51  ;;  %v6030_v63 = vld [vmem:[%s6184_s18 + $0x34] sm:$0xf] }
 0x11c   : > { %v7606_v18 = vrot.slane %v3943_v43, 5  ;;  %v3949_v47 = vrot.slane %v3947_v2, 4  ;;  %v3958_v19 = vshrl.u32 %v7120_v59, 16  ;;  %v3874_v14 = vsel %vm6210_vm4, %v3869_v20, %v7550_v17  ;;  %5610 = vmatprep.mubr.msk.bf16.mxu0 %vm822_vm3, %v5124_v28  ;;  %v7641_v20 = vld [vmem:[%s6801_s10 + $0xbc] sm:$0x1] }
 0x11d   : > { %v3929_v1 = vshll.u32 %v7596_v11, 16  ;;  %v3961_v3 = vshll.u32 %v7120_v59, 16  ;;  %v3884_v15 = vsel %vm6210_vm4, %v3879_v27, %v3883_v35  ;;  %v3916_v21 = vor.u32 %v3915_v60, %v3912_v44  ;;  %v6031_v44 = vld [vmem:[%s6801_s10 + $0x4] sm:$0xf] }
 0x11e   : > { %v3926_v36 = vor.u32 %v3925_v13, %v7602_v41  ;;  %v3971_v17 = vshrl.u32 %v7141_v48, 16  ;;  %v3898_v59 = vsel %vm6210_vm4, %v3893_v34, %v7561_v8  ;;  %v3967_v62 = vshll.u32 %v7141_v48, 16  ;;  %v7652_v13 = vld [vmem:[%s6184_s18 + $0x6c] sm:$0xf] }
 0x11f   : > { %v3908_v29 = vsel %vm6210_vm4, %v3903_v57, %v3907_v45  ;;  %v3940_v54 = vor.u32 %v3939_v6, %v3936_v5  ;;  %v3950_v58 = vor.u32 %v3949_v47, %v7606_v18  ;;  %v3953_v2 = vshll.u32 %v7614_v31, 16  ;;  %v7661_v45 = vld [vmem:[%s6184_s18 + $0x70] sm:$0xf] }
 0x120   : > { %v4973_v0 = vcombine.low %v6027_v25, %v6028_v56  ;;  %v5125_v10 = vcombine.low %v3874_v14, %v3884_v15  ;;  %v3931_v8 = vrot.slane %v3929_v1, 5  ;;  %v3917_v30 = vrot.slane %v3916_v21, 4  ;;  %v6035_v14 = vld [vmem:[%s6184_s18 + $0x40] sm:$0xf]  ;;  %v6036_v15 = vld [vmem:[%s6184_s18 + $0x48] sm:$0xf] }
 0x121   : > { %v3927_v49 = vrot.slane %v3926_v36, 4  ;;  %v3960_v48 = vrot.slane %v3958_v19, 4  ;;  %v3963_v42 = vrot.slane %v3961_v3, 5  ;;  %v4974_v46 = vcombine.low %v6029_v52, %v6030_v63  ;;  %v6034_v19 = vld [vmem:[%s6184_s18 + $0x3c] sm:$0xf] }
 0x122   : > { %v5126_v50 = vcombine.low %v3898_v59, %v3908_v29  ;;  %v7638_v51 = vrot.slane %v3967_v62, 5  ;;  %v3973_v24 = vrot.slane %v3971_v17, 4  ;;  %v3941_v23 = vrot.slane %v3940_v54, 4  ;;  %5459 = vmatmul.mubr.msk.bf16.gmra.mrb[4].mxu1 %vm822_vm3, %v4973_v0  ;;  %5611 = vmatmul.mubr.msk.bf16.gmra.mrb[20].mxu0 %vm822_vm3, %v5125_v10  ;;  %v6037_v21 = vld [vmem:[%s6184_s18 + $0x4c] sm:$0xf] }
 0x123   : > { %v3951_v43 = vrot.slane %v3950_v58, 4  ;;  %v3955_v38 = vrot.slane %v3953_v2, 5  ;;  %v3922_v27 = vsel %vm6210_vm4, %v3917_v30, %v7602_v41  ;;  %v3932_v35 = vsel %vm6210_vm4, %v3927_v49, %v3931_v8  ;;  %5462 = vmatprep.mubr.msk.bf16.mxu1 %vm822_vm3, %v4974_v46  ;;  %v6038_v17 = vld [vmem:[%s6801_s10 + $0x10] sm:$0xf]  ;;  %v6039_v62 = vld [vmem:[%s6801_s10] sm:$0xf] }
 0x124   : > { %v3964_v7 = vor.u32 %v3963_v42, %v3960_v48  ;;  %v4291_v60 = vrot.slane %v6031_v44, 5  ;;  %v2343_v28 = vshrl.u32 %v7652_v13, 16  ;;  %5614 = vmatprep.mubr.msk.bf16.mxu0 %vm822_vm3, %v5126_v50  ;;  %v3974_v41 = vor.u32 %v3973_v24, %v7638_v51  ;;  %v8353_v58 = vld [vmem:[#allocation15_spill] sm:$0xff]  ;;  %v6040_v0 = vld [vmem:[%s6801_s10 + $0x1c] sm:$0xf] }
 0x125   : > { %v3977_v34 = vshll.u32 %v7641_v20, 16  ;;  %v2346_v57 = vshll.u32 %v7652_v13, 16  ;;  %v2352_v5 = vshll.u32 %v7661_v45, 16  ;;  %v3946_v6 = vsel %vm6210_vm4, %v3941_v23, %v7606_v18  ;;  %v6041_v42 = vld [vmem:[%s6801_s10 + $0xc] sm:$0xf] }
 0x126   : > { %v3956_v47 = vsel %vm6210_vm4, %v3951_v43, %v3955_v38  ;;  %v4975_v1 = vcombine.low %v6034_v19, %v6035_v14  ;;  %v5127_v3 = vcombine.low %v3922_v27, %v3932_v35  ;;  %v4976_v36 = vcombine.low %v6036_v15, %v6037_v21  ;;  %v6042_v43 = vld [vmem:[%s6801_s10 + $0x18] sm:$0xf]  ;;  %v7729_v21 = vld [vmem:[%s6184_s18 + $0x7c] sm:$0xf] }
 0x127   : > { %v4298_v37 = vrot.slane %v6038_v17, 5  ;;  %v3965_v59 = vrot.slane %v3964_v7, 4  ;;  %v5146_v29 = vrot.slane %v6039_v62, 9  ;;  %v4293_v54 = vrot.slane %v4291_v60, 4  ;;  %v6043_v7 = vld [vmem:[%s6801_s10 + $0x28] sm:$0xf] }
 0x128   : > { %v4294_v18 = vrot.slane %v8353_v58, 5  ;;  %v5128_v2 = vcombine.low %v3946_v6, %v3956_v47  ;;  %v3975_v25 = vrot.slane %v3974_v41, 4  ;;  %v3979_v56 = vrot.slane %v3977_v34, 5  ;;  %v6045_v34 = vld [vmem:[%s6184_s18 + $0x54] sm:$0xf] }
 0x129   : > { %v4305_v10 = vrot.slane %v6040_v0, 5  ;;  %v7677_v8 = vrot.slane %v2343_v28, 4  ;;  %v7679_v30 = vrot.slane %v2346_v57, 5  ;;  %v2356_v49 = vshrl.u32 %v7661_v45, 16  ;;  %v7705_v28 = vld [vmem:[%s6184_s18 + $0x74] sm:$0x1] }
 0x12a   : > { %v7682_v48 = vrot.slane %v2352_v5, 5  ;;  %v5147_v52 = vrot.slane %v6041_v42, 9  ;;  %v4300_v63 = vrot.slane %v4298_v37, 4  ;;  %v4301_v46 = vrot.slane %v7182_v39, 5  ;;  %5463 = vmatmul.mubr.msk.bf16.gmra.mrb[8].mxu1 %vm822_vm3, %v4975_v1  ;;  %5615 = vmatmul.mubr.msk.bf16.gmra.mrb[24].mxu0 %vm822_vm3, %v5127_v3  ;;  %v6046_v57 = vld [vmem:[%s6184_s18 + $0x58] sm:$0xf] }
 0x12b   : > { %v3970_v50 = vsel %vm6210_vm4, %v3965_v59, %v7638_v51  ;;  %v4292_v24 = vsel %vm6476_vm7, %v5146_v29, %v4291_v60  ;;  %v4295_v23 = vsel %vm6476_vm7, %v4293_v54, %v4294_v18  ;;  %v5148_v39 = vrot.slane %v6042_v43, 9  ;;  %5466 = vmatprep.mubr.msk.bf16.mxu1 %vm822_vm3, %v4976_v36  ;;  %5618 = vmatprep.mubr.msk.bf16.mxu0 %vm822_vm3, %v5128_v2  ;;  %v8354_v51 = vld [vmem:[#allocation16_spill] sm:$0xff]  ;;  %v6047_v6 = vld [vmem:[%s6184_s18 + $0x60] sm:$0xf]  ;;  %v7712_v47 = vld [vmem:[%s6184_s18 + $0x64] sm:$0xf] }
 0x12c   : > { %v3980_v38 = vsel %vm6210_vm4, %v3975_v25, %v3979_v56  ;;  %v4307_v27 = vrot.slane %v4305_v10, 4  ;;  %v4308_v35 = vrot.slane %v8354_v51, 5  ;;  %v4312_v44 = vrot.slane %v6043_v7, 5  ;;  %v7726_v15 = vld [vmem:[%s6184_s18 + $0x78] sm:$0xf] }
 0x12d   : > { %v7702_v60 = vrot.slane %v2356_v49, 4  ;;  %v2362_v41 = vshll.u32 %v7705_v28, 16  ;;  %v4977_v5 = vcombine.low %v6045_v34, %v6046_v57  ;;  %v4978_v19 = vcombine.low %v6047_v6, %v7712_v47  ;;  %v6051_v62 = vld [vmem:[%s6801_s10 + $0x24] sm:$0xf]  ;;  %v7743_v58 = vld [vmem:[%s6184_s18 + $0x88] sm:$0xf] }
 0x12e   : > { %v4979_v14 = vcombine.low %v7652_v13, %v7661_v45  ;;  %v7719_v1 = vsel %vm6476_vm7, %v5147_v52, %v4298_v37  ;;  %v7723_v3 = vsel %vm6476_vm7, %v4300_v63, %v4301_v46  ;;  %v4980_v36 = vcombine.low %v7726_v15, %v7729_v21  ;;  %v7746_v18 = vld [vmem:[%s6184_s18 + $0x84] sm:$0xf]  ;;  %v7755_v63 = vld [vmem:[%s6184_s18 + $0x90] sm:$0xf]  ;;  %v7758_v46 = vld [vmem:[%s6184_s18 + $0x94] sm:$0xf] }
 0x12f   : > { %v5129_v17 = vcombine.low %v3970_v50, %v3980_v38  ;;  %v5162_v59 = vcombine.low %v4292_v24, %v4295_v23  ;;  %v7735_v37 = vsel %vm6476_vm7, %v5148_v39, %v4305_v10  ;;  %v5149_v29 = vrot.slane %v6051_v62, 9  ;;  %v6054_v10 = vld [vmem:[%s6801_s10 + $0x34] sm:$0xf]  ;;  %v6057_v24 = vld [vmem:[%s6801_s10 + $0x30] sm:$0xf] }
 0x130   : > { %v7740_v54 = vsel %vm6476_vm7, %v4307_v27, %v4308_v35  ;;  %v4981_v2 = vcombine.low %v7746_v18, %v7743_v58  ;;  %v4314_v25 = vrot.slane %v4312_v44, 4  ;;  %v4315_v56 = vrot.slane %v7285_v55, 5  ;;  %v6058_v43 = vld [vmem:[%s6801_s10 + $0x40] sm:$0xf]  ;;  %v6059_v39 = vld [vmem:[%s6801_s10 + $0x4c] sm:$0xf] }
 0x131   : > { %v5163_v0 = vcombine.low %v7719_v1, %v7723_v3  ;;  %v4319_v49 = vrot.slane %v6054_v10, 5  ;;  %v2319_v42 = vshrl.u32 %v6047_v6, 16  ;;  %v2322_v52 = vshll.u32 %v6047_v6, 16  ;;  %v6060_v7 = vld [vmem:[%s6801_s10 + $0x58] sm:$0xf] }
 0x132   : > { %v4982_v50 = vcombine.low %v7755_v63, %v7758_v46  ;;  %v5150_v23 = vrot.slane %v6057_v24, 9  ;;  %v4326_v55 = vrot.slane %v6058_v43, 5  ;;  %v4333_v38 = vrot.slane %v6059_v39, 5  ;;  %5467 = vmatmul.mubr.msk.bf16.gmra.mrb[12].mxu1 %vm822_vm3, %v4977_v5  ;;  %5619 = vmatmul.mubr.msk.bf16.gmra.mrb[28].mxu0 %vm822_vm3, %v5129_v17  ;;  %v6061_v5 = vld [vmem:[%s6801_s10 + $0x3c] sm:$0xf] }
 0x133   : > { %v5164_v27 = vcombine.low %v7735_v37, %v7740_v54  ;;  %v7771_v51 = vsel %vm6476_vm7, %v5149_v29, %v4312_v44  ;;  %v4322_v35 = vrot.slane %v7318_v61, 5  ;;  %v4340_v34 = vrot.slane %v6060_v7, 5  ;;  %5470 = vmatprep.mubr.msk.bf16.mxu1 %vm822_vm3, %v4978_v19  ;;  %5624 = vmatprep.mubr.msk.bf16.mxu0 %vm822_vm3, %v5162_v59  ;;  %v6062_v62 = vld [vmem:[%s6801_s10 + $0x48] sm:$0xf]  ;;  %v6065_v10 = vld [vmem:[%s6801_s10 + $0x54] sm:$0xf] }
 0x134   : > { %v7779_v57 = vsel %vm6476_vm7, %v4314_v25, %v4315_v56  ;;  %v5151_v6 = vrot.slane %v6061_v5, 9  ;;  %v2328_v44 = vshll.u32 %v7712_v47, 16  ;;  %v2332_v1 = vshrl.u32 %v7712_v47, 16  ;;  %v7788_v25 = vld [vmem:[%s6184_s18 + $0xa0] sm:$0xf] }
 0x135   : > { %v4321_v61 = vrot.slane %v4319_v49, 4  ;;  %v4329_v3 = vrot.slane %v7358_v4, 5  ;;  %v2321_v17 = vrot.slane %v2319_v42, 4  ;;  %v2324_v19 = vrot.slane %v2322_v52, 5  ;;  %v7791_v56 = vld [vmem:[%s6184_s18 + $0x9c] sm:$0xf] }
 0x136   : > { %v4328_v37 = vrot.slane %v4326_v55, 4  ;;  %v5152_v59 = vrot.slane %v6062_v62, 9  ;;  %v4335_v29 = vrot.slane %v4333_v38, 4  ;;  %v4336_v54 = vrot.slane %v7408_v53, 5  ;;  %v7815_v62 = vld [vmem:[%s6184_s18 + $0xa8] sm:$0xf] }
 0x137   : > { %v4983_v47 = vcombine.low %v7791_v56, %v7788_v25  ;;  %v5153_v24 = vrot.slane %v6065_v10, 9  ;;  %v4342_v4 = vrot.slane %v4340_v34, 4  ;;  %v4343_v42 = vrot.slane %v7451_v26, 5  ;;  %v7812_v26 = vld [vmem:[%s6184_s18 + $0xac] sm:$0xf] }
 0x138   : > { %v5165_v52 = vcombine.low %v7771_v51, %v7779_v57  ;;  %v7801_v43 = vsel %vm6476_vm7, %v5150_v23, %v4319_v49  ;;  %v7803_v53 = vrot.slane %v2328_v44, 5  ;;  %v2334_v39 = vrot.slane %v2332_v1, 4  ;;  %v6068_v57 = vld [vmem:[%s6801_s10 + $0x64] sm:$0xf]  ;;  %v6069_v1 = vld [vmem:[%s6184_s18 + $0x68] sm:$0x1] }
 0x139   : > { %v4323_v7 = vsel %vm6476_vm7, %v4321_v61, %v4322_v35  ;;  %v7809_v5 = vsel %vm6476_vm7, %v5151_v6, %v4326_v55  ;;  %v4984_v49 = vcombine.low %v7815_v62, %v7812_v26  ;;  %v2325_v23 = vor.u32 %v2324_v19, %v2321_v17  ;;  %v7858_v45 = vld [vmem:[%s6184_s18 + $0xb8] sm:$0xf] }
 0x13a   : > { %v7821_v51 = vsel %vm6476_vm7, %v4328_v37, %v4329_v3  ;;  %v7825_v35 = vsel %vm6476_vm7, %v5152_v59, %v4333_v38  ;;  %v7829_v55 = vsel %vm6476_vm7, %v4335_v29, %v4336_v54  ;;  %v4347_v6 = vrot.slane %v6068_v57, 5  ;;  %5471 = vmatmul.mubr.msk.bf16.gmra.mrb[16].mxu1 %vm822_vm3, %v4979_v14  ;;  %5625 = vmatmul.mubr.msk.bf16.vlgmr.msra.gmra.mrb[0].mxu0 %vm822_vm3, %v5163_v0  ;;  %v6070_v3 = vld [vmem:[%s6801_s10 + $0x60] sm:$0xf]  ;;  %v7861_v14 = vld [vmem:[%s6184_s18 + $0xb4] sm:$0xf] }
 0x13b   : > { %v7839_v44 = vsel %vm6476_vm7, %v5153_v24, %v4340_v34  ;;  %v7843_v38 = vsel %vm6476_vm7, %v4342_v4, %v4343_v42  ;;  %v2338_v61 = vshll.u32 %v6069_v1, 16  ;;  %v5154_v17 = vrot.slane %v6070_v3, 9  ;;  %5474 = vmatprep.mubr.msk.bf16.mxu1 %vm822_vm3, %v4980_v36  ;;  %5628 = vmatprep.mubr.msk.bf16.mxu0 %vm822_vm3, %v5164_v27  ;;  %v6073_v4 = vld [vmem:[%s6801_s10 + $0x6c] sm:$0xf]  ;;  %v6074_v57 = vld [vmem:[%s6801_s10 + $0x70] sm:$0xf] }
 0x13c   : > { %v7849_v19 = vrot.slane %v2362_v41, 5  ;;  %v5166_v13 = vcombine.low %v7801_v43, %v4323_v7  ;;  %v4985_v0 = vcombine.low %v7861_v14, %v7858_v45  ;;  %v2335_v28 = vor.u32 %v2334_v39, %v7803_v53  ;;  %v6075_v1 = vld [vmem:[%s6801_s10 + $0x7c] sm:$0xf] }
 0x13d   : > { %v5167_v41 = vcombine.low %v7809_v5, %v7821_v51  ;;  %v7868_v34 = vrot.slane %v2325_v23, 4  ;;  %v2349_v36 = vor.u32 %v7679_v30, %v7677_v8  ;;  %v2359_v27 = vor.u32 %v7702_v60, %v7682_v48 }
 0x13e   : > { %v5168_v37 = vcombine.low %v7825_v35, %v7829_v55  ;;  %v5169_v59 = vcombine.low %v7839_v44, %v7843_v38  ;;  %v4349_v29 = vrot.slane %v4347_v6, 4  ;;  %v4350_v54 = vrot.slane %v7463_v9, 5 }
 0x13f   : > { %v7879_v10 = vrot.slane %v2338_v61, 5  ;;  %v7883_v24 = vsel %vm6476_vm7, %v5154_v17, %v4347_v6  ;;  %v2367_v8 = vshrl.u32 %v7726_v15, 16  ;;  %v2370_v30 = vshll.u32 %v7726_v15, 16 }
 0x140   : > { %v7887_v60 = vrot.slane %v2335_v28, 4  ;;  %v5155_v42 = vrot.slane %v6073_v4, 9  ;;  %v2376_v43 = vshll.u32 %v7729_v21, 16  ;;  %v2380_v39 = vshrl.u32 %v7729_v21, 16 }
 0x141   : > { %v2331_v9 = vsel %vm6210_vm4, %v7868_v34, %v7803_v53  ;;  %v7896_v7 = vrot.slane %v2349_v36, 4  ;;  %v7898_v23 = vrot.slane %v2359_v27, 4  ;;  %v4354_v6 = vrot.slane %v6074_v57, 5 }
 0x142   : > { %v7903_v15 = vsel %vm6476_vm7, %v4349_v29, %v4350_v54  ;;  %v4361_v61 = vrot.slane %v6075_v1, 5  ;;  %v2391_v3 = vshrl.u32 %v7746_v18, 16  ;;  %v2394_v21 = vshll.u32 %v7746_v18, 16  ;;  %5475 = vmatmul.mubr.msk.bf16.gmra.mrb[20].mxu1 %vm822_vm3, %v4981_v2  ;;  %5629 = vmatmul.mubr.msk.bf16.gmra.mrb[4].mxu0 %vm822_vm3, %v5165_v52  ;;  %v6076_v54 = vld [vmem:[%s6184_s18 + $0x80] sm:$0x1] }
 0x143   : > { %v2369_v17 = vrot.slane %v2367_v8, 4  ;;  %v2372_v28 = vrot.slane %v2370_v30, 5  ;;  %v2400_v36 = vshll.u32 %v7743_v58, 16  ;;  %v2404_v27 = vshrl.u32 %v7743_v58, 16  ;;  %5478 = vmatprep.mubr.msk.bf16.mxu1 %vm822_vm3, %v4982_v50  ;;  %5632 = vmatprep.mubr.msk.bf16.mxu0 %vm822_vm3, %v5166_v13  ;;  %v6077_v30 = vld [vmem:[%s6801_s10 + $0x78] sm:$0xf] }
 0x144   : > { %v2341_v18 = vsel %vm6210_vm4, %v7887_v60, %v7879_v10  ;;  %v4357_v2 = vrot.slane %v7508_v16, 5  ;;  %v7925_v52 = vrot.slane %v2376_v43, 5  ;;  %v2382_v29 = vrot.slane %v2380_v39, 4 }
 0x145   : > { %v5170_v58 = vcombine.low %v7883_v24, %v7903_v15  ;;  %v2355_v50 = vsel %vm6210_vm4, %v7896_v7, %v7682_v48  ;;  %v4356_v13 = vrot.slane %v4354_v6, 4  ;;  %v2386_v8 = vshll.u32 %v6076_v54, 16 }
 0x146   : > { %v5156_v4 = vrot.slane %v6077_v30, 9  ;;  %v4363_v10 = vrot.slane %v4361_v61, 4  ;;  %v2393_v60 = vrot.slane %v2391_v3, 4  ;;  %v2396_v16 = vrot.slane %v2394_v21, 5  ;;  %v6078_v3 = vld [vmem:[%s6801_s10 + $0x88] sm:$0xf] }
 0x147   : > { %v2373_v43 = vor.u32 %v2372_v28, %v2369_v17  ;;  %v4364_v39 = vrot.slane %v7525_v40, 5  ;;  %v7936_v57 = vrot.slane %v2400_v36, 5  ;;  %v2406_v1 = vrot.slane %v2404_v27, 4 }
 0x148   : > { %v2365_v48 = vsel %vm6210_vm4, %v7898_v23, %v7849_v19  ;;  %v7944_v7 = vsel %vm6476_vm7, %v5155_v42, %v4354_v6  ;;  %v2383_v54 = vor.u32 %v2382_v29, %v7925_v52  ;;  %v4368_v21 = vrot.slane %v6078_v3, 5 }
 0x149   : > { %v7950_v40 = vsel %vm6476_vm7, %v4356_v13, %v4357_v2  ;;  %v2388_v17 = vrot.slane %v2386_v8, 5  ;;  %v2415_v28 = vshrl.u32 %v7755_v63, 16  ;;  %v2418_v36 = vshll.u32 %v7755_v63, 16  ;;  %v6079_v2 = vld [vmem:[%s6184_s18 + $0x8c] sm:$0x1] }
 0x14a   : > { %v7956_v19 = vsel %vm6476_vm7, %v5156_v4, %v4361_v61  ;;  %v2397_v42 = vor.u32 %v2396_v16, %v2393_v60  ;;  %v2424_v23 = vshll.u32 %v7758_v46, 16  ;;  %v2428_v6 = vshrl.u32 %v7758_v46, 16  ;;  %5479 = vmatmul.mubr.msk.bf16.gmra.mrb[24].mxu1 %vm822_vm3, %v4983_v47  ;;  %5633 = vmatmul.mubr.msk.bf16.gmra.mrb[8].mxu0 %vm822_vm3, %v5167_v41  ;;  %v6080_v47 = vld [vmem:[%s6801_s10 + $0x84] sm:$0xf]  ;;  %v6081_v60 = vld [vmem:[%s6801_s10 + $0x94] sm:$0xf] }
 0x14b   : > { %v2374_v63 = vrot.slane %v2373_v43, 4  ;;  %v7970_v61 = vsel %vm6476_vm7, %v4363_v10, %v4364_v39  ;;  %v2407_v27 = vor.u32 %v2406_v1, %v7936_v57  ;;  %v2410_v29 = vshll.u32 %v6079_v2, 16  ;;  %5482 = vmatprep.mubr.msk.bf16.mxu1 %vm822_vm3, %v4984_v49  ;;  %5636 = vmatprep.mubr.msk.bf16.mxu0 %vm822_vm3, %v5168_v37  ;;  %v6082_v43 = vld [vmem:[%s6184_s18 + $0x98] sm:$0x1] }
 0x14c   : > { %v2384_v46 = vrot.slane %v2383_v54, 4  ;;  %v5157_v5 = vrot.slane %v6080_v47, 9  ;;  %v4370_v51 = vrot.slane %v4368_v21, 4  ;;  %v4371_v41 = vrot.slane %v7555_v22, 5 }
 0x14d   : > { %v5010_v13 = vcombine.low %v2331_v9, %v2341_v18  ;;  %v7989_v8 = vcombine.low %v2355_v50, %v2365_v48  ;;  %v2417_v49 = vrot.slane %v2415_v28, 4  ;;  %v2420_v35 = vrot.slane %v2418_v36, 5 }
 0x14e   : > { %v5171_v55 = vcombine.low %v7944_v7, %v7950_v40  ;;  %v2398_v37 = vrot.slane %v2397_v42, 4  ;;  %v7993_v30 = vrot.slane %v2424_v23, 5  ;;  %v2430_v4 = vrot.slane %v2428_v6, 4 }
 0x14f   : > { %v2379_v22 = vsel %vm6210_vm4, %v2374_v63, %v7925_v52  ;;  %v5172_v53 = vcombine.low %v7956_v19, %v7970_v61  ;;  %v2408_v34 = vrot.slane %v2407_v27, 4  ;;  %v2412_v9 = vrot.slane %v2410_v29, 5 }
 0x150   : > { %v2389_v18 = vsel %vm6210_vm4, %v2384_v46, %v2388_v17  ;;  %v8004_v50 = vsel %vm6476_vm7, %v5157_v5, %v4368_v21  ;;  %v8008_v10 = vsel %vm6476_vm7, %v4370_v51, %v4371_v41  ;;  %v4375_v16 = vrot.slane %v6081_v60, 5  ;;  %v6088_v60 = vld [vmem:[%s6801_s10 + $0xac] sm:$0xf] }
 0x151   : > { %v2421_v52 = vor.u32 %v2420_v35, %v2417_v49  ;;  %v2434_v39 = vshll.u32 %v6082_v43, 16  ;;  %v2439_v1 = vshrl.u32 %v7791_v56, 16  ;;  %v2442_v48 = vshll.u32 %v7791_v56, 16  ;;  %v6085_v35 = vld [vmem:[%s6801_s10 + $0x9c] sm:$0xf] }
 0x152   : > { %v2403_v54 = vsel %vm6210_vm4, %v2398_v37, %v7936_v57  ;;  %v2431_v3 = vor.u32 %v2430_v4, %v7993_v30  ;;  %v2448_v21 = vshll.u32 %v7788_v25, 16  ;;  %v2452_v17 = vshrl.u32 %v7788_v25, 16  ;;  %5483 = vmatmul.mubr.msk.bf16.gmra.mrb[28].mxu1 %vm822_vm3, %v4985_v0  ;;  %5637 = vmatmul.mubr.msk.bf16.gmra.mrb[12].mxu0 %vm822_vm3, %v5169_v59  ;;  %v6083_v57 = vld [vmem:[%s6801_s10 + $0x90] sm:$0xf] }
 0x153   : > { %v2413_v56 = vsel %vm6210_vm4, %v2408_v34, %v2412_v9  ;;  %v5158_v28 = vrot.slane %v6083_v57, 9  ;;  %v2463_v36 = vshrl.u32 %v7815_v62, 16  ;;  %v2466_v42 = vshll.u32 %v7815_v62, 16  ;;  %5504 = vmatprep.mubr.msk.bf16.mxu1 %vm822_vm3, %v5010_v13  ;;  %5640 = vmatprep.mubr.msk.bf16.mxu0 %vm822_vm3, %v5170_v58  ;;  %v6084_v13 = vld [vmem:[%s6184_s18 + $0xa4] sm:$0x1] }
 0x154   : > { %v4377_v25 = vrot.slane %v4375_v16, 4  ;;  %v4378_v44 = vrot.slane %v7567_v33, 5  ;;  %v2472_v38 = vshll.u32 %v7812_v26, 16  ;;  %v2476_v0 = vshrl.u32 %v7812_v26, 16  ;;  %v6086_v34 = vld [vmem:[%s6801_s10 + $0xa0] sm:$0xf] }
 0x155   : > { %v5012_v59 = vcombine.low %v2379_v22, %v2389_v18  ;;  %v2422_v23 = vrot.slane %v2421_v52, 4  ;;  %v2441_v6 = vrot.slane %v2439_v1, 4  ;;  %v2444_v63 = vrot.slane %v2442_v48, 5  ;;  %v6087_v18 = vld [vmem:[%s6184_s18 + $0xb0] sm:$0x1] }
 0x156   : > { %v2432_v62 = vrot.slane %v2431_v3, 4  ;;  %v2436_v27 = vrot.slane %v2434_v39, 5  ;;  %v8041_v2 = vrot.slane %v2448_v21, 5  ;;  %v2454_v24 = vrot.slane %v2452_v17, 4  ;;  %v6089_v17 = vld [vmem:[%s6801_s10 + $0xa8] sm:$0xf] }
 0x157   : > { %v5013_v15 = vcombine.low %v2403_v54, %v2413_v56  ;;  %v5173_v33 = vcombine.low %v8004_v50, %v8008_v10  ;;  %v2465_v58 = vrot.slane %v2463_v36, 4  ;;  %v2468_v29 = vrot.slane %v2466_v42, 5 }
 0x158   : > { %v4376_v26 = vsel %vm6476_vm7, %v5158_v28, %v4375_v16  ;;  %v4379_v46 = vsel %vm6476_vm7, %v4377_v25, %v4378_v44  ;;  %v8049_v47 = vrot.slane %v2472_v38, 5  ;;  %v2478_v5 = vrot.slane %v2476_v0, 4 }
 0x159   : > { %v2427_v51 = vsel %vm6210_vm4, %v2422_v23, %v7993_v30  ;;  %v2445_v41 = vor.u32 %v2444_v63, %v2441_v6  ;;  %v2458_v49 = vshll.u32 %v6084_v13, 16  ;;  %v5159_v37 = vrot.slane %v6085_v35, 9 }
 0x15a   : > { %v2437_v4 = vsel %vm6210_vm4, %v2432_v62, %v2436_v27  ;;  %v2455_v22 = vor.u32 %v2454_v24, %v8041_v2  ;;  %v4382_v9 = vrot.slane %v6086_v34, 5  ;;  %v2482_v50 = vshll.u32 %v6087_v18, 16  ;;  %5505 = vmatmul.mubr.msk.bf16.vlgmr.msra.gmra.mrb[16].mxu1 %vm822_vm3, %v7989_v8  ;;  %5641 = vmatmul.mubr.msk.bf16.gmra.mrb[16].mxu0 %vm822_vm3, %v5171_v55  ;;  %v6091_v27 = vld [vmem:[%s6801_s10 + $0xb8] sm:$0xf] }
 0x15b   : > { %v5174_v30 = vcombine.low %v4376_v26, %v4379_v46  ;;  %v2469_v10 = vor.u32 %v2468_v29, %v2465_v58  ;;  %v4389_v16 = vrot.slane %v6088_v60, 5  ;;  %v2487_v52 = vshrl.u32 %v7861_v14, 16  ;;  %5508 = vmatprep.mubr.msk.bf16.mxu1 %vm822_vm3, %v5012_v59  ;;  %5644 = vmatprep.mubr.msk.bf16.mxu0 %vm822_vm3, %v5172_v53  ;;  %v6090_v59 = vld [vmem:[%s6184_s18 + $0xbc] sm:$0x1]  ;;  %v6092_v26 = vld [vmem:[%s6801_s10 + $0xb4] sm:$0xf] }
 0x15c   : > { %v2479_v8 = vor.u32 %v2478_v5, %v8049_v47  ;;  %v2490_v7 = vshll.u32 %v7861_v14, 16  ;;  %v2496_v40 = vshll.u32 %v7858_v45, 16  ;;  %v2500_v55 = vshrl.u32 %v7858_v45, 16 }
 0x15d   : > { %v5014_v43 = vcombine.low %v2427_v51, %v2437_v4  ;;  %v2446_v39 = vrot.slane %v2445_v41, 4  ;;  %v2460_v1 = vrot.slane %v2458_v49, 5  ;;  %v4385_v48 = vrot.slane %v7596_v11, 5 }
 0x15e   : > { %v2456_v54 = vrot.slane %v2455_v22, 4  ;;  %v4384_v3 = vrot.slane %v4382_v9, 4  ;;  %v2484_v21 = vrot.slane %v2482_v50, 5  ;;  %v5160_v19 = vrot.slane %v6089_v17, 9 }
 0x15f   : > { %v2470_v61 = vrot.slane %v2469_v10, 4  ;;  %v4391_v53 = vrot.slane %v4389_v16, 4  ;;  %v4392_v56 = vrot.slane %v7614_v31, 5  ;;  %v2489_v14 = vrot.slane %v2487_v52, 4 }
 0x160   : > { %v2480_v57 = vrot.slane %v2479_v8, 4  ;;  %v2492_v28 = vrot.slane %v2490_v7, 5  ;;  %v2498_v36 = vrot.slane %v2496_v40, 5  ;;  %v2502_v45 = vrot.slane %v2500_v55, 4 }
 0x161   : > { %v2451_v42 = vsel %vm6210_vm4, %v2446_v39, %v8041_v2  ;;  %v2461_v11 = vsel %vm6210_vm4, %v2456_v54, %v2460_v1  ;;  %v4383_v25 = vsel %vm6476_vm7, %v5159_v37, %v4382_v9  ;;  %v4386_v44 = vsel %vm6476_vm7, %v4384_v3, %v4385_v48  ;;  %v8128_v39 = vld [vmem:[%s8241_s6] ss:$0 sm:$0xff] }
 0x162   : > { %5509 = vmatmul.mubr.msk.bf16.gmra.mrb[20].mxu1 %vm822_vm3, %v5013_v15  ;;  %5645 = vmatmul.mubr.msk.bf16.gmra.mrb[20].mxu0 %vm822_vm3, %v5173_v33  ;;  %v2475_v31 = vsel %vm6210_vm4, %v2470_v61, %v8049_v47  ;;  %v4390_v38 = vsel %vm6476_vm7, %v5160_v19, %v4389_v16  ;;  %v4393_v0 = vsel %vm6476_vm7, %v4391_v53, %v4392_v56  ;;  %v2506_v23 = vshll.u32 %v6090_v59, 16 }
 0x163   : > { %5512 = vmatprep.mubr.msk.bf16.mxu1 %vm822_vm3, %v5014_v43  ;;  %5648 = vmatprep.mubr.msk.bf16.mxu0 %vm822_vm3, %v5174_v30  ;;  %v2485_v6 = vsel %vm6210_vm4, %v2480_v57, %v2484_v21  ;;  %v2493_v63 = vor.u32 %v2492_v28, %v2489_v14  ;;  %v2503_v62 = vor.u32 %v2502_v45, %v2498_v36  ;;  %v4396_v2 = vrot.slane %v6091_v27, 5 }
 0x164   : > { %v5015_v24 = vcombine.low %v2451_v42, %v2461_v11  ;;  %v5175_v15 = vcombine.low %v4383_v25, %v4386_v44  ;;  %v5016_v33 = vcombine.low %v2475_v31, %v2485_v6  ;;  %v5176_v58 = vcombine.low %v4390_v38, %v4393_v0 }
 0x165   : > { %v2508_v29 = vrot.slane %v2506_v23, 5  ;;  %v5161_v46 = vrot.slane %v6092_v26, 9  ;;  %v2494_v47 = vrot.slane %v2493_v63, 4  ;;  %v2504_v5 = vrot.slane %v2503_v62, 4 }
 0x166   : > { %v4398_v51 = vrot.slane %v4396_v2, 4  ;;  %v4399_v41 = vrot.slane %v7641_v20, 5 }
 0x167   : > { %v4397_v13 = vsel %vm6476_vm7, %v5161_v46, %v4396_v2  ;;  %v2499_v49 = vsel %vm6210_vm4, %v2494_v47, %v2498_v36  ;;  %v2509_v35 = vsel %vm6210_vm4, %v2504_v5, %v2508_v29 }
 0x168   : > { %v4400_v20 = vsel %vm6476_vm7, %v4398_v51, %v4399_v41  ;;  %v5017_v37 = vcombine.low %v2499_v49, %v2509_v35 }
 0x169   : > { %v5177_v4 = vcombine.low %v4397_v13, %v4400_v20 }
 0x16a   : > { %5513 = vmatmul.mubr.msk.bf16.gmra.mrb[24].mxu1 %vm822_vm3, %v5015_v24  ;;  %5649 = vmatmul.mubr.msk.bf16.gmra.mrb[24].mxu0 %vm822_vm3, %v5175_v15 }
 0x16b   : > { %5516 = vmatprep.mubr.msk.bf16.mxu1 %vm822_vm3, %v5016_v33  ;;  %5652 = vmatprep.mubr.msk.bf16.mxu0 %vm822_vm3, %v5176_v58 }
 0x172   : > { %5517 = vmatmul.mubr.msk.bf16.gmra.mrb[28].mxu1 %vm822_vm3, %v5017_v37  ;;  %5653 = vmatmul.mubr.msk.bf16.gmra.mrb[28].mxu0 %vm822_vm3, %v5177_v4 }
 0x1ed   : > { %v5456_v22 = vpop.f32.mrb[0].mxu1 }
 0x1ee   : > { %v1967_v34 = vpop.f32.mrb[1].mxu1 }
 0x1ef   : > { %v5457_v9 = vpop.f32.mrb[2].mxu1 }
 0x1f0   : > { %v1970_v18 = vpop.f32.mrb[3].mxu1 }
 0x1f5   : > { %v5460_v50 = vpop.f32.mrb[4].mxu1 }
 0x1f6   : > { %v1983_v30 = vpop.f32.mrb[5].mxu1 }
 0x1f7   : > { %v5461_v10 = vpop.f32.mrb[6].mxu1 }
 0x1f8   : > { %v1986_v60 = vpop.f32.mrb[7].mxu1 }
 0x1fd   : > { %v5464_v32 = vpop.f32.mrb[8].mxu1 }
 0x1fe   : > { %v1999_v16 = vpop.f32.mrb[9].mxu1 }
 0x1ff   : > { %v5465_v52 = vpop.f32.mrb[10].mxu1 }
 0x200   : > { %v2002_v12 = vpop.f32.mrb[11].mxu1 }
 0x205   : > { %v5468_v8 = vpop.f32.mrb[12].mxu1 }
 0x206   : > { %v2015_v7 = vpop.f32.mrb[13].mxu1 }
 0x207   : > { %v5469_v40 = vpop.f32.mrb[14].mxu1 }
 0x208   : > { %v8123_v55 = vpop.f32.mrb[15].mxu1 }
 0x20d   : > { %v5626_v43 = vpop.f32.mrb[0].mxu0 }
 0x20e   : > { %v5658_v1 = vadd.f32 %v5626_v43, %v5456_v22  ;;  %v4534_v48 = vpop.f32.mrb[1].mxu0 }
 0x20f   : > { %v5659_v54 = vadd.f32 %v4534_v48, %v1967_v34  ;;  %v5627_v3 = vpop.f32.mrb[2].mxu0 }
 0x210   : > { %v4702_v21 = vadd.f32 %v5658_v1, %v8128_v39  ;;  %v5660_v17 = vadd.f32 %v5627_v3, %v5457_v9  ;;  %v4537_v19 = vpop.f32.mrb[3].mxu0 }
 0x211   : > { %v4700_v61 = vadd.f32 %v5659_v54, %v8128_v39  ;;  %v5661_v53 = vadd.f32 %v4537_v19, %v1970_v18 }
 0x212   : > { %4735 = vst.msk [vmem:[%s8133_s25 + $0x10] sm:$0xff] %vm4732_vm8, %v4702_v21  ;;  %v4703_v56 = vadd.f32 %v5660_v17, %v8128_v39 }
 0x213   : > { %4733 = vst.msk [vmem:[%s8133_s25] sm:$0xff] %vm4732_vm8, %v4700_v61  ;;  %v4701_v14 = vadd.f32 %v5661_v53, %v8128_v39 }
 0x214   : > { %4736 = vst.msk [vmem:[%s8133_s25 + $0x18] sm:$0xff] %vm4732_vm8, %v4703_v56 }
 0x215   : > { %4734 = vst.msk [vmem:[%s8133_s25 + $0x8] sm:$0xff] %vm4732_vm8, %v4701_v14  ;;  %v5630_v57 = vpop.f32.mrb[4].mxu0 }
 0x216   : > { %v5662_v28 = vadd.f32 %v5630_v57, %v5460_v50  ;;  %v4550_v36 = vpop.f32.mrb[5].mxu0 }
 0x217   : > { %v5663_v45 = vadd.f32 %v4550_v36, %v1983_v30  ;;  %v5631_v42 = vpop.f32.mrb[6].mxu0 }
 0x218   : > { %v4706_v11 = vadd.f32 %v5662_v28, %v8128_v39  ;;  %v5664_v25 = vadd.f32 %v5631_v42, %v5461_v10  ;;  %v4553_v44 = vpop.f32.mrb[7].mxu0 }
 0x219   : > { %v4704_v31 = vadd.f32 %v5663_v45, %v8128_v39  ;;  %v5665_v38 = vadd.f32 %v4553_v44, %v1986_v60 }
 0x21a   : > { %4739 = vst.msk [vmem:[%s8133_s25 + $0x30] sm:$0xff] %vm4732_vm8, %v4706_v11  ;;  %v4707_v0 = vadd.f32 %v5664_v25, %v8128_v39 }
 0x21b   : > { %4737 = vst.msk [vmem:[%s8133_s25 + $0x20] sm:$0xff] %vm4732_vm8, %v4704_v31  ;;  %v4705_v59 = vadd.f32 %v5665_v38, %v8128_v39 }
 0x21c   : > { %4740 = vst.msk [vmem:[%s8133_s25 + $0x38] sm:$0xff] %vm4732_vm8, %v4707_v0 }
 0x21d   : > { %4738 = vst.msk [vmem:[%s8133_s25 + $0x28] sm:$0xff] %vm4732_vm8, %v4705_v59  ;;  %v5634_v23 = vpop.f32.mrb[8].mxu0 }
 0x21e   : > { %v5666_v6 = vadd.f32 %v5634_v23, %v5464_v32  ;;  %v4566_v63 = vpop.f32.mrb[9].mxu0 }
 0x21f   : > { %v5667_v62 = vadd.f32 %v4566_v63, %v1999_v16  ;;  %v5635_v27 = vpop.f32.mrb[10].mxu0 }
 0x220   : > { %v4710_v2 = vadd.f32 %v5666_v6, %v8128_v39  ;;  %v5668_v24 = vadd.f32 %v5635_v27, %v5465_v52  ;;  %v4569_v15 = vpop.f32.mrb[11].mxu0 }
 0x221   : > { %v4708_v33 = vadd.f32 %v5667_v62, %v8128_v39  ;;  %v5669_v58 = vadd.f32 %v4569_v15, %v2002_v12 }
 0x222   : > { %4743 = vst.msk [vmem:[%s8133_s25 + $0x50] sm:$0xff] %vm4732_vm8, %v4710_v2  ;;  %v4711_v29 = vadd.f32 %v5668_v24, %v8128_v39 }
 0x223   : > { %4741 = vst.msk [vmem:[%s8133_s25 + $0x40] sm:$0xff] %vm4732_vm8, %v4708_v33  ;;  %v4709_v26 = vadd.f32 %v5669_v58, %v8128_v39 }
 0x224   : > { %4744 = vst.msk [vmem:[%s8133_s25 + $0x58] sm:$0xff] %vm4732_vm8, %v4711_v29 }
 0x225   : > { %4742 = vst.msk [vmem:[%s8133_s25 + $0x48] sm:$0xff] %vm4732_vm8, %v4709_v26  ;;  %v5638_v46 = vpop.f32.mrb[12].mxu0 }
 0x226   : > { %v5670_v47 = vadd.f32 %v5638_v46, %v5468_v8  ;;  %v4582_v5 = vpop.f32.mrb[13].mxu0 }
 0x227   : > { %v5671_v51 = vadd.f32 %v4582_v5, %v2015_v7  ;;  %v5639_v41 = vpop.f32.mrb[14].mxu0 }
 0x228   : > { %v4714_v13 = vadd.f32 %v5670_v47, %v8128_v39  ;;  %v5672_v49 = vadd.f32 %v5639_v41, %v5469_v40  ;;  %v4585_v35 = vpop.f32.mrb[15].mxu0 }
 0x229   : > { %v4712_v20 = vadd.f32 %v5671_v51, %v8128_v39  ;;  %v5673_v37 = vadd.f32 %v4585_v35, %v8123_v55 }
 0x22a   : > { %4747 = vst.msk [vmem:[%s8133_s25 + $0x70] sm:$0xff] %vm4732_vm8, %v4714_v13  ;;  %v4715_v4 = vadd.f32 %v5672_v49, %v8128_v39 }
 0x22b   : > { %4745 = vst.msk [vmem:[%s8133_s25 + $0x60] sm:$0xff] %vm4732_vm8, %v4712_v20  ;;  %v4713_v22 = vadd.f32 %v5673_v37, %v8128_v39 }
 0x22c   : > { %4748 = vst.msk [vmem:[%s8133_s25 + $0x78] sm:$0xff] %vm4732_vm8, %v4715_v4 }
 0x22d   : > { %4746 = vst.msk [vmem:[%s8133_s25 + $0x68] sm:$0xff] %vm4732_vm8, %v4713_v22  ;;  %v5506_v34 = vpop.f32.mrb[16].mxu1  ;;  %v5642_v9 = vpop.f32.mrb[16].mxu0 }
 0x22e   : > { %v5674_v18 = vadd.f32 %v5642_v9, %v5506_v34  ;;  %v2707_v50 = vpop.f32.mrb[17].mxu1  ;;  %v4598_v30 = vpop.f32.mrb[17].mxu0 }
 0x22f   : > { %v5675_v10 = vadd.f32 %v4598_v30, %v2707_v50  ;;  %v5507_v60 = vpop.f32.mrb[18].mxu1  ;;  %v5643_v32 = vpop.f32.mrb[18].mxu0 }
 0x230   : > { %v4718_v16 = vadd.f32 %v5674_v18, %v8128_v39  ;;  %v5676_v52 = vadd.f32 %v5643_v32, %v5507_v60  ;;  %v2710_v12 = vpop.f32.mrb[19].mxu1  ;;  %v4601_v8 = vpop.f32.mrb[19].mxu0 }
 0x231   : > { %v4716_v7 = vadd.f32 %v5675_v10, %v8128_v39  ;;  %v5677_v40 = vadd.f32 %v4601_v8, %v2710_v12 }
 0x232   : > { %4751 = vst.msk [vmem:[%s8133_s25 + $0x90] sm:$0xff] %vm4732_vm8, %v4718_v16  ;;  %v4719_v55 = vadd.f32 %v5676_v52, %v8128_v39 }
 0x233   : > { %4749 = vst.msk [vmem:[%s8133_s25 + $0x80] sm:$0xff] %vm4732_vm8, %v4716_v7  ;;  %v4717_v43 = vadd.f32 %v5677_v40, %v8128_v39 }
 0x234   : > { %4752 = vst.msk [vmem:[%s8133_s25 + $0x98] sm:$0xff] %vm4732_vm8, %v4719_v55 }
 0x235   : > { %4750 = vst.msk [vmem:[%s8133_s25 + $0x88] sm:$0xff] %vm4732_vm8, %v4717_v43  ;;  %v5510_v1 = vpop.f32.mrb[20].mxu1  ;;  %v5646_v48 = vpop.f32.mrb[20].mxu0 }
 0x236   : > { %v5678_v54 = vadd.f32 %v5646_v48, %v5510_v1  ;;  %v2723_v3 = vpop.f32.mrb[21].mxu1  ;;  %v4614_v21 = vpop.f32.mrb[21].mxu0 }
 0x237   : > { %v5679_v17 = vadd.f32 %v4614_v21, %v2723_v3  ;;  %v5511_v19 = vpop.f32.mrb[22].mxu1  ;;  %v5647_v61 = vpop.f32.mrb[22].mxu0 }
 0x238   : > { %v4722_v53 = vadd.f32 %v5678_v54, %v8128_v39  ;;  %v5680_v56 = vadd.f32 %v5647_v61, %v5511_v19  ;;  %v2726_v14 = vpop.f32.mrb[23].mxu1  ;;  %v4617_v57 = vpop.f32.mrb[23].mxu0 }
 0x239   : > { %v4720_v28 = vadd.f32 %v5679_v17, %v8128_v39  ;;  %v5681_v36 = vadd.f32 %v4617_v57, %v2726_v14 }
 0x23a   : > { %4755 = vst.msk [vmem:[%s8133_s25 + $0xb0] sm:$0xff] %vm4732_vm8, %v4722_v53  ;;  %v4723_v45 = vadd.f32 %v5680_v56, %v8128_v39 }
 0x23b   : > { %4753 = vst.msk [vmem:[%s8133_s25 + $0xa0] sm:$0xff] %vm4732_vm8, %v4720_v28  ;;  %v4721_v42 = vadd.f32 %v5681_v36, %v8128_v39 }
 0x23c   : > { %4756 = vst.msk [vmem:[%s8133_s25 + $0xb8] sm:$0xff] %vm4732_vm8, %v4723_v45 }
 0x23d   : > { %4754 = vst.msk [vmem:[%s8133_s25 + $0xa8] sm:$0xff] %vm4732_vm8, %v4721_v42  ;;  %v5514_v11 = vpop.f32.mrb[24].mxu1  ;;  %v5650_v25 = vpop.f32.mrb[24].mxu0 }
 0x23e   : > { %v5682_v44 = vadd.f32 %v5650_v25, %v5514_v11  ;;  %v2739_v31 = vpop.f32.mrb[25].mxu1  ;;  %v4630_v38 = vpop.f32.mrb[25].mxu0 }
 0x23f   : > { %v5683_v0 = vadd.f32 %v4630_v38, %v2739_v31  ;;  %v5515_v59 = vpop.f32.mrb[26].mxu1  ;;  %v5651_v23 = vpop.f32.mrb[26].mxu0 }
 0x240   : > { %v4726_v6 = vadd.f32 %v5682_v44, %v8128_v39  ;;  %v5684_v63 = vadd.f32 %v5651_v23, %v5515_v59  ;;  %v2742_v62 = vpop.f32.mrb[27].mxu1  ;;  %v4633_v27 = vpop.f32.mrb[27].mxu0 }
 0x241   : > { %v4724_v2 = vadd.f32 %v5683_v0, %v8128_v39  ;;  %v5685_v24 = vadd.f32 %v4633_v27, %v2742_v62 }
 0x242   : > { %4759 = vst.msk [vmem:[%s8133_s25 + $0xd0] sm:$0xff] %vm4732_vm8, %v4726_v6  ;;  %v4727_v15 = vadd.f32 %v5684_v63, %v8128_v39 }
 0x243   : > { %4757 = vst.msk [vmem:[%s8133_s25 + $0xc0] sm:$0xff] %vm4732_vm8, %v4724_v2  ;;  %v4725_v33 = vadd.f32 %v5685_v24, %v8128_v39 }
 0x244   : > { %4760 = vst.msk [vmem:[%s8133_s25 + $0xd8] sm:$0xff] %vm4732_vm8, %v4727_v15 }
 0x245   : > { %4758 = vst.msk [vmem:[%s8133_s25 + $0xc8] sm:$0xff] %vm4732_vm8, %v4725_v33  ;;  %v5518_v58 = vpop.f32.mrb[28].mxu1  ;;  %v5654_v29 = vpop.f32.mrb[28].mxu0 }
 0x246   : > { %v5686_v26 = vadd.f32 %v5654_v29, %v5518_v58  ;;  %v2755_v46 = vpop.f32.mrb[29].mxu1  ;;  %v4646_v47 = vpop.f32.mrb[29].mxu0 }
 0x247   : > { %v5687_v5 = vadd.f32 %v4646_v47, %v2755_v46  ;;  %v5519_v51 = vpop.f32.mrb[30].mxu1  ;;  %v5655_v41 = vpop.f32.mrb[30].mxu0 }
 0x248   : > { %v4730_v13 = vadd.f32 %v5686_v26, %v8128_v39  ;;  %v5688_v49 = vadd.f32 %v5655_v41, %v5519_v51  ;;  %v2758_v35 = vpop.f32.mrb[31].mxu1  ;;  %v4649_v20 = vpop.f32.mrb[31].mxu0 }
 0x249   : > { %v4728_v37 = vadd.f32 %v5687_v5, %v8128_v39  ;;  %v5689_v4 = vadd.f32 %v4649_v20, %v2758_v35 }
 0x24a   : > { %4763 = vst.msk [vmem:[%s8133_s25 + $0xf0] sm:$0xff] %vm4732_vm8, %v4730_v13  ;;  %v4731_v22 = vadd.f32 %v5688_v49, %v8128_v39 }
 0x24b   : > { %4761 = vst.msk [vmem:[%s8133_s25 + $0xe0] sm:$0xff] %vm4732_vm8, %v4728_v37  ;;  %v4729_v34 = vadd.f32 %v5689_v4, %v8128_v39 }
 0x24c   : > { %4764 = vst.msk [vmem:[%s8133_s25 + $0xf8] sm:$0xff] %vm4732_vm8, %v4731_v22 }
 0x24d   : > { %4762 = vst.msk [vmem:[%s8133_s25 + $0xe8] sm:$0xff] %vm4732_vm8, %v4729_v34 }
 0x24e PF: > { %s17_s24 = sadd.s32 1, %s6099_s24  }
 0x24f   : > { %p14_p5 = scmp.ge.s32.totalorder %s17_s24, 4  }
 0x251   :  { %16 = sbr.rel (!%p14_p5) target bundleno = 1 (0x1), region = 84 }

</bundles_post_ra>
